<compile_context>
chip_gen: v7x
topology: tpu7x:2x2x1
jax: 0.10.0
libtpu: 0.0.40
codegen_flags: <defaults>
</compile_context>

<pallas_src>
import math

import jax
import jax.numpy as jnp
import numpy as np
from jax import lax
from jax.experimental import pallas as pl
from jax.experimental.pallas import tpu as pltpu  # noqa: F401

# ----------------------------- module-consistent config ----------------------
B = 2              # batch
C_IN = 2           # in_channels
IMG = 8            # img_size (cubic), spatial_dims = 3
P = 4              # patch_size
HID = 32           # hidden_size
MLP = 64           # mlp_dim
NHEADS = 4         # num_heads (HID % NHEADS == 0)
NLAYERS = 2        # num_layers
NCLS = 1           # num_classes
DH = HID // NHEADS
NPATCH = (IMG // P) ** 3           # 8 patches
SEQ = NPATCH + 1                   # +1 cls token
BT = B * SEQ                       # 18 tokens: batch folded into one axis
KDIM = C_IN * P * P * P            # 128 (flattened patch length)
LN_EPS = 1e-5
SCALE = DH ** -0.5

# ----------------------------- packed vector-slab layout ----------------------
VW = MLP                           # 64-lane rows
NVEC = 7                           # per layer: ln1g ln1b bout ln2g ln2b bfc1 bfc2
R_MASK = 0                         # rows 0..BT-1: block-diagonal attention mask
R_LAYER0 = BT                      # per-layer vector rows start here
R_LNFG = BT + NLAYERS * NVEC
R_LNFB = R_LNFG + 1
R_WC = R_LNFB + 1
R_BC = R_WC + 1
VROWS = R_BC + 1


# ----------------------------- in-kernel math helpers ------------------------
def _layernorm(x, g, b):
    mu = jnp.mean(x, axis=-1, keepdims=True)
    var = jnp.mean(jnp.square(x - mu), axis=-1, keepdims=True)
    return (x - mu) * lax.rsqrt(var + LN_EPS) * g + b


def _erf(x):
    # Abramowitz & Stegun 7.1.26, |err| < 1.5e-7 (adequate for f32 @ 1e-3 tol).
    # TODO(synk): replace with lax.erf if/when erf_p lowers on Mosaic.
    a1, a2, a3, a4, a5 = 0.254829592, -0.284496736, 1.421413741, -1.453152027, 1.061405429
    p = 0.3275911
    ax = jnp.abs(x)
    t = 1.0 / (1.0 + p * ax)
    poly = ((((a5 * t + a4) * t + a3) * t + a2) * t + a1) * t
    y = 1.0 - poly * jnp.exp(-ax * ax)
    return jnp.where(x >= 0, y, -y)


def _gelu(x):  # nn.GELU() default = exact erf form
    return 0.5 * x * (1.0 + _erf(x * (1.0 / math.sqrt(2.0))))


def _split_heads(t):   # (BT, HID) -> (NHEADS, BT, DH); head h = lanes h*DH:(h+1)*DH
    return jnp.stack([t[:, h * DH:(h + 1) * DH] for h in range(NHEADS)], axis=0)


def _merge_heads(t):   # (NHEADS, BT, DH) -> (BT, HID), head-major lane order
    return jnp.concatenate([t[h] for h in range(NHEADS)], axis=1)


# ----------------------------- single fused kernel ---------------------------
def _fused_vit_kernel(xp_ref, emb_ref, wa_ref, wfc2_ref, vec_ref, cls_ref, hid_ref):
    f32 = jnp.float32

    # ---- patch embedding: one (BT,KDIM)@(KDIM,HID) matmul -------------------
    # addv rows carry conv-bias + position-embedding for patch rows and the
    # cls token for the (zero-input) cls rows.
    pe_w = emb_ref[0:KDIM, :]                                  # (KDIM, HID)
    addv = emb_ref[KDIM:KDIM + BT, :]                          # (BT, HID)
    x = jnp.dot(xp_ref[...], pe_w, preferred_element_type=f32) + addv   # (BT, HID)

    # Block-diagonal mask keeps the two batch elements independent while they
    # share one 18-token axis (halves issued attention matmuls). Hoisted
    # broadcast over heads (JAX does not CSE broadcast_in_dim).
    attn_mask = vec_ref[R_MASK:R_MASK + BT, 0:BT]              # (BT, BT)
    attn_mask = jnp.broadcast_to(attn_mask[None], (NHEADS, BT, BT))

    # ---- transformer blocks (statically unrolled, weights VMEM resident) ----
    for l in range(NLAYERS):
        vb = R_LAYER0 + l * NVEC
        ln1g = vec_ref[vb + 0:vb + 1, 0:HID]
        ln1b = vec_ref[vb + 1:vb + 2, 0:HID]
        bout = vec_ref[vb + 2:vb + 3, 0:HID]
        ln2g = vec_ref[vb + 3:vb + 4, 0:HID]
        ln2b = vec_ref[vb + 4:vb + 5, 0:HID]
        bfc1 = vec_ref[vb + 5:vb + 6, 0:MLP]
        bfc2 = vec_ref[vb + 6:vb + 7, 0:HID]

        wrow = wa_ref[l * HID:(l + 1) * HID, :]                # (HID, 192)
        wqkv = wrow[:, 0:3 * HID]                              # (HID, 96), Q pre-scaled
        wout = wrow[:, 3 * HID:4 * HID]                        # (HID, HID)
        wfc1 = wrow[:, 4 * HID:4 * HID + MLP]                  # (HID, MLP)
        wfc2 = wfc2_ref[l * MLP:(l + 1) * MLP, :]              # (MLP, HID)

        # --- self-attention: x = x + out_proj(MHSA(LN1(x))) ------------------
        h1 = _layernorm(x, ln1g, ln1b)                         # (BT, HID)
        qkv = jnp.dot(h1, wqkv, preferred_element_type=f32)    # (BT, 3*HID), fused QKV
        q = _split_heads(qkv[:, 0:HID])                        # (H, BT, DH)
        k = _split_heads(qkv[:, HID:2 * HID])
        v = _split_heads(qkv[:, 2 * HID:3 * HID])
        s = lax.dot_general(q, k, (((2,), (2,)), ((0,), (0,))),
                            preferred_element_type=f32) + attn_mask      # (H, BT, BT)
        s = s - jnp.max(s, axis=-1, keepdims=True)
        e = jnp.exp(s)
        p = e / jnp.sum(e, axis=-1, keepdims=True)             # exact softmax (parity)
        o = lax.dot_general(p, v, (((2,), (1,)), ((0,), (0,))),
                            preferred_element_type=f32)                   # (H, BT, DH)
        o = _merge_heads(o)                                                # (BT, HID)
        x = x + jnp.dot(o, wout, preferred_element_type=f32) + bout

        # --- MLP: x = x + fc2(GELU(fc1(LN2(x)))) -----------------------------
        h2 = _layernorm(x, ln2g, ln2b)
        m = _gelu(jnp.dot(h2, wfc1, preferred_element_type=f32) + bfc1)
        x = x + jnp.dot(m, wfc2, preferred_element_type=f32) + bfc2

        hid_ref[l] = x                                         # hidden_states_out[l]

    # ---- final LayerNorm + classifier + Sigmoid ------------------------------
    # Computed on all 18 rows (work is negligible); cls rows are selected
    # wrapper-side to avoid odd-offset in-kernel row extraction.
    lnfg = vec_ref[R_LNFG:R_LNFG + 1, 0:HID]
    lnfb = vec_ref[R_LNFB:R_LNFB + 1, 0:HID]
    wc_row = vec_ref[R_WC:R_WC + 1, 0:HID]                     # classifier weight (NCLS=1)
    bc = vec_ref[R_BC:R_BC + 1, 0:NCLS]
    xn = _layernorm(x, lnfg, lnfb)
    logits = jnp.sum(xn * wc_row, axis=-1, keepdims=True) + bc  # (BT, NCLS)
    cls_ref[...] = jax.nn.sigmoid(logits)


# ----------------------------- wrapper ----------------------------------------
def extract_patches(x):
    # x: (B, C, D, H, W); conv(kernel=stride=P) == per-patch flatten (C, pz, py, px)
    b, c, d, hh, w = x.shape
    nd, nh, nw = d // P, hh // P, w // P
    xp = x.reshape(b, c, nd, P, nh, P, nw, P)
    xp = xp.transpose(0, 2, 4, 6, 1, 3, 5, 7)       # (B, nd, nh, nw, C, P, P, P)
    return xp.reshape(b, nd * nh * nw, c * P * P * P)


def _pack_params(params):
    """Parameter-only relayout (done once in XLA): 5 kernel input buffers."""
    pe_w, pe_b, pos_emb, cls_tok, stack = params
    (ln1g, ln1b, wqkv, wout, bout, ln2g, ln2b,
     wfc1, bfc1, wfc2, bfc2, lnfg, lnfb, wc, bc) = stack

    # Additive rows: cls token on cls rows, conv-bias + pos-embedding elsewhere.
    addvec = jnp.concatenate([cls_tok, pos_emb + pe_b[None]], axis=1)     # (1, SEQ, HID)
    addvec2d = jnp.tile(addvec, (B, 1, 1)).reshape(BT, HID)
    emb = jnp.concatenate([pe_w, addvec2d], axis=0)                       # (KDIM+BT, HID)

    # Per-layer HID-row matrices, column-concatenated: [Q*scale | K | V | Wout | Wfc1].
    wq_s = wqkv[:, :, 0:HID] * SCALE                                      # fold softmax scale
    wa = jnp.concatenate([wq_s, wqkv[:, :, HID:], wout, wfc1], axis=-1)   # (L, HID, 192)
    wa = wa.reshape(NLAYERS * HID, 3 * HID + HID + MLP)
    wfc2_all = wfc2.reshape(NLAYERS * MLP, HID)                           # (L*MLP, HID)

    # Vector slab: block-diagonal mask rows first (aligned), then LN/bias rows.
    def row(v):
        v = jnp.reshape(v, (1, -1)).astype(jnp.float32)
        return jnp.pad(v, ((0, 0), (0, VW - v.shape[1])))

    mask = np.full((BT, BT), -1e30, np.float32)
    for b in range(B):
        mask[b * SEQ:(b + 1) * SEQ, b * SEQ:(b + 1) * SEQ] = 0.0
    rows = [jnp.pad(jnp.asarray(mask), ((0, 0), (0, VW - BT)))]
    for l in range(NLAYERS):
        rows += [row(ln1g[l]), row(ln1b[l]), row(bout[l]),
                 row(ln2g[l]), row(ln2b[l]), row(bfc1[l]), row(bfc2[l])]
    rows += [row(lnfg), row(lnfb), row(wc[:, 0]), row(bc)]
    vec = jnp.concatenate(rows, axis=0)                                   # (VROWS, VW)
    return emb, wa, wfc2_all, vec


def my_vit_forward(x, params):
    # Patch extraction + a zero "cls slot" row per batch, flattened to one
    # (B*SEQ, KDIM) token slab (XLA layout plumbing).
    xp = extract_patches(x)                                               # (B, NPATCH, KDIM)
    xp_aug = jnp.concatenate([jnp.zeros((B, 1, KDIM), x.dtype), xp], axis=1)
    xp2d = xp_aug.reshape(BT, KDIM)

    emb, wa, wfc2_all, vec = _pack_params(params)

    cls_all, hid = pl.pallas_call(
        _fused_vit_kernel,
        out_shape=(jax.ShapeDtypeStruct((BT, NCLS), jnp.float32),
                   jax.ShapeDtypeStruct((NLAYERS, BT, HID), jnp.float32)),
    )(xp2d, emb, wa, wfc2_all, vec)

    cls = cls_all.reshape(B, SEQ, NCLS)[:, 0, :]                          # (B, NCLS)
    return cls, hid.reshape(NLAYERS, B, SEQ, HID)


# ----------------------------- deterministic params ---------------------------
def init_params(key):
    ks = jax.random.split(key, 12)
    std = 0.02

    def nrm(k, shape):
        return jax.random.normal(k, shape, jnp.float32) * std

    # conv patch embedding: torch weight (HID, C, P, P, P) -> (KDIM, HID) for x @ W
    pe_w = nrm(ks[0], (HID, KDIM)).T
    pe_b = nrm(ks[1], (1, HID))
    pos_emb = nrm(ks[2], (1, NPATCH, HID))
    cls_tok = jnp.zeros((1, 1, HID), jnp.float32)   # matches torch.zeros init

    ln1g = jnp.ones((NLAYERS, 1, HID), jnp.float32)
    ln1b = jnp.zeros((NLAYERS, 1, HID), jnp.float32)
    ln2g = jnp.ones((NLAYERS, 1, HID), jnp.float32)
    ln2b = jnp.zeros((NLAYERS, 1, HID), jnp.float32)
    wqkv = nrm(ks[3], (NLAYERS, HID, 3 * HID))      # qkv_bias=False
    wout = nrm(ks[4], (NLAYERS, HID, HID))
    bout = nrm(ks[5], (NLAYERS, 1, HID))
    wfc1 = nrm(ks[6], (NLAYERS, HID, MLP))
    bfc1 = nrm(ks[7], (NLAYERS, 1, MLP))
    wfc2 = nrm(ks[8], (NLAYERS, MLP, HID))
    bfc2 = nrm(ks[9], (NLAYERS, 1, HID))
    lnfg = jnp.ones((1, HID), jnp.float32)
    lnfb = jnp.zeros((1, HID), jnp.float32)
    wc = nrm(ks[10], (HID, NCLS))
    bc = nrm(ks[11], (1, NCLS))
    stack = (ln1g, ln1b, wqkv, wout, bout, ln2g, ln2b,
             wfc1, bfc1, wfc2, bfc2, lnfg, lnfb, wc, bc)
    return pe_w, pe_b, pos_emb, cls_tok, stack


# ----------------------------- pure-JAX reference (sanity check) --------------
def reference_forward(x, params):
    pe_w, pe_b, pos_emb, cls_tok, stack = params
    (ln1g, ln1b, wqkv, wout, bout, ln2g, ln2b,
     wfc1, bfc1, wfc2, bfc2, lnfg, lnfb, wc, bc) = stack

    def ln(t, g, b):
        mu = t.mean(-1, keepdims=True)
        var = ((t - mu) ** 2).mean(-1, keepdims=True)
        return (t - mu) / jnp.sqrt(var + LN_EPS) * g + b

    xp = extract_patches(x)
    emb = xp @ pe_w + pe_b + pos_emb
    xs = jnp.concatenate([jnp.tile(cls_tok, (B, 1, 1)), emb], axis=1)
    hids = []
    for l in range(NLAYERS):
        h1 = ln(xs, ln1g[l], ln1b[l])
        qkv = h1 @ wqkv[l]
        q = qkv[..., :HID].reshape(B, SEQ, NHEADS, DH).transpose(0, 2, 1, 3)
        k = qkv[..., HID:2 * HID].reshape(B, SEQ, NHEADS, DH).transpose(0, 2, 1, 3)
        v = qkv[..., 2 * HID:].reshape(B, SEQ, NHEADS, DH).transpose(0, 2, 1, 3)
        att = jax.nn.softmax(jnp.einsum("bhxd,bhyd->bhxy", q, k) * SCALE, axis=-1)
        o = jnp.einsum("bhxy,bhyd->bhxd", att, v).transpose(0, 2, 1, 3).reshape(B, SEQ, HID)
        xs = xs + o @ wout[l] + bout[l]
        h2 = ln(xs, ln2g[l], ln2b[l])
        m = jax.nn.gelu(h2 @ wfc1[l] + bfc1[l], approximate=False) @ wfc2[l] + bfc2[l]
        xs = xs + m
        hids.append(xs)
    normed = ln(xs, lnfg, lnfb)
    cls = jax.nn.sigmoid(normed[:, 0] @ wc + bc)
    return cls, jnp.stack(hids, 0)


# ----------------------------- main -------------------------------------------
if __name__ == "__main__":
    key = jax.random.PRNGKey(0)
    kx, kp = jax.random.split(key)
    x = jax.random.normal(kx, (B, C_IN, IMG, IMG, IMG), jnp.float32)
    params = init_params(kp)

    cls_out, hidden_states = jax.jit(my_vit_forward)(x, params)
    jax.block_until_ready((cls_out, hidden_states))

    assert cls_out.shape == (B, NCLS)
    assert hidden_states.shape == (NLAYERS, B, SEQ, HID)

    ref_cls, ref_hid = reference_forward(x, params)
    np.testing.assert_allclose(np.asarray(cls_out), np.asarray(ref_cls),
                               atol=1e-3, rtol=1e-3)
    np.testing.assert_allclose(np.asarray(hidden_states), np.asarray(ref_hid),
                               atol=1e-3, rtol=1e-3)
    print("KERNEL_OK")
</pallas_src>

<mosaic_0001>
module attributes {stable_mosaic.version = 11 : i64} {
  func.func @_fused_vit_kernel(%arg0: memref<18x128xf32, #tpu.memory_space<vmem>>, %arg1: memref<146x32xf32, #tpu.memory_space<vmem>>, %arg2: memref<64x192xf32, #tpu.memory_space<vmem>>, %arg3: memref<128x32xf32, #tpu.memory_space<vmem>>, %arg4: memref<36x64xf32, #tpu.memory_space<vmem>>, %arg5: memref<18x1xf32, #tpu.memory_space<vmem>>, %arg6: memref<2x18x32xf32, #tpu.memory_space<vmem>>) attributes {dimension_semantics = [], scalar_prefetch = 0 : i64, scratch_operands = 0 : i64, tpu.core_type = #tpu.core_type<tc>} {
    %c0 = arith.constant 0 : index
    %c0_0 = arith.constant 0 : index
    %0 = vector.load %arg1[%c0, %c0_0] : memref<146x32xf32, #tpu.memory_space<vmem>>, vector<128x32xf32>
    %c128 = arith.constant 128 : index
    %c0_1 = arith.constant 0 : index
    %1 = vector.load %arg1[%c128, %c0_1] : memref<146x32xf32, #tpu.memory_space<vmem>>, vector<18x32xf32>
    %c0_2 = arith.constant 0 : index
    %c0_3 = arith.constant 0 : index
    %2 = vector.load %arg0[%c0_2, %c0_3] : memref<18x128xf32, #tpu.memory_space<vmem>>, vector<18x128xf32>
    %cst = arith.constant dense<0.000000e+00> : vector<18x32xf32>
    %3 = tpu.matmul %2, %0, %cst {dimension_numbers = #tpu.dot_dimension_numbers<[1], [0], [0], [1], [0, 0, 1, 1], [], []>} : vector<18x128xf32>, vector<128x32xf32>, vector<18x32xf32> -> vector<18x32xf32>
    %4 = arith.addf %3, %1 : vector<18x32xf32>
    %c0_4 = arith.constant 0 : index
    %c0_5 = arith.constant 0 : index
    %5 = vector.load %arg4[%c0_4, %c0_5] : memref<36x64xf32, #tpu.memory_space<vmem>>, vector<18x18xf32>
    %6 = vector.shape_cast %5 : vector<18x18xf32> to vector<1x18x18xf32>
    %7 = vector.shape_cast %6 : vector<1x18x18xf32> to vector<1x18x18xf32>
    %8 = vector.broadcast %7 : vector<1x18x18xf32> to vector<4x18x18xf32>
    %c18 = arith.constant 18 : index
    %c0_6 = arith.constant 0 : index
    %9 = vector.load %arg4[%c18, %c0_6] : memref<36x64xf32, #tpu.memory_space<vmem>>, vector<1x32xf32>
    %c19 = arith.constant 19 : index
    %c0_7 = arith.constant 0 : index
    %10 = vector.load %arg4[%c19, %c0_7] : memref<36x64xf32, #tpu.memory_space<vmem>>, vector<1x32xf32>
    %c20 = arith.constant 20 : index
    %c0_8 = arith.constant 0 : index
    %11 = vector.load %arg4[%c20, %c0_8] : memref<36x64xf32, #tpu.memory_space<vmem>>, vector<1x32xf32>
    %c21 = arith.constant 21 : index
    %c0_9 = arith.constant 0 : index
    %12 = vector.load %arg4[%c21, %c0_9] : memref<36x64xf32, #tpu.memory_space<vmem>>, vector<1x32xf32>
    %c22 = arith.constant 22 : index
    %c0_10 = arith.constant 0 : index
    %13 = vector.load %arg4[%c22, %c0_10] : memref<36x64xf32, #tpu.memory_space<vmem>>, vector<1x32xf32>
    %c23 = arith.constant 23 : index
    %c0_11 = arith.constant 0 : index
    %14 = vector.load %arg4[%c23, %c0_11] : memref<36x64xf32, #tpu.memory_space<vmem>>, vector<1x64xf32>
    %c24 = arith.constant 24 : index
    %c0_12 = arith.constant 0 : index
    %15 = vector.load %arg4[%c24, %c0_12] : memref<36x64xf32, #tpu.memory_space<vmem>>, vector<1x32xf32>
    %c0_13 = arith.constant 0 : index
    %c0_14 = arith.constant 0 : index
    %16 = vector.load %arg2[%c0_13, %c0_14] : memref<64x192xf32, #tpu.memory_space<vmem>>, vector<32x192xf32>
    %17 = vector.extract_strided_slice %16 {offsets = [0, 0], sizes = [32, 96], strides = [1, 1]} : vector<32x192xf32> to vector<32x96xf32>
    %18 = vector.extract_strided_slice %16 {offsets = [0, 96], sizes = [32, 32], strides = [1, 1]} : vector<32x192xf32> to vector<32x32xf32>
    %19 = vector.extract_strided_slice %16 {offsets = [0, 128], sizes = [32, 64], strides = [1, 1]} : vector<32x192xf32> to vector<32x64xf32>
    %c0_15 = arith.constant 0 : index
    %c0_16 = arith.constant 0 : index
    %20 = vector.load %arg3[%c0_15, %c0_16] : memref<128x32xf32, #tpu.memory_space<vmem>>, vector<64x32xf32>
    %cst_17 = arith.constant dense<0.000000e+00> : vector<18xf32>
    %21 = vector.multi_reduction <add>, %4, %cst_17 [1] : vector<18x32xf32> to vector<18xf32>
    %22 = vector.shape_cast %21 : vector<18xf32> to vector<18x1xf32>
    %cst_18 = arith.constant 3.200000e+01 : f32
    %23 = vector.broadcast %cst_18 : f32 to vector<18x1xf32>
    %24 = arith.divf %22, %23 : vector<18x1xf32>
    %25 = vector.broadcast %24 : vector<18x1xf32> to vector<18x32xf32>
    %26 = arith.subf %4, %25 : vector<18x32xf32>
    %27 = arith.mulf %26, %26 : vector<18x32xf32>
    %cst_19 = arith.constant dense<0.000000e+00> : vector<18xf32>
    %28 = vector.multi_reduction <add>, %27, %cst_19 [1] : vector<18x32xf32> to vector<18xf32>
    %29 = vector.shape_cast %28 : vector<18xf32> to vector<18x1xf32>
    %cst_20 = arith.constant 3.200000e+01 : f32
    %30 = vector.broadcast %cst_20 : f32 to vector<18x1xf32>
    %31 = arith.divf %29, %30 : vector<18x1xf32>
    %32 = vector.broadcast %24 : vector<18x1xf32> to vector<18x32xf32>
    %33 = arith.subf %4, %32 : vector<18x32xf32>
    %cst_21 = arith.constant 9.99999974E-6 : f32
    %34 = vector.broadcast %cst_21 : f32 to vector<18x1xf32>
    %35 = arith.addf %31, %34 : vector<18x1xf32>
    %36 = math.rsqrt %35 : vector<18x1xf32>
    %37 = vector.broadcast %36 : vector<18x1xf32> to vector<18x32xf32>
    %38 = arith.mulf %33, %37 : vector<18x32xf32>
    %39 = vector.broadcast %9 : vector<1x32xf32> to vector<18x32xf32>
    %40 = arith.mulf %38, %39 : vector<18x32xf32>
    %41 = vector.broadcast %10 : vector<1x32xf32> to vector<18x32xf32>
    %42 = arith.addf %40, %41 : vector<18x32xf32>
    %cst_22 = arith.constant dense<0.000000e+00> : vector<18x96xf32>
    %43 = tpu.matmul %42, %17, %cst_22 {dimension_numbers = #tpu.dot_dimension_numbers<[1], [0], [0], [1], [0, 0, 1, 1], [], []>} : vector<18x32xf32>, vector<32x96xf32>, vector<18x96xf32> -> vector<18x96xf32>
    %44 = vector.extract_strided_slice %43 {offsets = [0, 0], sizes = [18, 32], strides = [1, 1]} : vector<18x96xf32> to vector<18x32xf32>
    %45 = vector.extract_strided_slice %44 {offsets = [0, 0], sizes = [18, 8], strides = [1, 1]} : vector<18x32xf32> to vector<18x8xf32>
    %46 = vector.extract_strided_slice %44 {offsets = [0, 8], sizes = [18, 8], strides = [1, 1]} : vector<18x32xf32> to vector<18x8xf32>
    %47 = vector.extract_strided_slice %44 {offsets = [0, 16], sizes = [18, 8], strides = [1, 1]} : vector<18x32xf32> to vector<18x8xf32>
    %48 = vector.extract_strided_slice %44 {offsets = [0, 24], sizes = [18, 8], strides = [1, 1]} : vector<18x32xf32> to vector<18x8xf32>
    %49 = vector.shape_cast %45 : vector<18x8xf32> to vector<1x18x8xf32>
    %50 = vector.shape_cast %46 : vector<18x8xf32> to vector<1x18x8xf32>
    %51 = vector.shape_cast %47 : vector<18x8xf32> to vector<1x18x8xf32>
    %52 = vector.shape_cast %48 : vector<18x8xf32> to vector<1x18x8xf32>
    %53 = tpu.concatenate %49, %50, %51, %52 in 0 : vector<1x18x8xf32>, vector<1x18x8xf32>, vector<1x18x8xf32>, vector<1x18x8xf32> -> vector<4x18x8xf32>
    %54 = vector.extract_strided_slice %43 {offsets = [0, 32], sizes = [18, 32], strides = [1, 1]} : vector<18x96xf32> to vector<18x32xf32>
    %55 = vector.extract_strided_slice %54 {offsets = [0, 0], sizes = [18, 8], strides = [1, 1]} : vector<18x32xf32> to vector<18x8xf32>
    %56 = vector.extract_strided_slice %54 {offsets = [0, 8], sizes = [18, 8], strides = [1, 1]} : vector<18x32xf32> to vector<18x8xf32>
    %57 = vector.extract_strided_slice %54 {offsets = [0, 16], sizes = [18, 8], strides = [1, 1]} : vector<18x32xf32> to vector<18x8xf32>
    %58 = vector.extract_strided_slice %54 {offsets = [0, 24], sizes = [18, 8], strides = [1, 1]} : vector<18x32xf32> to vector<18x8xf32>
    %59 = vector.shape_cast %55 : vector<18x8xf32> to vector<1x18x8xf32>
    %60 = vector.shape_cast %56 : vector<18x8xf32> to vector<1x18x8xf32>
    %61 = vector.shape_cast %57 : vector<18x8xf32> to vector<1x18x8xf32>
    %62 = vector.shape_cast %58 : vector<18x8xf32> to vector<1x18x8xf32>
    %63 = tpu.concatenate %59, %60, %61, %62 in 0 : vector<1x18x8xf32>, vector<1x18x8xf32>, vector<1x18x8xf32>, vector<1x18x8xf32> -> vector<4x18x8xf32>
    %64 = vector.extract_strided_slice %43 {offsets = [0, 64], sizes = [18, 32], strides = [1, 1]} : vector<18x96xf32> to vector<18x32xf32>
    %65 = vector.extract_strided_slice %64 {offsets = [0, 0], sizes = [18, 8], strides = [1, 1]} : vector<18x32xf32> to vector<18x8xf32>
    %66 = vector.extract_strided_slice %64 {offsets = [0, 8], sizes = [18, 8], strides = [1, 1]} : vector<18x32xf32> to vector<18x8xf32>
    %67 = vector.extract_strided_slice %64 {offsets = [0, 16], sizes = [18, 8], strides = [1, 1]} : vector<18x32xf32> to vector<18x8xf32>
    %68 = vector.extract_strided_slice %64 {offsets = [0, 24], sizes = [18, 8], strides = [1, 1]} : vector<18x32xf32> to vector<18x8xf32>
    %69 = vector.shape_cast %65 : vector<18x8xf32> to vector<1x18x8xf32>
    %70 = vector.shape_cast %66 : vector<18x8xf32> to vector<1x18x8xf32>
    %71 = vector.shape_cast %67 : vector<18x8xf32> to vector<1x18x8xf32>
    %72 = vector.shape_cast %68 : vector<18x8xf32> to vector<1x18x8xf32>
    %73 = tpu.concatenate %69, %70, %71, %72 in 0 : vector<1x18x8xf32>, vector<1x18x8xf32>, vector<1x18x8xf32>, vector<1x18x8xf32> -> vector<4x18x8xf32>
    %cst_23 = arith.constant dense<0.000000e+00> : vector<4x18x18xf32>
    %74 = tpu.matmul %53, %63, %cst_23 {dimension_numbers = #tpu.dot_dimension_numbers<[2], [2], [1], [1], [0, 0, 0, 1, 1, 1], [0], [0]>} : vector<4x18x8xf32>, vector<4x18x8xf32>, vector<4x18x18xf32> -> vector<4x18x18xf32>
    %75 = arith.addf %74, %8 : vector<4x18x18xf32>
    %cst_24 = arith.constant dense<0xFF800000> : vector<4x18xf32>
    %76 = vector.multi_reduction <maximumf>, %75, %cst_24 [2] : vector<4x18x18xf32> to vector<4x18xf32>
    %77 = vector.shape_cast %76 : vector<4x18xf32> to vector<4x18x1xf32>
    %78 = vector.broadcast %77 : vector<4x18x1xf32> to vector<4x18x18xf32>
    %79 = arith.subf %75, %78 : vector<4x18x18xf32>
    %80 = math.exp %79 : vector<4x18x18xf32>
    %cst_25 = arith.constant dense<0.000000e+00> : vector<4x18xf32>
    %81 = vector.multi_reduction <add>, %80, %cst_25 [2] : vector<4x18x18xf32> to vector<4x18xf32>
    %82 = vector.shape_cast %81 : vector<4x18xf32> to vector<4x18x1xf32>
    %83 = vector.broadcast %82 : vector<4x18x1xf32> to vector<4x18x18xf32>
    %84 = arith.divf %80, %83 : vector<4x18x18xf32>
    %cst_26 = arith.constant dense<0.000000e+00> : vector<4x18x8xf32>
    %85 = tpu.matmul %84, %73, %cst_26 {dimension_numbers = #tpu.dot_dimension_numbers<[2], [1], [1], [2], [0, 0, 0, 1, 1, 2], [0], [0]>} : vector<4x18x18xf32>, vector<4x18x8xf32>, vector<4x18x8xf32> -> vector<4x18x8xf32>
    %86 = vector.extract_strided_slice %85 {offsets = [0, 0, 0], sizes = [1, 18, 8], strides = [1, 1, 1]} : vector<4x18x8xf32> to vector<1x18x8xf32>
    %87 = vector.shape_cast %86 : vector<1x18x8xf32> to vector<18x8xf32>
    %88 = vector.extract_strided_slice %85 {offsets = [1, 0, 0], sizes = [1, 18, 8], strides = [1, 1, 1]} : vector<4x18x8xf32> to vector<1x18x8xf32>
    %89 = vector.shape_cast %88 : vector<1x18x8xf32> to vector<18x8xf32>
    %90 = vector.extract_strided_slice %85 {offsets = [2, 0, 0], sizes = [1, 18, 8], strides = [1, 1, 1]} : vector<4x18x8xf32> to vector<1x18x8xf32>
    %91 = vector.shape_cast %90 : vector<1x18x8xf32> to vector<18x8xf32>
    %92 = vector.extract_strided_slice %85 {offsets = [3, 0, 0], sizes = [1, 18, 8], strides = [1, 1, 1]} : vector<4x18x8xf32> to vector<1x18x8xf32>
    %93 = vector.shape_cast %92 : vector<1x18x8xf32> to vector<18x8xf32>
    %94 = tpu.concatenate %87, %89, %91, %93 in 1 : vector<18x8xf32>, vector<18x8xf32>, vector<18x8xf32>, vector<18x8xf32> -> vector<18x32xf32>
    %cst_27 = arith.constant dense<0.000000e+00> : vector<18x32xf32>
    %95 = tpu.matmul %94, %18, %cst_27 {dimension_numbers = #tpu.dot_dimension_numbers<[1], [0], [0], [1], [0, 0, 1, 1], [], []>} : vector<18x32xf32>, vector<32x32xf32>, vector<18x32xf32> -> vector<18x32xf32>
    %96 = arith.addf %4, %95 : vector<18x32xf32>
    %97 = vector.broadcast %11 : vector<1x32xf32> to vector<18x32xf32>
    %98 = arith.addf %96, %97 : vector<18x32xf32>
    %cst_28 = arith.constant dense<0.000000e+00> : vector<18xf32>
    %99 = vector.multi_reduction <add>, %98, %cst_28 [1] : vector<18x32xf32> to vector<18xf32>
    %100 = vector.shape_cast %99 : vector<18xf32> to vector<18x1xf32>
    %cst_29 = arith.constant 3.200000e+01 : f32
    %101 = vector.broadcast %cst_29 : f32 to vector<18x1xf32>
    %102 = arith.divf %100, %101 : vector<18x1xf32>
    %103 = vector.broadcast %102 : vector<18x1xf32> to vector<18x32xf32>
    %104 = arith.subf %98, %103 : vector<18x32xf32>
    %105 = arith.mulf %104, %104 : vector<18x32xf32>
    %cst_30 = arith.constant dense<0.000000e+00> : vector<18xf32>
    %106 = vector.multi_reduction <add>, %105, %cst_30 [1] : vector<18x32xf32> to vector<18xf32>
    %107 = vector.shape_cast %106 : vector<18xf32> to vector<18x1xf32>
    %cst_31 = arith.constant 3.200000e+01 : f32
    %108 = vector.broadcast %cst_31 : f32 to vector<18x1xf32>
    %109 = arith.divf %107, %108 : vector<18x1xf32>
    %110 = vector.broadcast %102 : vector<18x1xf32> to vector<18x32xf32>
    %111 = arith.subf %98, %110 : vector<18x32xf32>
    %cst_32 = arith.constant 9.99999974E-6 : f32
    %112 = vector.broadcast %cst_32 : f32 to vector<18x1xf32>
    %113 = arith.addf %109, %112 : vector<18x1xf32>
    %114 = math.rsqrt %113 : vector<18x1xf32>
    %115 = vector.broadcast %114 : vector<18x1xf32> to vector<18x32xf32>
    %116 = arith.mulf %111, %115 : vector<18x32xf32>
    %117 = vector.broadcast %12 : vector<1x32xf32> to vector<18x32xf32>
    %118 = arith.mulf %116, %117 : vector<18x32xf32>
    %119 = vector.broadcast %13 : vector<1x32xf32> to vector<18x32xf32>
    %120 = arith.addf %118, %119 : vector<18x32xf32>
    %cst_33 = arith.constant dense<0.000000e+00> : vector<18x64xf32>
    %121 = tpu.matmul %120, %19, %cst_33 {dimension_numbers = #tpu.dot_dimension_numbers<[1], [0], [0], [1], [0, 0, 1, 1], [], []>} : vector<18x32xf32>, vector<32x64xf32>, vector<18x64xf32> -> vector<18x64xf32>
    %122 = vector.broadcast %14 : vector<1x64xf32> to vector<18x64xf32>
    %123 = arith.addf %121, %122 : vector<18x64xf32>
    %cst_34 = arith.constant 5.000000e-01 : f32
    %124 = vector.broadcast %cst_34 : f32 to vector<18x64xf32>
    %125 = arith.mulf %124, %123 : vector<18x64xf32>
    %cst_35 = arith.constant 0.707106769 : f32
    %126 = vector.broadcast %cst_35 : f32 to vector<18x64xf32>
    %127 = arith.mulf %123, %126 : vector<18x64xf32>
    %128 = math.absf %127 : vector<18x64xf32>
    %cst_36 = arith.constant 0.327591091 : f32
    %129 = vector.broadcast %cst_36 : f32 to vector<18x64xf32>
    %130 = arith.mulf %129, %128 : vector<18x64xf32>
    %cst_37 = arith.constant 1.000000e+00 : f32
    %131 = vector.broadcast %cst_37 : f32 to vector<18x64xf32>
    %132 = arith.addf %131, %130 : vector<18x64xf32>
    %cst_38 = arith.constant 1.000000e+00 : f32
    %133 = vector.broadcast %cst_38 : f32 to vector<18x64xf32>
    %134 = arith.divf %133, %132 : vector<18x64xf32>
    %cst_39 = arith.constant 1.06140542 : f32
    %135 = vector.broadcast %cst_39 : f32 to vector<18x64xf32>
    %136 = arith.mulf %135, %134 : vector<18x64xf32>
    %cst_40 = arith.constant -1.45315206 : f32
    %137 = vector.broadcast %cst_40 : f32 to vector<18x64xf32>
    %138 = arith.addf %136, %137 : vector<18x64xf32>
    %139 = arith.mulf %138, %134 : vector<18x64xf32>
    %cst_41 = arith.constant 1.42141378 : f32
    %140 = vector.broadcast %cst_41 : f32 to vector<18x64xf32>
    %141 = arith.addf %139, %140 : vector<18x64xf32>
    %142 = arith.mulf %141, %134 : vector<18x64xf32>
    %cst_42 = arith.constant -0.284496725 : f32
    %143 = vector.broadcast %cst_42 : f32 to vector<18x64xf32>
    %144 = arith.addf %142, %143 : vector<18x64xf32>
    %145 = arith.mulf %144, %134 : vector<18x64xf32>
    %cst_43 = arith.constant 0.254829586 : f32
    %146 = vector.broadcast %cst_43 : f32 to vector<18x64xf32>
    %147 = arith.addf %145, %146 : vector<18x64xf32>
    %148 = arith.mulf %147, %134 : vector<18x64xf32>
    %cst_44 = arith.constant 0.000000e+00 : f32
    %149 = vector.broadcast %cst_44 : f32 to vector<18x64xf32>
    %150 = arith.subf %149, %128 : vector<18x64xf32>
    %151 = arith.mulf %150, %128 : vector<18x64xf32>
    %152 = math.exp %151 : vector<18x64xf32>
    %153 = arith.mulf %148, %152 : vector<18x64xf32>
    %cst_45 = arith.constant 1.000000e+00 : f32
    %154 = vector.broadcast %cst_45 : f32 to vector<18x64xf32>
    %155 = arith.subf %154, %153 : vector<18x64xf32>
    %cst_46 = arith.constant 0.000000e+00 : f32
    %156 = vector.broadcast %cst_46 : f32 to vector<18x64xf32>
    %157 = arith.cmpf oge, %127, %156 : vector<18x64xf32>
    %cst_47 = arith.constant 0.000000e+00 : f32
    %158 = vector.broadcast %cst_47 : f32 to vector<18x64xf32>
    %159 = arith.subf %158, %155 : vector<18x64xf32>
    %160 = arith.select %157, %155, %159 : vector<18x64xi1>, vector<18x64xf32>
    %cst_48 = arith.constant 1.000000e+00 : f32
    %161 = vector.broadcast %cst_48 : f32 to vector<18x64xf32>
    %162 = arith.addf %161, %160 : vector<18x64xf32>
    %163 = arith.mulf %125, %162 : vector<18x64xf32>
    %cst_49 = arith.constant dense<0.000000e+00> : vector<18x32xf32>
    %164 = tpu.matmul %163, %20, %cst_49 {dimension_numbers = #tpu.dot_dimension_numbers<[1], [0], [0], [1], [0, 0, 1, 1], [], []>} : vector<18x64xf32>, vector<64x32xf32>, vector<18x32xf32> -> vector<18x32xf32>
    %165 = arith.addf %98, %164 : vector<18x32xf32>
    %166 = vector.broadcast %15 : vector<1x32xf32> to vector<18x32xf32>
    %167 = arith.addf %165, %166 : vector<18x32xf32>
    %c0_50 = arith.constant 0 : index
    %c0_51 = arith.constant 0 : index
    %c0_52 = arith.constant 0 : index
    %168 = vector.load %arg6[%c0_50, %c0_51, %c0_52] : memref<2x18x32xf32, #tpu.memory_space<vmem>>, vector<1x18x32xf32>
    %169 = vector.shape_cast %168 : vector<1x18x32xf32> to vector<18x32xf32>
    %170 = vector.shape_cast %167 : vector<18x32xf32> to vector<1x18x32xf32>
    tpu.vector_store %arg6[%c0_50, %c0_51, %c0_52], %170 {strides = array<i32>} : memref<2x18x32xf32, #tpu.memory_space<vmem>>, vector<1x18x32xf32>,
    %c25 = arith.constant 25 : index
    %c0_53 = arith.constant 0 : index
    %171 = vector.load %arg4[%c25, %c0_53] : memref<36x64xf32, #tpu.memory_space<vmem>>, vector<1x32xf32>
    %c26 = arith.constant 26 : index
    %c0_54 = arith.constant 0 : index
    %172 = vector.load %arg4[%c26, %c0_54] : memref<36x64xf32, #tpu.memory_space<vmem>>, vector<1x32xf32>
    %c27 = arith.constant 27 : index
    %c0_55 = arith.constant 0 : index
    %173 = vector.load %arg4[%c27, %c0_55] : memref<36x64xf32, #tpu.memory_space<vmem>>, vector<1x32xf32>
    %c28 = arith.constant 28 : index
    %c0_56 = arith.constant 0 : index
    %174 = vector.load %arg4[%c28, %c0_56] : memref<36x64xf32, #tpu.memory_space<vmem>>, vector<1x32xf32>
    %c29 = arith.constant 29 : index
    %c0_57 = arith.constant 0 : index
    %175 = vector.load %arg4[%c29, %c0_57] : memref<36x64xf32, #tpu.memory_space<vmem>>, vector<1x32xf32>
    %c30 = arith.constant 30 : index
    %c0_58 = arith.constant 0 : index
    %176 = vector.load %arg4[%c30, %c0_58] : memref<36x64xf32, #tpu.memory_space<vmem>>, vector<1x64xf32>
    %c31 = arith.constant 31 : index
    %c0_59 = arith.constant 0 : index
    %177 = vector.load %arg4[%c31, %c0_59] : memref<36x64xf32, #tpu.memory_space<vmem>>, vector<1x32xf32>
    %c32 = arith.constant 32 : index
    %c0_60 = arith.constant 0 : index
    %178 = vector.load %arg2[%c32, %c0_60] : memref<64x192xf32, #tpu.memory_space<vmem>>, vector<32x192xf32>
    %179 = vector.extract_strided_slice %178 {offsets = [0, 0], sizes = [32, 96], strides = [1, 1]} : vector<32x192xf32> to vector<32x96xf32>
    %180 = vector.extract_strided_slice %178 {offsets = [0, 96], sizes = [32, 32], strides = [1, 1]} : vector<32x192xf32> to vector<32x32xf32>
    %181 = vector.extract_strided_slice %178 {offsets = [0, 128], sizes = [32, 64], strides = [1, 1]} : vector<32x192xf32> to vector<32x64xf32>
    %c64 = arith.constant 64 : index
    %c0_61 = arith.constant 0 : index
    %182 = vector.load %arg3[%c64, %c0_61] : memref<128x32xf32, #tpu.memory_space<vmem>>, vector<64x32xf32>
    %cst_62 = arith.constant dense<0.000000e+00> : vector<18xf32>
    %183 = vector.multi_reduction <add>, %167, %cst_62 [1] : vector<18x32xf32> to vector<18xf32>
    %184 = vector.shape_cast %183 : vector<18xf32> to vector<18x1xf32>
    %cst_63 = arith.constant 3.200000e+01 : f32
    %185 = vector.broadcast %cst_63 : f32 to vector<18x1xf32>
    %186 = arith.divf %184, %185 : vector<18x1xf32>
    %187 = vector.broadcast %186 : vector<18x1xf32> to vector<18x32xf32>
    %188 = arith.subf %167, %187 : vector<18x32xf32>
    %189 = arith.mulf %188, %188 : vector<18x32xf32>
    %cst_64 = arith.constant dense<0.000000e+00> : vector<18xf32>
    %190 = vector.multi_reduction <add>, %189, %cst_64 [1] : vector<18x32xf32> to vector<18xf32>
    %191 = vector.shape_cast %190 : vector<18xf32> to vector<18x1xf32>
    %cst_65 = arith.constant 3.200000e+01 : f32
    %192 = vector.broadcast %cst_65 : f32 to vector<18x1xf32>
    %193 = arith.divf %191, %192 : vector<18x1xf32>
    %194 = vector.broadcast %186 : vector<18x1xf32> to vector<18x32xf32>
    %195 = arith.subf %167, %194 : vector<18x32xf32>
    %cst_66 = arith.constant 9.99999974E-6 : f32
    %196 = vector.broadcast %cst_66 : f32 to vector<18x1xf32>
    %197 = arith.addf %193, %196 : vector<18x1xf32>
    %198 = math.rsqrt %197 : vector<18x1xf32>
    %199 = vector.broadcast %198 : vector<18x1xf32> to vector<18x32xf32>
    %200 = arith.mulf %195, %199 : vector<18x32xf32>
    %201 = vector.broadcast %171 : vector<1x32xf32> to vector<18x32xf32>
    %202 = arith.mulf %200, %201 : vector<18x32xf32>
    %203 = vector.broadcast %172 : vector<1x32xf32> to vector<18x32xf32>
    %204 = arith.addf %202, %203 : vector<18x32xf32>
    %cst_67 = arith.constant dense<0.000000e+00> : vector<18x96xf32>
    %205 = tpu.matmul %204, %179, %cst_67 {dimension_numbers = #tpu.dot_dimension_numbers<[1], [0], [0], [1], [0, 0, 1, 1], [], []>} : vector<18x32xf32>, vector<32x96xf32>, vector<18x96xf32> -> vector<18x96xf32>
    %206 = vector.extract_strided_slice %205 {offsets = [0, 0], sizes = [18, 32], strides = [1, 1]} : vector<18x96xf32> to vector<18x32xf32>
    %207 = vector.extract_strided_slice %206 {offsets = [0, 0], sizes = [18, 8], strides = [1, 1]} : vector<18x32xf32> to vector<18x8xf32>
    %208 = vector.extract_strided_slice %206 {offsets = [0, 8], sizes = [18, 8], strides = [1, 1]} : vector<18x32xf32> to vector<18x8xf32>
    %209 = vector.extract_strided_slice %206 {offsets = [0, 16], sizes = [18, 8], strides = [1, 1]} : vector<18x32xf32> to vector<18x8xf32>
    %210 = vector.extract_strided_slice %206 {offsets = [0, 24], sizes = [18, 8], strides = [1, 1]} : vector<18x32xf32> to vector<18x8xf32>
    %211 = vector.shape_cast %207 : vector<18x8xf32> to vector<1x18x8xf32>
    %212 = vector.shape_cast %208 : vector<18x8xf32> to vector<1x18x8xf32>
    %213 = vector.shape_cast %209 : vector<18x8xf32> to vector<1x18x8xf32>
    %214 = vector.shape_cast %210 : vector<18x8xf32> to vector<1x18x8xf32>
    %215 = tpu.concatenate %211, %212, %213, %214 in 0 : vector<1x18x8xf32>, vector<1x18x8xf32>, vector<1x18x8xf32>, vector<1x18x8xf32> -> vector<4x18x8xf32>
    %216 = vector.extract_strided_slice %205 {offsets = [0, 32], sizes = [18, 32], strides = [1, 1]} : vector<18x96xf32> to vector<18x32xf32>
    %217 = vector.extract_strided_slice %216 {offsets = [0, 0], sizes = [18, 8], strides = [1, 1]} : vector<18x32xf32> to vector<18x8xf32>
    %218 = vector.extract_strided_slice %216 {offsets = [0, 8], sizes = [18, 8], strides = [1, 1]} : vector<18x32xf32> to vector<18x8xf32>
    %219 = vector.extract_strided_slice %216 {offsets = [0, 16], sizes = [18, 8], strides = [1, 1]} : vector<18x32xf32> to vector<18x8xf32>
    %220 = vector.extract_strided_slice %216 {offsets = [0, 24], sizes = [18, 8], strides = [1, 1]} : vector<18x32xf32> to vector<18x8xf32>
    %221 = vector.shape_cast %217 : vector<18x8xf32> to vector<1x18x8xf32>
    %222 = vector.shape_cast %218 : vector<18x8xf32> to vector<1x18x8xf32>
    %223 = vector.shape_cast %219 : vector<18x8xf32> to vector<1x18x8xf32>
    %224 = vector.shape_cast %220 : vector<18x8xf32> to vector<1x18x8xf32>
    %225 = tpu.concatenate %221, %222, %223, %224 in 0 : vector<1x18x8xf32>, vector<1x18x8xf32>, vector<1x18x8xf32>, vector<1x18x8xf32> -> vector<4x18x8xf32>
    %226 = vector.extract_strided_slice %205 {offsets = [0, 64], sizes = [18, 32], strides = [1, 1]} : vector<18x96xf32> to vector<18x32xf32>
    %227 = vector.extract_strided_slice %226 {offsets = [0, 0], sizes = [18, 8], strides = [1, 1]} : vector<18x32xf32> to vector<18x8xf32>
    %228 = vector.extract_strided_slice %226 {offsets = [0, 8], sizes = [18, 8], strides = [1, 1]} : vector<18x32xf32> to vector<18x8xf32>
    %229 = vector.extract_strided_slice %226 {offsets = [0, 16], sizes = [18, 8], strides = [1, 1]} : vector<18x32xf32> to vector<18x8xf32>
    %230 = vector.extract_strided_slice %226 {offsets = [0, 24], sizes = [18, 8], strides = [1, 1]} : vector<18x32xf32> to vector<18x8xf32>
    %231 = vector.shape_cast %227 : vector<18x8xf32> to vector<1x18x8xf32>
    %232 = vector.shape_cast %228 : vector<18x8xf32> to vector<1x18x8xf32>
    %233 = vector.shape_cast %229 : vector<18x8xf32> to vector<1x18x8xf32>
    %234 = vector.shape_cast %230 : vector<18x8xf32> to vector<1x18x8xf32>
    %235 = tpu.concatenate %231, %232, %233, %234 in 0 : vector<1x18x8xf32>, vector<1x18x8xf32>, vector<1x18x8xf32>, vector<1x18x8xf32> -> vector<4x18x8xf32>
    %cst_68 = arith.constant dense<0.000000e+00> : vector<4x18x18xf32>
    %236 = tpu.matmul %215, %225, %cst_68 {dimension_numbers = #tpu.dot_dimension_numbers<[2], [2], [1], [1], [0, 0, 0, 1, 1, 1], [0], [0]>} : vector<4x18x8xf32>, vector<4x18x8xf32>, vector<4x18x18xf32> -> vector<4x18x18xf32>
    %237 = arith.addf %236, %8 : vector<4x18x18xf32>
    %cst_69 = arith.constant dense<0xFF800000> : vector<4x18xf32>
    %238 = vector.multi_reduction <maximumf>, %237, %cst_69 [2] : vector<4x18x18xf32> to vector<4x18xf32>
    %239 = vector.shape_cast %238 : vector<4x18xf32> to vector<4x18x1xf32>
    %240 = vector.broadcast %239 : vector<4x18x1xf32> to vector<4x18x18xf32>
    %241 = arith.subf %237, %240 : vector<4x18x18xf32>
    %242 = math.exp %241 : vector<4x18x18xf32>
    %cst_70 = arith.constant dense<0.000000e+00> : vector<4x18xf32>
    %243 = vector.multi_reduction <add>, %242, %cst_70 [2] : vector<4x18x18xf32> to vector<4x18xf32>
    %244 = vector.shape_cast %243 : vector<4x18xf32> to vector<4x18x1xf32>
    %245 = vector.broadcast %244 : vector<4x18x1xf32> to vector<4x18x18xf32>
    %246 = arith.divf %242, %245 : vector<4x18x18xf32>
    %cst_71 = arith.constant dense<0.000000e+00> : vector<4x18x8xf32>
    %247 = tpu.matmul %246, %235, %cst_71 {dimension_numbers = #tpu.dot_dimension_numbers<[2], [1], [1], [2], [0, 0, 0, 1, 1, 2], [0], [0]>} : vector<4x18x18xf32>, vector<4x18x8xf32>, vector<4x18x8xf32> -> vector<4x18x8xf32>
    %248 = vector.extract_strided_slice %247 {offsets = [0, 0, 0], sizes = [1, 18, 8], strides = [1, 1, 1]} : vector<4x18x8xf32> to vector<1x18x8xf32>
    %249 = vector.shape_cast %248 : vector<1x18x8xf32> to vector<18x8xf32>
    %250 = vector.extract_strided_slice %247 {offsets = [1, 0, 0], sizes = [1, 18, 8], strides = [1, 1, 1]} : vector<4x18x8xf32> to vector<1x18x8xf32>
    %251 = vector.shape_cast %250 : vector<1x18x8xf32> to vector<18x8xf32>
    %252 = vector.extract_strided_slice %247 {offsets = [2, 0, 0], sizes = [1, 18, 8], strides = [1, 1, 1]} : vector<4x18x8xf32> to vector<1x18x8xf32>
    %253 = vector.shape_cast %252 : vector<1x18x8xf32> to vector<18x8xf32>
    %254 = vector.extract_strided_slice %247 {offsets = [3, 0, 0], sizes = [1, 18, 8], strides = [1, 1, 1]} : vector<4x18x8xf32> to vector<1x18x8xf32>
    %255 = vector.shape_cast %254 : vector<1x18x8xf32> to vector<18x8xf32>
    %256 = tpu.concatenate %249, %251, %253, %255 in 1 : vector<18x8xf32>, vector<18x8xf32>, vector<18x8xf32>, vector<18x8xf32> -> vector<18x32xf32>
    %cst_72 = arith.constant dense<0.000000e+00> : vector<18x32xf32>
    %257 = tpu.matmul %256, %180, %cst_72 {dimension_numbers = #tpu.dot_dimension_numbers<[1], [0], [0], [1], [0, 0, 1, 1], [], []>} : vector<18x32xf32>, vector<32x32xf32>, vector<18x32xf32> -> vector<18x32xf32>
    %258 = arith.addf %167, %257 : vector<18x32xf32>
    %259 = vector.broadcast %173 : vector<1x32xf32> to vector<18x32xf32>
    %260 = arith.addf %258, %259 : vector<18x32xf32>
    %cst_73 = arith.constant dense<0.000000e+00> : vector<18xf32>
    %261 = vector.multi_reduction <add>, %260, %cst_73 [1] : vector<18x32xf32> to vector<18xf32>
    %262 = vector.shape_cast %261 : vector<18xf32> to vector<18x1xf32>
    %cst_74 = arith.constant 3.200000e+01 : f32
    %263 = vector.broadcast %cst_74 : f32 to vector<18x1xf32>
    %264 = arith.divf %262, %263 : vector<18x1xf32>
    %265 = vector.broadcast %264 : vector<18x1xf32> to vector<18x32xf32>
    %266 = arith.subf %260, %265 : vector<18x32xf32>
    %267 = arith.mulf %266, %266 : vector<18x32xf32>
    %cst_75 = arith.constant dense<0.000000e+00> : vector<18xf32>
    %268 = vector.multi_reduction <add>, %267, %cst_75 [1] : vector<18x32xf32> to vector<18xf32>
    %269 = vector.shape_cast %268 : vector<18xf32> to vector<18x1xf32>
    %cst_76 = arith.constant 3.200000e+01 : f32
    %270 = vector.broadcast %cst_76 : f32 to vector<18x1xf32>
    %271 = arith.divf %269, %270 : vector<18x1xf32>
    %272 = vector.broadcast %264 : vector<18x1xf32> to vector<18x32xf32>
    %273 = arith.subf %260, %272 : vector<18x32xf32>
    %cst_77 = arith.constant 9.99999974E-6 : f32
    %274 = vector.broadcast %cst_77 : f32 to vector<18x1xf32>
    %275 = arith.addf %271, %274 : vector<18x1xf32>
    %276 = math.rsqrt %275 : vector<18x1xf32>
    %277 = vector.broadcast %276 : vector<18x1xf32> to vector<18x32xf32>
    %278 = arith.mulf %273, %277 : vector<18x32xf32>
    %279 = vector.broadcast %174 : vector<1x32xf32> to vector<18x32xf32>
    %280 = arith.mulf %278, %279 : vector<18x32xf32>
    %281 = vector.broadcast %175 : vector<1x32xf32> to vector<18x32xf32>
    %282 = arith.addf %280, %281 : vector<18x32xf32>
    %cst_78 = arith.constant dense<0.000000e+00> : vector<18x64xf32>
    %283 = tpu.matmul %282, %181, %cst_78 {dimension_numbers = #tpu.dot_dimension_numbers<[1], [0], [0], [1], [0, 0, 1, 1], [], []>} : vector<18x32xf32>, vector<32x64xf32>, vector<18x64xf32> -> vector<18x64xf32>
    %284 = vector.broadcast %176 : vector<1x64xf32> to vector<18x64xf32>
    %285 = arith.addf %283, %284 : vector<18x64xf32>
    %cst_79 = arith.constant 5.000000e-01 : f32
    %286 = vector.broadcast %cst_79 : f32 to vector<18x64xf32>
    %287 = arith.mulf %286, %285 : vector<18x64xf32>
    %cst_80 = arith.constant 0.707106769 : f32
    %288 = vector.broadcast %cst_80 : f32 to vector<18x64xf32>
    %289 = arith.mulf %285, %288 : vector<18x64xf32>
    %290 = math.absf %289 : vector<18x64xf32>
    %cst_81 = arith.constant 0.327591091 : f32
    %291 = vector.broadcast %cst_81 : f32 to vector<18x64xf32>
    %292 = arith.mulf %291, %290 : vector<18x64xf32>
    %cst_82 = arith.constant 1.000000e+00 : f32
    %293 = vector.broadcast %cst_82 : f32 to vector<18x64xf32>
    %294 = arith.addf %293, %292 : vector<18x64xf32>
    %cst_83 = arith.constant 1.000000e+00 : f32
    %295 = vector.broadcast %cst_83 : f32 to vector<18x64xf32>
    %296 = arith.divf %295, %294 : vector<18x64xf32>
    %cst_84 = arith.constant 1.06140542 : f32
    %297 = vector.broadcast %cst_84 : f32 to vector<18x64xf32>
    %298 = arith.mulf %297, %296 : vector<18x64xf32>
    %cst_85 = arith.constant -1.45315206 : f32
    %299 = vector.broadcast %cst_85 : f32 to vector<18x64xf32>
    %300 = arith.addf %298, %299 : vector<18x64xf32>
    %301 = arith.mulf %300, %296 : vector<18x64xf32>
    %cst_86 = arith.constant 1.42141378 : f32
    %302 = vector.broadcast %cst_86 : f32 to vector<18x64xf32>
    %303 = arith.addf %301, %302 : vector<18x64xf32>
    %304 = arith.mulf %303, %296 : vector<18x64xf32>
    %cst_87 = arith.constant -0.284496725 : f32
    %305 = vector.broadcast %cst_87 : f32 to vector<18x64xf32>
    %306 = arith.addf %304, %305 : vector<18x64xf32>
    %307 = arith.mulf %306, %296 : vector<18x64xf32>
    %cst_88 = arith.constant 0.254829586 : f32
    %308 = vector.broadcast %cst_88 : f32 to vector<18x64xf32>
    %309 = arith.addf %307, %308 : vector<18x64xf32>
    %310 = arith.mulf %309, %296 : vector<18x64xf32>
    %cst_89 = arith.constant 0.000000e+00 : f32
    %311 = vector.broadcast %cst_89 : f32 to vector<18x64xf32>
    %312 = arith.subf %311, %290 : vector<18x64xf32>
    %313 = arith.mulf %312, %290 : vector<18x64xf32>
    %314 = math.exp %313 : vector<18x64xf32>
    %315 = arith.mulf %310, %314 : vector<18x64xf32>
    %cst_90 = arith.constant 1.000000e+00 : f32
    %316 = vector.broadcast %cst_90 : f32 to vector<18x64xf32>
    %317 = arith.subf %316, %315 : vector<18x64xf32>
    %cst_91 = arith.constant 0.000000e+00 : f32
    %318 = vector.broadcast %cst_91 : f32 to vector<18x64xf32>
    %319 = arith.cmpf oge, %289, %318 : vector<18x64xf32>
    %cst_92 = arith.constant 0.000000e+00 : f32
    %320 = vector.broadcast %cst_92 : f32 to vector<18x64xf32>
    %321 = arith.subf %320, %317 : vector<18x64xf32>
    %322 = arith.select %319, %317, %321 : vector<18x64xi1>, vector<18x64xf32>
    %cst_93 = arith.constant 1.000000e+00 : f32
    %323 = vector.broadcast %cst_93 : f32 to vector<18x64xf32>
    %324 = arith.addf %323, %322 : vector<18x64xf32>
    %325 = arith.mulf %287, %324 : vector<18x64xf32>
    %cst_94 = arith.constant dense<0.000000e+00> : vector<18x32xf32>
    %326 = tpu.matmul %325, %182, %cst_94 {dimension_numbers = #tpu.dot_dimension_numbers<[1], [0], [0], [1], [0, 0, 1, 1], [], []>} : vector<18x64xf32>, vector<64x32xf32>, vector<18x32xf32> -> vector<18x32xf32>
    %327 = arith.addf %260, %326 : vector<18x32xf32>
    %328 = vector.broadcast %177 : vector<1x32xf32> to vector<18x32xf32>
    %329 = arith.addf %327, %328 : vector<18x32xf32>
    %c1 = arith.constant 1 : index
    %c0_95 = arith.constant 0 : index
    %c0_96 = arith.constant 0 : index
    %330 = vector.load %arg6[%c1, %c0_95, %c0_96] : memref<2x18x32xf32, #tpu.memory_space<vmem>>, vector<1x18x32xf32>
    %331 = vector.shape_cast %330 : vector<1x18x32xf32> to vector<18x32xf32>
    %332 = vector.shape_cast %329 : vector<18x32xf32> to vector<1x18x32xf32>
    tpu.vector_store %arg6[%c1, %c0_95, %c0_96], %332 {strides = array<i32>} : memref<2x18x32xf32, #tpu.memory_space<vmem>>, vector<1x18x32xf32>,
    %c32_97 = arith.constant 32 : index
    %c0_98 = arith.constant 0 : index
    %333 = vector.load %arg4[%c32_97, %c0_98] : memref<36x64xf32, #tpu.memory_space<vmem>>, vector<1x32xf32>
    %c33 = arith.constant 33 : index
    %c0_99 = arith.constant 0 : index
    %334 = vector.load %arg4[%c33, %c0_99] : memref<36x64xf32, #tpu.memory_space<vmem>>, vector<1x32xf32>
    %c34 = arith.constant 34 : index
    %c0_100 = arith.constant 0 : index
    %335 = vector.load %arg4[%c34, %c0_100] : memref<36x64xf32, #tpu.memory_space<vmem>>, vector<1x32xf32>
    %c35 = arith.constant 35 : index
    %c0_101 = arith.constant 0 : index
    %336 = vector.load %arg4[%c35, %c0_101] : memref<36x64xf32, #tpu.memory_space<vmem>>, vector<1x1xf32>
    %cst_102 = arith.constant dense<0.000000e+00> : vector<18xf32>
    %337 = vector.multi_reduction <add>, %329, %cst_102 [1] : vector<18x32xf32> to vector<18xf32>
    %338 = vector.shape_cast %337 : vector<18xf32> to vector<18x1xf32>
    %cst_103 = arith.constant 3.200000e+01 : f32
    %339 = vector.broadcast %cst_103 : f32 to vector<18x1xf32>
    %340 = arith.divf %338, %339 : vector<18x1xf32>
    %341 = vector.broadcast %340 : vector<18x1xf32> to vector<18x32xf32>
    %342 = arith.subf %329, %341 : vector<18x32xf32>
    %343 = arith.mulf %342, %342 : vector<18x32xf32>
    %cst_104 = arith.constant dense<0.000000e+00> : vector<18xf32>
    %344 = vector.multi_reduction <add>, %343, %cst_104 [1] : vector<18x32xf32> to vector<18xf32>
    %345 = vector.shape_cast %344 : vector<18xf32> to vector<18x1xf32>
    %cst_105 = arith.constant 3.200000e+01 : f32
    %346 = vector.broadcast %cst_105 : f32 to vector<18x1xf32>
    %347 = arith.divf %345, %346 : vector<18x1xf32>
    %348 = vector.broadcast %340 : vector<18x1xf32> to vector<18x32xf32>
    %349 = arith.subf %329, %348 : vector<18x32xf32>
    %cst_106 = arith.constant 9.99999974E-6 : f32
    %350 = vector.broadcast %cst_106 : f32 to vector<18x1xf32>
    %351 = arith.addf %347, %350 : vector<18x1xf32>
    %352 = math.rsqrt %351 : vector<18x1xf32>
    %353 = vector.broadcast %352 : vector<18x1xf32> to vector<18x32xf32>
    %354 = arith.mulf %349, %353 : vector<18x32xf32>
    %355 = vector.broadcast %333 : vector<1x32xf32> to vector<18x32xf32>
    %356 = arith.mulf %354, %355 : vector<18x32xf32>
    %357 = vector.broadcast %334 : vector<1x32xf32> to vector<18x32xf32>
    %358 = arith.addf %356, %357 : vector<18x32xf32>
    %359 = vector.broadcast %335 : vector<1x32xf32> to vector<18x32xf32>
    %360 = arith.mulf %358, %359 : vector<18x32xf32>
    %cst_107 = arith.constant dense<0.000000e+00> : vector<18xf32>
    %361 = vector.multi_reduction <add>, %360, %cst_107 [1] : vector<18x32xf32> to vector<18xf32>
    %362 = vector.shape_cast %361 : vector<18xf32> to vector<18x1xf32>
    %363 = vector.broadcast %336 : vector<1x1xf32> to vector<18x1xf32>
    %364 = arith.addf %362, %363 : vector<18x1xf32>
    %365 = arith.negf %364 : vector<18x1xf32>
    %366 = math.exp %365 : vector<18x1xf32>
    %cst_108 = arith.constant 1.000000e+00 : f32
    %367 = vector.broadcast %cst_108 : f32 to vector<18x1xf32>
    %368 = arith.addf %367, %366 : vector<18x1xf32>
    %369 = arith.divf %367, %368 : vector<18x1xf32>
    %c0_109 = arith.constant 0 : index
    %c0_110 = arith.constant 0 : index
    %370 = vector.load %arg5[%c0_109, %c0_110] : memref<18x1xf32, #tpu.memory_space<vmem>>, vector<18x1xf32>
    tpu.vector_store %arg5[%c0_109, %c0_110], %369 {strides = array<i32>} : memref<18x1xf32, #tpu.memory_space<vmem>>, vector<18x1xf32>,
    return
  }
}

</mosaic_0001>

<bundles_post_ra>
// kernel: tile.9
= control target key start
LH: loop header
LB: loop body
LE: loop exit
PB: predicated region body
PF: predicated region fallthrough
CT: control target
= control target key end

     0   :  { %vm3_vm0 = vcmask 261120   ;;  %s6_s6 = smov 3  ;;  %s48_s0 = inlined_call_operand.vmem [shape: f32[2,1,1,9,32], index: 0, kind: input, shape index: {}]   ;;  %s49_s1 = inlined_call_operand.vmem [shape: f32[18,32], index: 1, kind: output, shape index: {}]  }
   0x1   :  { %v2_v0 = vld [vmem:[%s48_s0] sm:$0xff]   ;;  %v18_v2 = vld [vmem:[%s48_s0 + $0x11] sm:$0xff]  }
   0x2   :  { %v16_v1 = vld [vmem:[%s48_s0 + $0x8] ss:$8 sm:%s6_s6]   ;;  %4 = vst.msk [vmem:[%s49_s1] sm:$0xff] %vm3_vm0, %v2_v0   ;;  %19 = vst.msk [vmem:[%s49_s1 + $0xa] sm:$0xff] %vm3_vm0, %v18_v2  }
   0x3   :  { %17 = vst.msk [vmem:[%s49_s1 + $0x8] sm:$0x3] %vm3_vm0, %v16_v1  }

// kernel: my_vit_forward.1
= control target key start
LH: loop header
LB: loop body
LE: loop exit
PB: predicated region body
PF: predicated region fallthrough
CT: control target
= control target key end

     0   :  { %v4600_v0 = vmov 0.0|0.0   ;;  %vm4601_vm0 = vmmov 0   ;;  %v4602_v4 = vmov 0.0   ;;  %vm150_vm1 = vcmask 261120   ;;  %s4603_s27 = smov 112   ;;  %s4604_s28 = smov 120   ;;  %s5838_s1 = inlined_call_operand.vmem [shape: f32[146,32], index: 1, kind: input, shape index: {}]   ;;  %s5839_s0 = inlined_call_operand.vmem [shape: f32[18,128], index: 0, kind: input, shape index: {}]   ;;  %s5840_s2 = inlined_call_operand.vmem [shape: f32[64,192], index: 2, kind: input, shape index: {}]   ;;  %s5841_s4 = inlined_call_operand.vmem [shape: f32[36,64], index: 4, kind: input, shape index: {}]   ;;  %s5842_s3 = inlined_call_operand.vmem [shape: f32[128,32], index: 3, kind: input, shape index: {}]   ;;  %s5843_s6 = inlined_call_operand.vmem [shape: f32[2,18,32], index: 6, kind: output, shape index: {1}]   ;;  %s5844_s5 = inlined_call_operand.vmem [shape: f32[18,1], index: 5, kind: output, shape index: {0}]  }
   0x1   :  { %4179 = vmatprep.subr.bf16.mxu0 %v4600_v0  ;;  %v22_v1 = vld [vmem:[%s5838_s1] sm:$0xff]  ;;  %v23_v2 = vld [vmem:[%s5838_s1 + $0x8] sm:$0xff]  ;;  %v24_v3 = vld [vmem:[%s5838_s1 + $0x10] sm:$0xff]  ;;  %3778 = vmatprep.mubr.msk.f32.mxu0 %vm4601_vm0, %v4602_v4  ;;  %vm157_vm2 = vcmask 254976   ;;  %s4605_s29 = smov 104   ;;  %s4606_s30 = smov 96  }
   0x2   :  { %v4180_v5 = vpack.c.bf16 %v23_v2, %v22_v1  ;;  %v25_v6 = vld [vmem:[%s5838_s1 + $0x18] sm:$0xff]  ;;  %4203 = vmatprep.subr.bf16.mxu1 %v4600_v0  ;;  %3795 = vmatprep.mubr.msk.f32.mxu1 %vm4601_vm0, %v4602_v4  ;;  %v26_v8 = vld [vmem:[%s5838_s1 + $0x20] sm:$0xff]  ;;  %v27_v9 = vld [vmem:[%s5838_s1 + $0x28] sm:$0xff]  ;;  %vm322_vm3 = vcmask 64512   ;;  %s4607_s7 = smov 64   ;;  %vm709_vm5 = vcmask 146432  }
   0x3   :  { %v4183_v7 = vpack.c.bf16 %v25_v6, %v24_v3  ;;  %v4186_v10 = vpack.c.bf16 %v27_v9, %v26_v8  ;;  %v28_v11 = vld [vmem:[%s5838_s1 + $0x30] sm:$0xff]  ;;  %v29_v12 = vld [vmem:[%s5838_s1 + $0x38] sm:$0xff]  ;;  %v30_v14 = vld [vmem:[%s5838_s1 + $0x40] sm:$0xff]  ;;  %vm716_vm6 = vcmask 140288   ;;  %vm860_vm7 = vcmask 1041408   ;;  %s4608_s14 = smov 32  }
   0x4   :  { %4181 = vmatpush3.bf16.msra.mxu0 %v4180_v5  ;;  %v4189_v13 = vpack.c.bf16 %v29_v12, %v28_v11  ;;  %v31_v15 = vld [vmem:[%s5838_s1 + $0x48] sm:$0xff]  ;;  %v32_v17 = vld [vmem:[%s5838_s1 + $0x50] sm:$0xff]  ;;  %v33_v18 = vld [vmem:[%s5838_s1 + $0x58] sm:$0xff]  ;;  %s4610_s15 = smov 24   ;;  %vm1279_vm8 = vcmask 130048   ;;  %vm1283_vm9 = vcmask 195584  }
   0x5   :  { %4182 = vmatprep.subr.bf16.mxu0 %v4600_v0  ;;  %v4192_v16 = vpack.c.bf16 %v31_v15, %v30_v14  ;;  %v4195_v19 = vpack.c.bf16 %v33_v18, %v32_v17  ;;  %v34_v20 = vld [vmem:[%s5838_s1 + $0x60] sm:$0xff]  ;;  %v35_v21 = vld [vmem:[%s5838_s1 + $0x68] sm:$0xff]  ;;  %v36_v23 = vld [vmem:[%s5838_s1 + $0x70] sm:$0xff]  ;;  %vm1629_vm11 = vcmask 523264  }
   0x6   :  { %v4198_v22 = vpack.c.bf16 %v35_v21, %v34_v20  ;;  %v37_v24 = vld [vmem:[%s5838_s1 + $0x78] sm:$0xff]  ;;  %v41_v26 = vld [vmem:[%s5839_s0] sm:$0xff]  ;;  %v42_v27 = vld [vmem:[%s5839_s0 + $0x8] sm:$0xff] }
   0x7   :  { %v4201_v25 = vpack.c.bf16 %v37_v24, %v36_v23  ;;  %v43_v28 = vld [vmem:[%s5839_s0 + $0x10] sm:$0x3]  ;;  %v38_v29 = vld [vmem:[%s5838_s1 + $0x80] sm:$0xff]  ;;  %v39_v33 = vld [vmem:[%s5838_s1 + $0x88] sm:$0xff]  ;;  %s4609_s0 = smov 8  }
   0x8   :  { %4184 = vmatpush3.bf16.msra.mxu0 %v4183_v7  ;;  %v40_v38 = vld [vmem:[%s5838_s1 + $0x90] sm:$0x3]  ;;  %v4754_v59 = vld [vmem:[%s5840_s2] sm:$0xff]  ;;  %v3439_v14 = vld [vmem:[%s5841_s4 + $0x12] ss:$0 sm:$0xff]  ;;  %s4611_s1 = smov 16  }
   0x9   :  { %4185 = vmatprep.subr.bf16.mxu0 %v4600_v0  ;;  %v4759_v60 = vld [vmem:[%s5840_s2 + $0x10] sm:$0xff]  ;;  %v4768_v63 = vld [vmem:[%s5840_s2 + $0x20] sm:$0xff]  ;;  %vm4849_vm4 = vmpackc.low %vm322_vm3, %vm322_vm3 }
   0xa   :  { %v4375_v61 = vpack.i.bf16 %v4759_v60, %v4754_v59  ;;  %v4204_v62 = vpack.c.bf16 %v4759_v60, %v4754_v59  ;;  %v4773_v1 = vld [vmem:[%s5840_s2 + $0x30] sm:$0xff] }
   0xb   :  { %v4207_v2 = vpack.c.bf16 %v4773_v1, %v4768_v63 }
   0xc   :  { %4187 = vmatpush3.bf16.msra.mxu0 %v4186_v10  ;;  %4205 = vmatpush3.bf16.msra.mxu1 %v4204_v62 }
   0xd   :  { %4188 = vmatprep.subr.bf16.mxu0 %v4600_v0  ;;  %4206 = vmatprep.subr.bf16.mxu1 %v4600_v0 }
  0x10   :  { %4190 = vmatpush3.bf16.msra.mxu0 %v4189_v13  ;;  %4208 = vmatpush3.bf16.msra.mxu1 %v4207_v2 }
  0x11   :  { %4191 = vmatprep.subr.bf16.mxu0 %v4600_v0  ;;  %4209 = vmatprep.subr.bf16.mxu1 %v4600_v0 }
  0x14   :  { %4193 = vmatpush3.bf16.msra.mxu0 %v4192_v16  ;;  %v3440_v16 = vld [vmem:[%s5841_s4 + $0x13] ss:$0 sm:$0xff] }
  0x15   :  { %4194 = vmatprep.subr.bf16.mxu0 %v4600_v0 }
  0x18   :  { %4196 = vmatpush3.bf16.msra.mxu0 %v4195_v19 }
  0x19   :  { %4197 = vmatprep.subr.bf16.mxu0 %v4600_v0 }
  0x1c   :  { %4199 = vmatpush3.bf16.msra.mxu0 %v4198_v22 }
  0x1d   :  { %4200 = vmatprep.subr.bf16.mxu0 %v4600_v0 }
  0x20   :  { %4202 = vmatpush3.bf16.msra.mxu0 %v4201_v25 }
  0x21   :  { %4217 = vmatprep.subr.bf16.mxu0 %v4600_v0 }
  0x23   :  { %3779 = vmatmul.mubr.f32.vlgmr.msra.gmra.mrb[0].mxu0 %v41_v26 }
  0x24   :  { %3781 = vmatprep.mubr.msk.f32.mxu0 %vm4601_vm0, %v4602_v4 }
  0x27   :  { %3782 = vmatmul.mubr.f32.gmra.mrb[2].mxu0 %v42_v27 }
  0x28   :  { %3784 = vmatprep.mubr.msk.f32.mxu0 %vm4601_vm0, %v4602_v4 }
  0x2b   :  { %3785 = vmatmul.mubr.f32.gmra.mrb[4].mxu0 %v43_v28 }
  0x2c   :  { %3840 = vmatprep.mubr.msk.f32.mxu0 %vm4601_vm0, %v4602_v4 }
  0xf6   :  { %v110_v30 = vpop.f32.mrb[0].mxu0 }
  0xf7   :  { %v4727_v31 = vadd.f32 %v110_v30, %v38_v29  ;;  %v3780_v32 = vpop.f32.mrb[1].mxu0 }
  0xf9   :  { %v151_v34 = vsel %vm150_vm1, %v4727_v31, 0.0 }
  0xfa   :  { %152 = vadd.xlane.f32.xlu0 %v151_v34  ;;  %v115_v35 = vpop.f32.mrb[2].mxu0 }
  0xfb   :  { %v4734_v36 = vadd.f32 %v115_v35, %v39_v33  ;;  %v3783_v37 = vpop.f32.mrb[3].mxu0 }
  0xfd   :  { %v154_v39 = vsel %vm150_vm1, %v4734_v36, 0.0 }
  0xfe   :  { %155 = vadd.xlane.f32.xlu0 %v154_v39  ;;  %v120_v40 = vpop.f32.mrb[4].mxu0 }
  0xff   :  { %v4741_v41 = vadd.f32 %v120_v40, %v40_v38  ;;  %v3786_v42 = vpop.f32.mrb[5].mxu0 }
 0x101   :  { %v158_v43 = vsel %vm157_vm2, %v4741_v41, 0.0 }
 0x102   :  { %159 = vadd.xlane.f32.xlu1 %v158_v43 }
 0x187   :  { %v153_v44 = vpop.xlane.xlu0 %152 }
 0x188   :  { %v162_v45 = vmul.f32 0.03125, %v153_v44 }
 0x18a   :  { %v165_v46 = vsub.f32 %v4727_v31, %v162_v45 }
 0x18b   :  { %v156_v47 = vpop.xlane.xlu0 %155 }
 0x18c   :  { %v163_v48 = vmul.f32 0.03125, %v156_v47  ;;  %v168_v49 = vmul.f32 %v165_v46, %v165_v46 }
 0x18e   :  { %v166_v50 = vsub.f32 %v4734_v36, %v163_v48  ;;  %v171_v51 = vsel %vm150_vm1, %v168_v49, 0.0 }
 0x18f   :  { %172 = vadd.xlane.f32.xlu1 %v171_v51  ;;  %v160_v52 = vpop.xlane.xlu1 %159 }
 0x190   :  { %v164_v53 = vmul.f32 0.03125, %v160_v52  ;;  %v169_v54 = vmul.f32 %v166_v50, %v166_v50 }
 0x192   :  { %v167_v55 = vsub.f32 %v4741_v41, %v164_v53  ;;  %v174_v56 = vsel %vm150_vm1, %v169_v54, 0.0 }
 0x193   :  { %175 = vadd.xlane.f32.xlu0 %v174_v56 }
 0x194   :  { %v170_v57 = vmul.f32 %v167_v55, %v167_v55 }
 0x196   :  { %v177_v58 = vsel %vm157_vm2, %v170_v57, 0.0 }
 0x197   :  { %178 = vadd.xlane.f32.xlu1 %v177_v58 }
 0x21c   :  { %v173_v3 = vpop.xlane.xlu1 %172 }
 0x21d   :  { %v180_v5 = vmul.f32 0.03125, %v173_v3 }
 0x21f   :  { %v183_v6 = vadd.f32 1e-05, %v180_v5 }
 0x220   :  { %v176_v7 = vpop.xlane.xlu0 %175 }
 0x221   :  { %4435 = vrsqrt.f32 %v183_v6  ;;  %v181_v8 = vmul.f32 0.03125, %v176_v7 }
 0x223   :  { %v184_v9 = vadd.f32 1e-05, %v181_v8 }
 0x224   :  { %v179_v10 = vpop.xlane.xlu1 %178 }
 0x225   :  { %4437 = vrsqrt.f32 %v184_v9  ;;  %v182_v11 = vmul.f32 0.03125, %v179_v10 }
 0x227   :  { %v185_v12 = vadd.f32 1e-05, %v182_v11 }
 0x229   :  { %4439 = vrsqrt.f32 %v185_v12 }
 0x22b   :  { %v4436_v13 = vpop.eup %4435 }
 0x22c   :  { %v189_v15 = vmul.f32 %v4436_v13, %v165_v46 }
 0x22e   :  { %v196_v17 = vmul.f32 %v3439_v14, %v189_v15 }
 0x22f   :  { %v4438_v18 = vpop.eup %4437 }
 0x230   :  { %v203_v19 = vadd.f32 %v3440_v16, %v196_v17  ;;  %v190_v20 = vmul.f32 %v4438_v18, %v166_v50 }
 0x232   :  { %3796 = vmatmul.mubr.msk.f32.vlgmr.msra.gmra.mrb[0].mxu1 %vm150_vm1, %v203_v19  ;;  %v197_v21 = vmul.f32 %v3439_v14, %v190_v20 }
 0x233   :  { %v4440_v22 = vpop.eup %4439  ;;  %3798 = vmatprep.mubr.msk.f32.mxu1 %vm4601_vm0, %v4602_v4 }
 0x234   :  { %v204_v23 = vadd.f32 %v3440_v16, %v197_v21  ;;  %v191_v24 = vmul.f32 %v4440_v22, %v167_v55  ;;  %v124_v21 = vld [vmem:[%s5841_s4] sm:$0xff] }
 0x236   :  { %3799 = vmatmul.mubr.msk.f32.gmra.mrb[2].mxu1 %vm150_vm1, %v204_v23  ;;  %v198_v25 = vmul.f32 %v3439_v14, %v191_v24 }
 0x237   :  { %3801 = vmatprep.mubr.msk.f32.mxu1 %vm4601_vm0, %v4602_v4 }
 0x238   :  { %v205_v26 = vadd.f32 %v3440_v16, %v198_v25  ;;  %v125_v25 = vld [vmem:[%s5841_s4 + $0x8] sm:$0xff] }
 0x23a   :  { %3802 = vmatmul.mubr.msk.f32.gmra.mrb[4].mxu1 %vm150_vm1, %v205_v26 }
 0x23b   :  { %3810 = vmatprep.mubr.msk.f32.mxu1 %vm4601_vm0, %v4602_v4 }
 0x305   :  { %v281_v27 = vpop.f32.mrb[0].mxu1 }
 0x306   :  { %304 = vrot.lane.b32.xlu1 %v281_v27, %s4603_s27  ;;  %298 = vrot.lane.b32.xlu0 %v281_v27, %s4604_s28  ;;  %v3797_v28 = vpop.f32.mrb[1].mxu1 }
 0x309   :  { %v286_v29 = vpop.f32.mrb[2].mxu1 }
 0x30a   :  { %300 = vrot.lane.b32.xlu1 %v286_v29, %s4604_s28  ;;  %v3800_v30 = vpop.f32.mrb[3].mxu1  ;;  %v4335_v32 = vpack.i.bf16 %v286_v29, %v281_v27 }
 0x30b   :  { %v126_v30 = vld [vmem:[%s5841_s4 + $0x10] sm:$0x3] }
 0x30d   :  { %v4797_v33 = vpop.f32.mrb[4].mxu1 }
 0x30e   :  { %306 = vrot.lane.b32.xlu1 %v286_v29, %s4603_s27  ;;  %302 = vrot.lane.b32.xlu0 %v4797_v33, %s4604_s28  ;;  %v3803_v34 = vpop.f32.mrb[5].mxu1 }
 0x312   :  { %308 = vrot.lane.b32.xlu1 %v4797_v33, %s4603_s27  ;;  %310 = vrot.lane.b32.xlu0 %v281_v27, %s4605_s29 }
 0x316   :  { %312 = vrot.lane.b32.xlu1 %v286_v29, %s4605_s29  ;;  %314 = vrot.lane.b32.xlu0 %v4797_v33, %s4605_s29 }
 0x31a   :  { %4336 = vrot.lane.b32.xlu1 %v4335_v32, %s4606_s30  ;;  %320 = vrot.lane.b32.xlu0 %v4797_v33, %s4606_s30 }
 0x378   :  { %v4811_v35 = vpop.permute.xlu1 %304  ;;  %v299_v37 = vpop.permute.xlu0 %298 }
 0x37c   :  { %v4813_v38 = vpop.permute.xlu1 %300 }
 0x37d   :  { %v4340_v39 = vpack.i.bf16 %v4813_v38, %v299_v37 }
 0x37f   :  { %4341 = vrot.lane.b32.xlu1 %v4340_v39, %s4606_s30 }
 0x380   :  { %v4817_v40 = vpop.permute.xlu0 %302  ;;  %v4819_v42 = vpop.permute.xlu1 %306 }
 0x381   :  { %v4823_v43 = vpack.i.bf16 %v4819_v42, %v4811_v35 }
 0x383   :  { %419 = vrot.lane.b32.xlu1 %v4817_v40, %s4606_s30  ;;  %4346 = vrot.lane.b32.xlu0 %v4823_v43, %s4606_s30 }
 0x384   :  { %v4829_v44 = vpop.permute.xlu0 %310  ;;  %v4831_v45 = vpop.permute.xlu1 %308 }
 0x387   :  { %517 = vrot.lane.b32.xlu0 %v4831_v45, %s4606_s30 }
 0x388   :  { %v4835_v46 = vpop.permute.xlu1 %312  ;;  %v4841_v48 = vpop.permute.xlu0 %314 }
 0x389   :  { %v4839_v47 = vpack.i.bf16 %v4835_v46, %v4829_v44 }
 0x38b   :  { %615 = vrot.lane.b32.xlu0 %v4841_v48, %s4606_s30  ;;  %4351 = vrot.lane.b32.xlu1 %v4839_v47, %s4606_s30 }
 0x38c   :  { %v4337_v49 = vpop.permute.xlu1 %4336  ;;  %v321_v54 = vpop.permute.xlu0 %320 }
 0x38d   :  { %v4339_v50 = vunpack.i.h.bf16 %v4337_v49  ;;  %v4338_v51 = vunpack.i.l.bf16 %v4337_v49 }
 0x38f   :  { %v4210_v53 = vpack.c.bf16 %v4339_v50, %v4338_v51  ;;  %4361 = vrot.lane.b32.xlu0 %v4340_v39, %s4607_s7  ;;  %4356 = vrot.lane.b32.xlu1 %v4335_v32, %s4607_s7 }
 0x391   :  { %4212 = vmatpush3.bf16.xpose.msk.msra.mxu1 %vm4849_vm4, %v4210_v53 }
 0x392   :  { %3808 = vmatprep.subr.mxu1 %v4602_v4 }
 0x399   :  { %3809 = vmatpush3.xpose.msk.msra.mxu1 %vm322_vm3, %v321_v54 }
 0x39a   :  { %4213 = vmatprep.subr.bf16.mxu1 %v4600_v0 }
 0x39c   :  { %3811 = vmatmul.mubr.msk.f32.vlgmr.msra.gmra.mrb[6].mxu1 %vm322_vm3, %v281_v27 }
 0x39d   :  { %3813 = vmatprep.mubr.msk.f32.mxu1 %vm4601_vm0, %v4602_v4 }
 0x3a0   :  { %3814 = vmatmul.mubr.msk.f32.gmra.mrb[8].mxu1 %vm322_vm3, %v286_v29 }
 0x3a1   :  { %3816 = vmatprep.mubr.msk.f32.mxu1 %vm4601_vm0, %v4602_v4 }
 0x3a4   :  { %3817 = vmatmul.mubr.msk.f32.gmra.mrb[10].mxu1 %vm322_vm3, %v4797_v33 }
 0x3a5   :  { %3825 = vmatprep.mubr.msk.f32.mxu1 %vm4601_vm0, %v4602_v4 }
 0x3f1   :  { %v4342_v55 = vpop.permute.xlu1 %4341 }
 0x3f2   :  { %v4344_v56 = vunpack.i.h.bf16 %v4342_v55  ;;  %v4343_v57 = vunpack.i.l.bf16 %v4342_v55 }
 0x3f4   :  { %v4214_v58 = vpack.c.bf16 %v4344_v56, %v4343_v57 }
 0x3f5   :  { %v4347_v62 = vpop.permute.xlu0 %4346  ;;  %v420_v6 = vpop.permute.xlu1 %419 }
 0x3f6   :  { %v4349_v2 = vunpack.i.h.bf16 %v4347_v62  ;;  %v4348_v3 = vunpack.i.l.bf16 %v4347_v62  ;;  %4216 = vmatpush3.bf16.xpose.msk.msra.mxu1 %vm4849_vm4, %v4214_v58 }
 0x3f7   :  { %3823 = vmatprep.subr.mxu1 %v4602_v4 }
 0x3f8   :  { %v4218_v5 = vpack.c.bf16 %v4349_v2, %v4348_v3 }
 0x3f9   :  { %v518_v7 = vpop.permute.xlu0 %517 }
 0x3fa   :  { %4220 = vmatpush3.bf16.xpose.msk.msra.mxu0 %vm4849_vm4, %v4218_v5 }
 0x3fb   :  { %3838 = vmatprep.subr.mxu0 %v4602_v4 }
 0x3fd   :  { %v4352_v8 = vpop.permute.xlu1 %4351  ;;  %v616_v11 = vpop.permute.xlu0 %615 }
 0x3fe   :  { %v4354_v9 = vunpack.i.h.bf16 %v4352_v8  ;;  %v4353_v10 = vunpack.i.l.bf16 %v4352_v8  ;;  %3824 = vmatpush3.xpose.msk.msra.mxu1 %vm322_vm3, %v420_v6 }
 0x3ff   :  { %4319 = vmatprep.subr.bf16.mxu1 %v4600_v0 }
 0x400   :  { %v4222_v12 = vpack.c.bf16 %v4354_v9, %v4353_v10 }
 0x401   :  { %3826 = vmatmul.mubr.msk.f32.vlgmr.msra.gmra.mrb[12].mxu1 %vm322_vm3, %v299_v37  ;;  %v4362_v13 = vpop.permute.xlu0 %4361  ;;  %v4357_v16 = vpop.permute.xlu1 %4356 }
 0x402   :  { %3839 = vmatpush3.xpose.msk.msra.mxu0 %vm322_vm3, %v518_v7  ;;  %4321 = vmatpush3.bf16.xpose.msk.msra.mxu1 %vm4849_vm4, %v4222_v12  ;;  %v4364_v14 = vunpack.i.h.bf16 %v4362_v13  ;;  %v4363_v15 = vunpack.i.l.bf16 %v4362_v13  ;;  %v4359_v18 = vunpack.i.h.bf16 %v4357_v16  ;;  %v4358_v19 = vunpack.i.l.bf16 %v4357_v16 }
 0x403   :  { %3828 = vmatprep.mubr.msk.f32.mxu1 %vm4601_vm0, %v4602_v4  ;;  %4221 = vmatprep.subr.bf16.mxu0 %v4600_v0 }
 0x404   :  { %4320 = vmatprep.subr.mxu1 %v4602_v4  ;;  %v4229_v17 = vpack.c.bf16 %v4364_v14, %v4363_v15  ;;  %v4226_v20 = vpack.c.bf16 %v4359_v18, %v4358_v19 }
 0x405   :  { %3829 = vmatmul.mubr.msk.f32.gmra.mrb[14].mxu1 %vm322_vm3, %v4813_v38  ;;  %3841 = vmatmul.mubr.msk.f32.vlgmr.msra.gmra.mrb[6].mxu0 %vm322_vm3, %v4811_v35 }
 0x406   :  { %4224 = vmatpush3.bf16.xpose.msk.msra.mxu0 %vm4849_vm4, %v4222_v12  ;;  %3831 = vmatprep.mubr.msk.f32.mxu1 %vm4601_vm0, %v4602_v4 }
 0x407   :  { %3843 = vmatprep.mubr.msk.f32.mxu0 %vm4601_vm0, %v4602_v4  ;;  %3853 = vmatprep.subr.mxu0 %v4602_v4 }
 0x409   :  { %3832 = vmatmul.mubr.msk.f32.gmra.mrb[16].mxu1 %vm322_vm3, %v4817_v40  ;;  %3844 = vmatmul.mubr.msk.f32.gmra.mrb[8].mxu0 %vm322_vm3, %v4819_v42 }
 0x40a   :  { %4322 = vmatpush3.xpose.msk.msra.mxu1 %vm322_vm3, %v616_v11  ;;  %3846 = vmatprep.mubr.msk.f32.mxu0 %vm4601_vm0, %v4602_v4 }
 0x40b   :  { %3858 = vmatprep.mubr.msk.f32.mxu1 %vm4601_vm0, %v4602_v4  ;;  %4228 = vmatprep.subr.bf16.mxu1 %v4600_v0 }
 0x40d   :  { %3847 = vmatmul.mubr.msk.f32.gmra.mrb[10].mxu0 %vm322_vm3, %v4831_v45  ;;  %3859 = vmatmul.mubr.msk.f32.vlgmr.msra.gmra.mrb[18].mxu1 %vm322_vm3, %v4835_v46 }
 0x40e   :  { %3854 = vmatpush3.xpose.msk.msra.mxu0 %vm322_vm3, %v616_v11  ;;  %4230 = vmatpush3.bf16.msra.mxu1 %v4229_v17 }
 0x40f   :  { %3855 = vmatprep.mubr.msk.f32.mxu0 %vm4601_vm0, %v4602_v4  ;;  %3861 = vmatprep.mubr.msk.f32.mxu1 %vm4601_vm0, %v4602_v4 }
 0x410   :  { %4225 = vmatprep.subr.bf16.mxu0 %v4600_v0  ;;  %3883 = vmatprep.subr.mxu1 %v4602_v4 }
 0x411   :  { %3856 = vmatmul.mubr.msk.f32.vlgmr.msra.gmra.mrb[12].mxu0 %vm322_vm3, %v4829_v44  ;;  %3862 = vmatmul.mubr.msk.f32.gmra.mrb[20].mxu1 %vm322_vm3, %v4841_v48 }
 0x412   :  { %4227 = vmatpush3.bf16.msra.mxu0 %v4226_v20  ;;  %3870 = vmatprep.mubr.msk.f32.mxu0 %vm4601_vm0, %v4602_v4 }
 0x413   :  { %3868 = vmatprep.subr.mxu0 %v4602_v4  ;;  %3885 = vmatprep.mubr.msk.f32.mxu1 %vm4601_vm0, %v4602_v4 }
 0x46f   :  { %v401_v22 = vpop.f32.mrb[6].mxu1 }
 0x470   :  { %v4930_v23 = vadd.f32 %v401_v22, %v124_v21  ;;  %v3812_v24 = vpop.f32.mrb[7].mxu1 }
 0x472   :  { %v710_v26 = vsel %vm709_vm5, %v4930_v23, -inf }
 0x473   :  { %711 = vmax.xlane.f32.xlu1 %v710_v26  ;;  %v406_v27 = vpop.f32.mrb[8].mxu1 }
 0x474   :  { %v4937_v28 = vadd.f32 %v406_v27, %v125_v25  ;;  %v3815_v29 = vpop.f32.mrb[9].mxu1 }
 0x476   :  { %v713_v32 = vsel %vm709_vm5, %v4937_v28, -inf }
 0x477   :  { %714 = vmax.xlane.f32.xlu0 %v713_v32  ;;  %v411_v34 = vpop.f32.mrb[10].mxu1 }
 0x478   :  { %v412_v35 = vadd.f32 %v411_v34, %v126_v30  ;;  %v3818_v37 = vpop.f32.mrb[11].mxu1 }
 0x47a   :  { %v717_v38 = vsel %vm716_vm6, %v412_v35, -inf }
 0x47b   :  { %718 = vmax.xlane.f32.xlu1 %v717_v38 }
 0x4d4   :  { %v499_v39 = vpop.f32.mrb[12].mxu1 }
 0x4d5   :  { %v4945_v42 = vadd.f32 %v499_v39, %v124_v21  ;;  %v3827_v44 = vpop.f32.mrb[13].mxu1 }
 0x4d7   :  { %v720_v46 = vsel %vm709_vm5, %v4945_v42, -inf }
 0x4d8   :  { %721 = vmax.xlane.f32.xlu0 %v720_v46  ;;  %v504_v49 = vpop.f32.mrb[14].mxu1  ;;  %v597_v50 = vpop.f32.mrb[6].mxu0 }
 0x4d9   :  { %v4949_v51 = vadd.f32 %v504_v49, %v125_v25  ;;  %v4951_v53 = vadd.f32 %v597_v50, %v124_v21  ;;  %v3830_v54 = vpop.f32.mrb[15].mxu1  ;;  %v3842_v55 = vpop.f32.mrb[7].mxu0 }
 0x4db   :  { %v723_v56 = vsel %vm709_vm5, %v4949_v51, -inf  ;;  %v729_v57 = vsel %vm709_vm5, %v4951_v53, -inf }
 0x4dc   :  { %724 = vmax.xlane.f32.xlu0 %v723_v56  ;;  %v509_v58 = vpop.f32.mrb[16].mxu1  ;;  %730 = vmax.xlane.f32.xlu1 %v729_v57  ;;  %v602_v62 = vpop.f32.mrb[8].mxu0 }
 0x4dd   :  { %v4957_v2 = vadd.f32 %v509_v58, %v126_v30  ;;  %v4959_v3 = vadd.f32 %v602_v62, %v125_v25  ;;  %v3833_v5 = vpop.f32.mrb[17].mxu1  ;;  %v3845_v6 = vpop.f32.mrb[9].mxu0 }
 0x4df   :  { %v726_v7 = vsel %vm716_vm6, %v4957_v2, -inf  ;;  %v732_v8 = vsel %vm709_vm5, %v4959_v3, -inf }
 0x4e0   :  { %727 = vmax.xlane.f32.xlu0 %v726_v7  ;;  %v700_v9 = vpop.f32.mrb[18].mxu1  ;;  %733 = vmax.xlane.f32.xlu1 %v732_v8  ;;  %v607_v10 = vpop.f32.mrb[10].mxu0 }
 0x4e1   :  { %v4965_v11 = vadd.f32 %v607_v10, %v126_v30  ;;  %v3848_v12 = vpop.f32.mrb[11].mxu0  ;;  %v3860_v13 = vpop.f32.mrb[19].mxu1  ;;  %v4971_v20 = vadd.f32 %v700_v9, %v125_v25 }
 0x4e3   :  { %v735_v14 = vsel %vm716_vm6, %v4965_v11, -inf  ;;  %v741_v26 = vsel %vm709_vm5, %v4971_v20, -inf }
 0x4e4   :  { %v705_v15 = vpop.f32.mrb[20].mxu1  ;;  %736 = vmax.xlane.f32.xlu1 %v735_v14  ;;  %v695_v16 = vpop.f32.mrb[12].mxu0 }
 0x4e5   :  { %v4969_v17 = vadd.f32 %v695_v16, %v124_v21  ;;  %v3857_v18 = vpop.f32.mrb[13].mxu0  ;;  %v3863_v19 = vpop.f32.mrb[21].mxu1  ;;  %v4975_v24 = vadd.f32 %v705_v15, %v126_v30 }
 0x4e7   :  { %v738_v22 = vsel %vm709_vm5, %v4969_v17, -inf  ;;  %v744_v27 = vsel %vm716_vm6, %v4975_v24, -inf }
 0x4e8   :  { %739 = vmax.xlane.f32.xlu0 %v738_v22 }
 0x4ec   :  { %742 = vmax.xlane.f32.xlu0 %v741_v26 }
 0x4f0   :  { %745 = vmax.xlane.f32.xlu0 %v744_v27 }
 0x4f5   :  { %947 = vrot.lane.b32.xlu1 %v4817_v40, %s4607_s7 }
 0x500   :  { %v712_v21 = vpop.xlane.xlu1 %711 }
 0x501   :  { %v747_v25 = vsub.f32 %v4930_v23, %v712_v21 }
 0x503   :  { %v759_v30 = vmul.f32 1.442695, %v747_v25 }
 0x504   :  { %v715_v29 = vpop.xlane.xlu0 %714 }
 0x505   :  { %v748_v32 = vsub.f32 %v4937_v28, %v715_v29  ;;  %4441 = vpow2.f32 %v759_v30 }
 0x506   :  { %847 = vrot.lane.b32.xlu0 %v4797_v33, %s4607_s7 }
 0x507   :  { %v761_v37 = vmul.f32 1.442695, %v748_v32 }
 0x508   :  { %v719_v34 = vpop.xlane.xlu1 %718 }
 0x509   :  { %v749_v38 = vsub.f32 %v412_v35, %v719_v34  ;;  %4443 = vpow2.f32 %v761_v37 }
 0x50b   :  { %v763_v39 = vmul.f32 1.442695, %v749_v38 }
 0x50d   :  { %4445 = vpow2.f32 %v763_v39 }
 0x50f   :  { %v4987_v44 = vpop.eup %4441 }
 0x510   :  { %v783_v40 = vsel %vm709_vm5, %v4987_v44, 0.0 }
 0x513   :  { %v4991_v23 = vpop.eup %4443 }
 0x514   :  { %v786_v33 = vsel %vm709_vm5, %v4991_v23, 0.0 }
 0x517   :  { %v4995_v46 = vpop.eup %4445 }
 0x518   :  { %v789_v28 = vsel %vm716_vm6, %v4995_v46, 0.0 }
 0x519   :  { %784 = vadd.xlane.f32.xlu1 %v783_v40 }
 0x51d   :  { %787 = vadd.xlane.f32.xlu1 %v786_v33 }
 0x521   :  { %790 = vadd.xlane.f32.xlu1 %v789_v28 }
 0x565   :  { %v722_v35 = vpop.xlane.xlu0 %721 }
 0x566   :  { %v750_v49 = vsub.f32 %v4945_v42, %v722_v35 }
 0x568   :  { %v765_v50 = vmul.f32 1.442695, %v750_v49 }
 0x569   :  { %v725_v54 = vpop.xlane.xlu0 %724  ;;  %v731_v55 = vpop.xlane.xlu1 %730 }
 0x56a   :  { %4447 = vpow2.f32 %v765_v50  ;;  %v751_v56 = vsub.f32 %v4949_v51, %v725_v54  ;;  %v753_v57 = vsub.f32 %v4951_v53, %v731_v55 }
 0x56c   :  { %v767_v58 = vmul.f32 1.442695, %v751_v56  ;;  %v771_v62 = vmul.f32 1.442695, %v753_v57 }
 0x56d   :  { %v728_v5 = vpop.xlane.xlu0 %727  ;;  %v734_v6 = vpop.xlane.xlu1 %733 }
 0x56e   :  { %4449 = vpow2.f32 %v767_v58  ;;  %v752_v7 = vsub.f32 %v4957_v2, %v728_v5  ;;  %v754_v8 = vsub.f32 %v4959_v3, %v734_v6 }
 0x56f   :  { %4451 = vpow2.f32 %v771_v62 }
 0x570   :  { %v769_v9 = vmul.f32 1.442695, %v752_v7  ;;  %v773_v42 = vmul.f32 1.442695, %v754_v8 }
 0x571   :  { %v737_v10 = vpop.xlane.xlu1 %736 }
 0x572   :  { %4453 = vpow2.f32 %v769_v9  ;;  %v755_v12 = vsub.f32 %v4965_v11, %v737_v10 }
 0x573   :  { %4455 = vpow2.f32 %v773_v42 }
 0x574   :  { %v5005_v51 = vpop.eup %4447  ;;  %v775_v53 = vmul.f32 1.442695, %v755_v12 }
 0x575   :  { %v948_v13 = vpop.permute.xlu1 %947  ;;  %v740_v14 = vpop.xlane.xlu0 %739  ;;  %v792_v15 = vsel %vm709_vm5, %v5005_v51, 0.0 }
 0x576   :  { %4457 = vpow2.f32 %v775_v53  ;;  %v756_v2 = vsub.f32 %v4969_v17, %v740_v14  ;;  %3884 = vmatpush3.msk.msra.mxu1 %vm860_vm7, %v948_v13  ;;  %793 = vadd.xlane.f32.xlu0 %v792_v15 }
 0x577   :  { %4234 = vmatprep.subr.bf16.mxu1 %v4600_v0 }
 0x578   :  { %v5012_v3 = vpop.eup %4449  ;;  %v777_v11 = vmul.f32 1.442695, %v756_v2 }
 0x579   :  { %v5014_v16 = vpop.eup %4451  ;;  %v743_v18 = vpop.xlane.xlu0 %742  ;;  %v795_v19 = vsel %vm709_vm5, %v5012_v3, 0.0 }
 0x57a   :  { %4459 = vpow2.f32 %v777_v11  ;;  %v757_v22 = vsub.f32 %v4971_v20, %v743_v18  ;;  %v801_v17 = vsel %vm709_vm5, %v5014_v16, 0.0  ;;  %796 = vadd.xlane.f32.xlu0 %v795_v19 }
 0x57b   :  { %802 = vadd.xlane.f32.xlu1 %v801_v17 }
 0x57c   :  { %v5021_v26 = vpop.eup %4453  ;;  %v779_v27 = vmul.f32 1.442695, %v757_v22 }
 0x57d   :  { %v5023_v21 = vpop.eup %4455  ;;  %v746_v25 = vpop.xlane.xlu0 %745  ;;  %v798_v29 = vsel %vm716_vm6, %v5021_v26, 0.0 }
 0x57e   :  { %4461 = vpow2.f32 %v779_v27  ;;  %v758_v30 = vsub.f32 %v4975_v24, %v746_v25  ;;  %v804_v20 = vsel %vm709_vm5, %v5023_v21, 0.0  ;;  %799 = vadd.xlane.f32.xlu0 %v798_v29 }
 0x57f   :  { %805 = vadd.xlane.f32.xlu1 %v804_v20 }
 0x580   :  { %v5030_v32 = vpop.eup %4457  ;;  %v781_v34 = vmul.f32 1.442695, %v758_v30 }
 0x581   :  { %v848_v37 = vpop.permute.xlu0 %847  ;;  %v807_v38 = vsel %vm716_vm6, %v5030_v32, 0.0 }
 0x582   :  { %4463 = vpow2.f32 %v781_v34  ;;  %3869 = vmatpush3.msk.msra.mxu0 %vm860_vm7, %v848_v37  ;;  %v4380_v37 = vpack.i.bf16 %v4773_v1, %v4768_v63 }
 0x583   :  { %808 = vadd.xlane.f32.xlu1 %v807_v38  ;;  %4231 = vmatprep.subr.bf16.mxu0 %v4600_v0 }
 0x584   :  { %v5036_v39 = vpop.eup %4459 }
 0x585   :  { %v810_v24 = vsel %vm709_vm5, %v5036_v39, 0.0 }
 0x586   :  { %811 = vadd.xlane.f32.xlu0 %v810_v24 }
 0x588   :  { %v5040_v40 = vpop.eup %4461 }
 0x589   :  { %v813_v33 = vsel %vm709_vm5, %v5040_v40, 0.0 }
 0x58a   :  { %814 = vadd.xlane.f32.xlu0 %v813_v33 }
 0x58c   :  { %v5044_v28 = vpop.eup %4463 }
 0x58d   :  { %v816_v35 = vsel %vm716_vm6, %v5044_v28, 0.0 }
 0x58e   :  { %817 = vadd.xlane.f32.xlu0 %v816_v35 }
 0x594   :  { %4371 = vrot.lane.b32.xlu1 %v4839_v47, %s4607_s7 }
 0x598   :  { %1046 = vrot.lane.b32.xlu1 %v4831_v45, %s4607_s7 }
 0x59c   :  { %1145 = vrot.lane.b32.xlu1 %v4841_v48, %s4607_s7 }
 0x5a0   :  { %4376 = vrot.lane.b32.xlu1 %v4375_v61, %s4608_s14 }
 0x5a4   :  { %4366 = vrot.lane.b32.xlu0 %v4823_v43, %s4607_s7 }
 0x5a6   :  { %v785_v49 = vpop.xlane.xlu1 %784 }
 0x5a7   :  { %4465 = vrcp.f32 %v785_v49 }
 0x5a8   :  { %4381 = vrot.lane.b32.xlu0 %v4380_v37, %s4608_s14 }
 0x5aa   :  { %v788_v50 = vpop.xlane.xlu1 %787 }
 0x5ab   :  { %4467 = vrcp.f32 %v788_v50 }
 0x5ae   :  { %v791_v54 = vpop.xlane.xlu1 %790 }
 0x5af   :  { %4469 = vrcp.f32 %v791_v54 }
 0x5b1   :  { %v4466_v55 = vpop.eup %4465 }
 0x5b2   :  { %v820_v56 = vmul.f32 %v4466_v55, %v4987_v44 }
 0x5b4   :  { %3871 = vmatmul.mubr.msk.f32.vlgmr.msra.gmra.mrb[14].mxu0 %vm709_vm5, %v820_v56 }
 0x5b5   :  { %v4468_v47 = vpop.eup %4467  ;;  %3873 = vmatprep.mubr.msk.f32.mxu0 %vm4601_vm0, %v4602_v4 }
 0x5b6   :  { %v822_v45 = vmul.f32 %v4468_v47, %v4991_v23 }
 0x5b8   :  { %3874 = vmatmul.mubr.msk.f32.gmra.mrb[16].mxu0 %vm709_vm5, %v822_v45 }
 0x5b9   :  { %v4470_v43 = vpop.eup %4469  ;;  %3876 = vmatprep.mubr.msk.f32.mxu0 %vm4601_vm0, %v4602_v4 }
 0x5ba   :  { %v824_v48 = vmul.f32 %v4470_v43, %v4995_v46 }
 0x5bc   :  { %3877 = vmatmul.mubr.msk.f32.gmra.mrb[18].mxu0 %vm709_vm5, %v824_v48 }
 0x5bd   :  { %3900 = vmatprep.mubr.msk.f32.mxu0 %vm4601_vm0, %v4602_v4 }
 0x603   :  { %v794_v44 = vpop.xlane.xlu0 %793 }
 0x604   :  { %4471 = vrcp.f32 %v794_v44 }
 0x607   :  { %v797_v57 = vpop.xlane.xlu0 %796 }
 0x608   :  { %v803_v58 = vpop.xlane.xlu1 %802  ;;  %4473 = vrcp.f32 %v797_v57 }
 0x60b   :  { %v800_v62 = vpop.xlane.xlu0 %799 }
 0x60c   :  { %v806_v23 = vpop.xlane.xlu1 %805  ;;  %4475 = vrcp.f32 %v800_v62 }
 0x60e   :  { %v4472_v5 = vpop.eup %4471 }
 0x60f   :  { %v826_v6 = vmul.f32 %v4472_v5, %v5005_v51 }
 0x610   :  { %v809_v7 = vpop.xlane.xlu1 %808 }
 0x611   :  { %3886 = vmatmul.mubr.msk.f32.vlgmr.msra.gmra.mrb[22].mxu1 %vm709_vm5, %v826_v6 }
 0x612   :  { %v4474_v46 = vpop.eup %4473  ;;  %3888 = vmatprep.mubr.msk.f32.mxu1 %vm4601_vm0, %v4602_v4 }
 0x613   :  { %v812_v8 = vpop.xlane.xlu0 %811  ;;  %v828_v9 = vmul.f32 %v4474_v46, %v5012_v3 }
 0x614   :  { %v4372_v42 = vpop.permute.xlu1 %4371  ;;  %4477 = vrcp.f32 %v812_v8 }
 0x615   :  { %v4374_v10 = vunpack.i.h.bf16 %v4372_v42  ;;  %v4373_v12 = vunpack.i.l.bf16 %v4372_v42  ;;  %3889 = vmatmul.mubr.msk.f32.gmra.mrb[24].mxu1 %vm709_vm5, %v828_v9 }
 0x616   :  { %v4476_v51 = vpop.eup %4475  ;;  %3891 = vmatprep.mubr.msk.f32.mxu1 %vm4601_vm0, %v4602_v4 }
 0x617   :  { %v4235_v53 = vpack.c.bf16 %v4374_v10, %v4373_v12  ;;  %v815_v59 = vpop.xlane.xlu0 %814  ;;  %v830_v60 = vmul.f32 %v4476_v51, %v5021_v26 }
 0x618   :  { %v1047_v61 = vpop.permute.xlu1 %1046  ;;  %4479 = vrcp.f32 %v815_v59 }
 0x619   :  { %4236 = vmatpush3.bf16.msra.mxu1 %v4235_v53  ;;  %4481 = vrcp.f32 %v803_v58 }
 0x61a   :  { %3892 = vmatmul.mubr.msk.f32.gmra.mrb[26].mxu1 %vm709_vm5, %v830_v60  ;;  %3913 = vmatprep.subr.mxu1 %v4602_v4 }
 0x61b   :  { %v818_v13 = vpop.xlane.xlu0 %817  ;;  %3915 = vmatprep.mubr.msk.f32.mxu1 %vm4601_vm0, %v4602_v4 }
 0x61c   :  { %v1146_v14 = vpop.permute.xlu1 %1145  ;;  %4483 = vrcp.f32 %v818_v13 }
 0x61d   :  { %3914 = vmatpush3.msk.msra.mxu1 %vm860_vm7, %v1146_v14  ;;  %4485 = vrcp.f32 %v806_v23 }
 0x61e   :  { %v4478_v15 = vpop.eup %4477  ;;  %4243 = vmatprep.subr.bf16.mxu1 %v4600_v0  ;;  %4487 = vrcp.f32 %v809_v7 }
 0x61f   :  { %v838_v2 = vmul.f32 %v4478_v15, %v5036_v39  ;;  %v4367_v3 = vpop.permute.xlu0 %4366 }
 0x620   :  { %v4369_v11 = vunpack.i.h.bf16 %v4367_v3  ;;  %v4368_v18 = vunpack.i.l.bf16 %v4367_v3  ;;  %v4377_v39 = vpop.permute.xlu1 %4376 }
 0x621   :  { %3916 = vmatmul.mubr.msk.f32.vlgmr.msra.gmra.mrb[28].mxu1 %vm709_vm5, %v838_v2  ;;  %v4379_v24 = vunpack.i.h.bf16 %v4377_v39 }
 0x622   :  { %v4480_v19 = vpop.eup %4479  ;;  %v4232_v22 = vpack.c.bf16 %v4369_v11, %v4368_v18  ;;  %3918 = vmatprep.mubr.msk.f32.mxu1 %vm4601_vm0, %v4602_v4 }
 0x623   :  { %v840_v17 = vmul.f32 %v4480_v19, %v5040_v40  ;;  %v4482_v26 = vpop.eup %4481  ;;  %v4378_v40 = vunpack.i.l.bf16 %v4377_v39  ;;  %v4382_v55 = vpop.permute.xlu0 %4381 }
 0x624   :  { %4233 = vmatpush3.bf16.msra.mxu0 %v4232_v22  ;;  %v832_v25 = vmul.f32 %v4482_v26, %v5014_v16  ;;  %v4384_v56 = vunpack.i.h.bf16 %v4382_v55  ;;  %v4383_v47 = vunpack.i.l.bf16 %v4382_v55 }
 0x625   :  { %3919 = vmatmul.mubr.msk.f32.gmra.mrb[30].mxu1 %vm709_vm5, %v840_v17  ;;  %3898 = vmatprep.subr.mxu0 %v4602_v4  ;;  %v4238_v35 = vpack.c.bf16 %v4379_v24, %v4378_v40 }
 0x626   :  { %v4484_v27 = vpop.eup %4483  ;;  %3921 = vmatprep.mubr.msk.f32.mxu1 %vm4601_vm0, %v4602_v4  ;;  %v4241_v45 = vpack.c.bf16 %v4384_v56, %v4383_v47 }
 0x627   :  { %v842_v29 = vmul.f32 %v4484_v27, %v5044_v28  ;;  %v4486_v30 = vpop.eup %4485  ;;  %v3487_v27 = vld [vmem:[%s5841_s4 + $0x14] ss:$0 sm:$0xff] }
 0x628   :  { %3899 = vmatpush3.msk.msra.mxu0 %vm860_vm7, %v1047_v61  ;;  %v834_v20 = vmul.f32 %v4486_v30, %v5023_v21  ;;  %v4488_v16 = vpop.eup %4487 }
 0x629   :  { %3901 = vmatmul.mubr.msk.f32.vlgmr.msra.gmra.mrb[20].mxu0 %vm709_vm5, %v832_v25  ;;  %3922 = vmatmul.mubr.msk.f32.gmra.mrb[32].mxu1 %vm709_vm5, %v842_v29  ;;  %v836_v34 = vmul.f32 %v4488_v16, %v5030_v32 }
 0x62a   :  { %3903 = vmatprep.mubr.msk.f32.mxu0 %vm4601_vm0, %v4602_v4  ;;  %4237 = vmatprep.subr.bf16.mxu0 %v4600_v0 }
 0x62b   :  { %3949 = vmatprep.mubr.msk.f32.mxu1 %vm4601_vm0, %v4602_v4  ;;  %4239 = vmatpush3.bf16.msra.mxu0 %v4238_v35 }
 0x62c   :  { %4240 = vmatprep.subr.bf16.mxu0 %v4600_v0 }
 0x62d   :  { %3904 = vmatmul.mubr.msk.f32.gmra.mrb[22].mxu0 %vm709_vm5, %v834_v20 }
 0x62e   :  { %3906 = vmatprep.mubr.msk.f32.mxu0 %vm4601_vm0, %v4602_v4 }
 0x62f   :  { %4242 = vmatpush3.bf16.msra.mxu0 %v4241_v45 }
 0x630   :  { %4249 = vmatprep.subr.bf16.mxu0 %v4600_v0 }
 0x631   :  { %3907 = vmatmul.mubr.msk.f32.gmra.mrb[24].mxu0 %vm709_vm5, %v836_v34 }
 0x632   :  { %3932 = vmatprep.mubr.msk.f32.mxu0 %vm4601_vm0, %v4602_v4 }
 0x687   :  { %v929_v21 = vpop.f32.mrb[14].mxu0 }
 0x688   :  { %v3872_v38 = vpop.f32.mrb[15].mxu0 }
 0x68b   :  { %v934_v33 = vpop.f32.mrb[16].mxu0 }
 0x68c   :  { %v3875_v28 = vpop.f32.mrb[17].mxu0 }
 0x68f   :  { %v939_v32 = vpop.f32.mrb[18].mxu0 }
 0x690   :  { %v3878_v49 = vpop.f32.mrb[19].mxu0 }
 0x6e4   :  { %v1028_v50 = vpop.f32.mrb[22].mxu1 }
 0x6e5   :  { %1243 = vrot.lane.b32.xlu1 %v1028_v50, %s4609_s0  ;;  %v3887_v63 = vpop.f32.mrb[23].mxu1 }
 0x6e8   :  { %v1033_v1 = vpop.f32.mrb[24].mxu1 }
 0x6e9   :  { %v3890_v54 = vpop.f32.mrb[25].mxu1 }
 0x6ed   :  { %v1038_v43 = vpop.f32.mrb[26].mxu1 }
 0x6ee   :  { %v3893_v48 = vpop.f32.mrb[27].mxu1 }
 0x6f4   :  { %v1226_v44 = vpop.f32.mrb[28].mxu1 }
 0x6f5   :  { %1267 = vrot.lane.b32.xlu1 %v1226_v44, %s4610_s15  ;;  %v3917_v57 = vpop.f32.mrb[29].mxu1  ;;  %v135_v44 = vld [vmem:[%s5840_s2 + $0x8] sm:$0xff] }
 0x6f6   :  { %v137_v57 = vld [vmem:[%s5840_s2 + $0x18] sm:$0xff] }
 0x6f8   :  { %v1231_v58 = vpop.f32.mrb[30].mxu1 }
 0x6f9   :  { %v3920_v62 = vpop.f32.mrb[31].mxu1 }
 0x6fa   :  { %v139_v62 = vld [vmem:[%s5840_s2 + $0x28] sm:$0xff] }
 0x6fc   :  { %v1127_v23 = vpop.f32.mrb[20].mxu0  ;;  %v1236_v5 = vpop.f32.mrb[32].mxu1 }
 0x6fd   :  { %v3923_v6 = vpop.f32.mrb[33].mxu1  ;;  %1255 = vrot.lane.b32.xlu0 %v1127_v23, %s4611_s1  ;;  %v3902_v7 = vpop.f32.mrb[21].mxu0  ;;  %v141_v23 = vld [vmem:[%s5840_s2 + $0x38] sm:$0xff] }
 0x700   :  { %v1132_v46 = vpop.f32.mrb[22].mxu0 }
 0x701   :  { %1245 = vrot.lane.b32.xlu0 %v1033_v1, %s4609_s0  ;;  %1257 = vrot.lane.b32.xlu1 %v1132_v46, %s4611_s1  ;;  %v3905_v8 = vpop.f32.mrb[23].mxu0 }
 0x704   :  { %v1137_v9 = vpop.f32.mrb[24].mxu0 }
 0x705   :  { %1269 = vrot.lane.b32.xlu0 %v1231_v58, %s4610_s15  ;;  %1247 = vrot.lane.b32.xlu1 %v1038_v43, %s4609_s0  ;;  %v3908_v42 = vpop.f32.mrb[25].mxu0  ;;  %v4244_v58 = vpack.c.bf16 %v137_v57, %v135_v44 }
 0x707   :  { %4245 = vmatpush3.bf16.msra.mxu1 %v4244_v58 }
 0x708   :  { %4246 = vmatprep.subr.bf16.mxu1 %v4600_v0 }
 0x709   :  { %1271 = vrot.lane.b32.xlu1 %v1236_v5, %s4610_s15  ;;  %1259 = vrot.lane.b32.xlu0 %v1137_v9, %s4611_s1  ;;  %v4247_v5 = vpack.c.bf16 %v141_v23, %v139_v62 }
 0x70b   :  { %4248 = vmatpush3.bf16.msra.mxu1 %v4247_v5 }
 0x70c   :  { %4261 = vmatprep.subr.bf16.mxu1 %v4600_v0 }
 0x757   :  { %v1244_v10 = vpop.permute.xlu1 %1243 }
 0x758   :  { %v1276_v12 = vsel %vm322_vm3, %v929_v21, %v1244_v10 }
 0x767   :  { %v1268_v51 = vpop.permute.xlu1 %1267 }
 0x76f   :  { %v1256_v53 = vpop.permute.xlu0 %1255 }
 0x770   :  { %v1280_v59 = vsel %vm1279_vm8, %v1276_v12, %v1256_v53  ;;  %v3488_v53 = vld [vmem:[%s5841_s4 + $0x15] ss:$0 sm:$0xff] }
 0x771   :  { %v1284_v60 = vsel %vm1283_vm9, %v1280_v59, %v1268_v51 }
 0x772   :  { %3933 = vmatmul.mubr.msk.f32.vlgmr.msra.gmra.mrb[26].mxu0 %vm150_vm1, %v1284_v60 }
 0x773   :  { %v1246_v61 = vpop.permute.xlu0 %1245  ;;  %v1258_v13 = vpop.permute.xlu1 %1257  ;;  %3935 = vmatprep.mubr.msk.f32.mxu0 %vm4601_vm0, %v4602_v4 }
 0x774   :  { %v1277_v14 = vsel %vm322_vm3, %v934_v33, %v1246_v61  ;;  %v3489_v61 = vld [vmem:[%s5841_s4 + $0x16] ss:$0 sm:$0xff] }
 0x775   :  { %v1281_v15 = vsel %vm1279_vm8, %v1277_v14, %v1258_v13 }
 0x777   :  { %v1270_v2 = vpop.permute.xlu0 %1269  ;;  %v1248_v3 = vpop.permute.xlu1 %1247 }
 0x778   :  { %v1285_v11 = vsel %vm1283_vm9, %v1281_v15, %v1270_v2  ;;  %v1278_v18 = vsel %vm322_vm3, %v939_v32, %v1248_v3 }
 0x779   :  { %3936 = vmatmul.mubr.msk.f32.gmra.mrb[28].mxu0 %vm150_vm1, %v1285_v11 }
 0x77a   :  { %3938 = vmatprep.mubr.msk.f32.mxu0 %vm4601_vm0, %v4602_v4 }
 0x77b   :  { %v1272_v19 = vpop.permute.xlu1 %1271  ;;  %v1260_v22 = vpop.permute.xlu0 %1259 }
 0x77c   :  { %v1282_v17 = vsel %vm1279_vm8, %v1278_v18, %v1260_v22 }
 0x77d   :  { %v1286_v26 = vsel %vm1283_vm9, %v1282_v17, %v1272_v19 }
 0x77e   :  { %3939 = vmatmul.mubr.msk.f32.gmra.mrb[30].mxu0 %vm150_vm1, %v1286_v26  ;;  %v142_v26 = vld [vmem:[%s5842_s3] sm:$0xff] }
 0x77f   :  { %3974 = vmatprep.mubr.msk.f32.mxu0 %vm4601_vm0, %v4602_v4 }
 0x845   :  { %v1378_v25 = vpop.f32.mrb[26].mxu0 }
 0x846   :  { %v1392_v29 = vadd.f32 %v1378_v25, %v4727_v31  ;;  %v3934_v30 = vpop.f32.mrb[27].mxu0 }
 0x847   :  { %v145_v30 = vld [vmem:[%s5842_s3 + $0x18] sm:$0xff] }
 0x848   :  { %v5150_v20 = vadd.f32 %v3487_v27, %v1392_v29  ;;  %v144_v29 = vld [vmem:[%s5842_s3 + $0x10] sm:$0xff] }
 0x84a   :  { %v1402_v16 = vsel %vm150_vm1, %v5150_v20, 0.0 }
 0x84b   :  { %1403 = vadd.xlane.f32.xlu0 %v1402_v16  ;;  %v4253_v16 = vpack.c.bf16 %v145_v30, %v144_v29 }
 0x84c   :  { %v1383_v34 = vpop.f32.mrb[28].mxu0 }
 0x84d   :  { %v1393_v37 = vadd.f32 %v1383_v34, %v4734_v36  ;;  %v3937_v21 = vpop.f32.mrb[29].mxu0  ;;  %v146_v34 = vld [vmem:[%s5842_s3 + $0x20] sm:$0xff] }
 0x84f   :  { %v5155_v38 = vadd.f32 %v3487_v27, %v1393_v37  ;;  %v147_v37 = vld [vmem:[%s5842_s3 + $0x28] sm:$0xff] }
 0x850   :  { %v4256_v21 = vpack.c.bf16 %v147_v37, %v146_v34 }
 0x851   :  { %v1388_v39 = vpop.f32.mrb[30].mxu0  ;;  %v1405_v24 = vsel %vm150_vm1, %v5155_v38, 0.0 }
 0x852   :  { %v1394_v40 = vadd.f32 %v1388_v39, %v4741_v41  ;;  %1406 = vadd.xlane.f32.xlu1 %v1405_v24  ;;  %v3940_v31 = vpop.f32.mrb[31].mxu0  ;;  %v148_v39 = vld [vmem:[%s5842_s3 + $0x30] sm:$0xff]  ;;  %v149_v24 = vld [vmem:[%s5842_s3 + $0x38] sm:$0xff] }
 0x853   :  { %v3490_v31 = vld [vmem:[%s5841_s4 + $0x17] ss:$0 sm:$0xff] }
 0x854   :  { %v5160_v33 = vadd.f32 %v3487_v27, %v1394_v40  ;;  %v143_v27 = vld [vmem:[%s5842_s3 + $0x8] sm:$0xff]  ;;  %v4259_v40 = vpack.c.bf16 %v149_v24, %v148_v39 }
 0x855   :  { %v4250_v25 = vpack.c.bf16 %v143_v27, %v142_v26 }
 0x856   :  { %v1408_v28 = vsel %vm157_vm2, %v5160_v33, 0.0 }
 0x857   :  { %1409 = vadd.xlane.f32.xlu0 %v1408_v28  ;;  %4251 = vmatpush3.bf16.msra.mxu0 %v4250_v25 }
 0x858   :  { %4252 = vmatprep.subr.bf16.mxu0 %v4600_v0 }
 0x85b   :  { %4254 = vmatpush3.bf16.msra.mxu0 %v4253_v16 }
 0x85c   :  { %4255 = vmatprep.subr.bf16.mxu0 %v4600_v0 }
 0x85f   :  { %4257 = vmatpush3.bf16.msra.mxu0 %v4256_v21 }
 0x860   :  { %4258 = vmatprep.subr.bf16.mxu0 %v4600_v0 }
 0x863   :  { %4260 = vmatpush3.bf16.msra.mxu0 %v4259_v40 }
 0x864   :  { %4271 = vmatprep.subr.bf16.mxu0 %v4600_v0 }
 0x8d8   :  { %v1404_v35 = vpop.xlane.xlu0 %1403 }
 0x8d9   :  { %v1411_v32 = vmul.f32 0.03125, %v1404_v35 }
 0x8db   :  { %v1414_v36 = vsub.f32 %v5150_v20, %v1411_v32 }
 0x8dd   :  { %v1417_v49 = vmul.f32 %v1414_v36, %v1414_v36 }
 0x8df   :  { %v1407_v50 = vpop.xlane.xlu1 %1406  ;;  %v1420_v63 = vsel %vm150_vm1, %v1417_v49, 0.0 }
 0x8e0   :  { %v1412_v1 = vmul.f32 0.03125, %v1407_v50  ;;  %1421 = vadd.xlane.f32.xlu0 %v1420_v63 }
 0x8e2   :  { %v1415_v41 = vsub.f32 %v5155_v38, %v1412_v1 }
 0x8e4   :  { %v1410_v54 = vpop.xlane.xlu0 %1409  ;;  %v1418_v55 = vmul.f32 %v1415_v41, %v1415_v41 }
 0x8e5   :  { %v1413_v56 = vmul.f32 0.03125, %v1410_v54 }
 0x8e6   :  { %v1423_v47 = vsel %vm150_vm1, %v1418_v55, 0.0 }
 0x8e7   :  { %v1416_v45 = vsub.f32 %v5160_v33, %v1413_v56  ;;  %1424 = vadd.xlane.f32.xlu0 %v1423_v47 }
 0x8e9   :  { %v1419_v43 = vmul.f32 %v1416_v45, %v1416_v45 }
 0x8eb   :  { %v1426_v48 = vsel %vm157_vm2, %v1419_v43, 0.0 }
 0x8ec   :  { %1427 = vadd.xlane.f32.xlu1 %v1426_v48 }
 0x96d   :  { %v1422_v6 = vpop.xlane.xlu0 %1421 }
 0x96e   :  { %v1429_v7 = vmul.f32 0.03125, %v1422_v6 }
 0x970   :  { %v1432_v46 = vadd.f32 1e-05, %v1429_v7 }
 0x972   :  { %4489 = vrsqrt.f32 %v1432_v46 }
 0x974   :  { %v1425_v8 = vpop.xlane.xlu0 %1424 }
 0x975   :  { %v1430_v9 = vmul.f32 0.03125, %v1425_v8 }
 0x977   :  { %v1433_v42 = vadd.f32 1e-05, %v1430_v9 }
 0x979   :  { %4491 = vrsqrt.f32 %v1433_v42  ;;  %v1428_v10 = vpop.xlane.xlu1 %1427 }
 0x97a   :  { %v1431_v12 = vmul.f32 0.03125, %v1428_v10 }
 0x97c   :  { %v4490_v51 = vpop.eup %4489  ;;  %v1434_v59 = vadd.f32 1e-05, %v1431_v12 }
 0x97d   :  { %v1438_v60 = vmul.f32 %v4490_v51, %v1414_v36 }
 0x97e   :  { %4493 = vrsqrt.f32 %v1434_v59 }
 0x97f   :  { %v1445_v13 = vmul.f32 %v3488_v53, %v1438_v60 }
 0x981   :  { %v1452_v14 = vadd.f32 %v3489_v61, %v1445_v13 }
 0x983   :  { %v4492_v15 = vpop.eup %4491  ;;  %3950 = vmatmul.mubr.msk.f32.vlgmr.msra.gmra.mrb[34].mxu1 %vm150_vm1, %v1452_v14 }
 0x984   :  { %3952 = vmatprep.mubr.msk.f32.mxu1 %vm4601_vm0, %v4602_v4  ;;  %v1439_v2 = vmul.f32 %v4492_v15, %v1415_v41 }
 0x986   :  { %v1446_v3 = vmul.f32 %v3488_v53, %v1439_v2 }
 0x988   :  { %v4494_v11 = vpop.eup %4493  ;;  %v1453_v18 = vadd.f32 %v3489_v61, %v1446_v3 }
 0x989   :  { %v1440_v19 = vmul.f32 %v4494_v11, %v1416_v45 }
 0x98a   :  { %3953 = vmatmul.mubr.msk.f32.gmra.mrb[36].mxu1 %vm150_vm1, %v1453_v18 }
 0x98b   :  { %3955 = vmatprep.mubr.msk.f32.mxu1 %vm4601_vm0, %v4602_v4  ;;  %v1447_v22 = vmul.f32 %v3488_v53, %v1440_v19 }
 0x98d   :  { %v1454_v17 = vadd.f32 %v3489_v61, %v1447_v22 }
 0x98f   :  { %3956 = vmatmul.mubr.msk.f32.gmra.mrb[38].mxu1 %vm150_vm1, %v1454_v17 }
 0x990   :  { %3991 = vmatprep.mubr.msk.f32.mxu1 %vm4601_vm0, %v4602_v4 }
 0xa56   :  { %v1534_v28 = vpop.f32.mrb[34].mxu1 }
 0xa57   :  { %v5230_v35 = vadd.f32 %v3490_v31, %v1534_v28  ;;  %v3951_v32 = vpop.f32.mrb[35].mxu1 }
 0xa59   :  { %v5233_v36 = vmul.f32 0.70710677, %v5230_v35 }
 0xa5b   :  { %v1554_v49 = vand.u32 2147483647, %v5233_v36  ;;  %vm1614_vm10 = vcmp.ge.f32.partialorder %v5233_v36, 0.0 }
 0xa5d   :  { %v1557_v50 = vmul.f32 0.3275911, %v1554_v49  ;;  %v1539_v63 = vpop.f32.mrb[36].mxu1  ;;  %v1596_v58 = vsub.f32 0.0, %v1554_v49 }
 0xa5e   :  { %v5236_v1 = vadd.f32 %v3490_v31, %v1539_v63  ;;  %v3954_v41 = vpop.f32.mrb[37].mxu1 }
 0xa5f   :  { %v1560_v54 = vadd.f32 1.0, %v1557_v50  ;;  %v1599_v6 = vmul.f32 %v1596_v58, %v1554_v49 }
 0xa60   :  { %v5239_v55 = vmul.f32 0.70710677, %v5236_v1 }
 0xa61   :  { %4495 = vrcp.f32 %v1560_v54  ;;  %v1602_v42 = vmul.f32 1.442695, %v1599_v6  ;;  %v1548_v54 = vmul.f32 0.5, %v5230_v35  ;;  %v1549_v35 = vmul.f32 0.5, %v5236_v1  ;;  %v3497_v1 = vld [vmem:[%s5841_s4 + $0x18] ss:$0 sm:$0xff] }
 0xa62   :  { %v1555_v56 = vand.u32 2147483647, %v5239_v55  ;;  %v1544_v47 = vpop.f32.mrb[38].mxu1  ;;  %vm1615_vm12 = vcmp.ge.f32.partialorder %v5239_v55, 0.0 }
 0xa63   :  { %v5242_v45 = vadd.f32 %v3490_v31, %v1544_v47  ;;  %v3957_v43 = vpop.f32.mrb[39].mxu1 }
 0xa64   :  { %v1558_v48 = vmul.f32 0.3275911, %v1555_v56  ;;  %v1597_v9 = vsub.f32 0.0, %v1555_v56 }
 0xa65   :  { %v5245_v44 = vmul.f32 0.70710677, %v5242_v45 }
 0xa66   :  { %v1561_v57 = vadd.f32 1.0, %v1558_v48  ;;  %v1600_v53 = vmul.f32 %v1597_v9, %v1555_v56 }
 0xa67   :  { %v1556_v62 = vand.u32 2147483647, %v5245_v44  ;;  %vm1616_vm13 = vcmp.ge.f32.partialorder %v5245_v44, 0.0 }
 0xa68   :  { %4497 = vrcp.f32 %v1561_v57  ;;  %v1604_v15 = vmul.f32 1.442695, %v1600_v53 }
 0xa69   :  { %v1559_v23 = vmul.f32 0.3275911, %v1556_v62  ;;  %v1598_v60 = vsub.f32 0.0, %v1556_v62 }
 0xa6b   :  { %v4496_v5 = vpop.eup %4495  ;;  %v1562_v7 = vadd.f32 1.0, %v1559_v23  ;;  %v1601_v11 = vmul.f32 %v1598_v60, %v1556_v62 }
 0xa6c   :  { %v1569_v46 = vmul.f32 1.0614054, %v4496_v5 }
 0xa6d   :  { %4499 = vrcp.f32 %v1562_v7  ;;  %v1606_v25 = vmul.f32 1.442695, %v1601_v11 }
 0xa6e   :  { %v1572_v8 = vadd.f32 -1.4531521, %v1569_v46  ;;  %4501 = vpow2.f32 %v1602_v42  ;;  %v1550_v42 = vmul.f32 0.5, %v5242_v45 }
 0xa6f   :  { %4503 = vpow2.f32 %v1604_v15 }
 0xa70   :  { %v1575_v10 = vmul.f32 %v4496_v5, %v1572_v8  ;;  %4505 = vpow2.f32 %v1606_v25 }
 0xa72   :  { %v4498_v12 = vpop.eup %4497  ;;  %v1578_v51 = vadd.f32 1.4214138, %v1575_v10 }
 0xa73   :  { %v1570_v59 = vmul.f32 1.0614054, %v4498_v12 }
 0xa74   :  { %v1581_v61 = vmul.f32 %v4496_v5, %v1578_v51 }
 0xa75   :  { %v1573_v13 = vadd.f32 -1.4531521, %v1570_v59 }
 0xa76   :  { %v1584_v14 = vadd.f32 -0.28449672, %v1581_v61 }
 0xa77   :  { %v4500_v2 = vpop.eup %4499  ;;  %v1576_v3 = vmul.f32 %v4498_v12, %v1573_v13 }
 0xa78   :  { %v1587_v18 = vmul.f32 %v4496_v5, %v1584_v14  ;;  %v1571_v19 = vmul.f32 1.0614054, %v4500_v2  ;;  %v4502_v16 = vpop.eup %4501 }
 0xa79   :  { %v1579_v22 = vadd.f32 1.4214138, %v1576_v3  ;;  %v4504_v50 = vpop.eup %4503 }
 0xa7a   :  { %v1590_v17 = vadd.f32 0.2548296, %v1587_v18  ;;  %v1574_v26 = vadd.f32 -1.4531521, %v1571_v19  ;;  %v4506_v62 = vpop.eup %4505 }
 0xa7b   :  { %v1582_v27 = vmul.f32 %v4498_v12, %v1579_v22 }
 0xa7c   :  { %v1593_v29 = vmul.f32 %v4496_v5, %v1590_v17  ;;  %v1577_v30 = vmul.f32 %v4500_v2, %v1574_v26 }
 0xa7d   :  { %v1585_v34 = vadd.f32 -0.28449672, %v1582_v27 }
 0xa7e   :  { %v1608_v37 = vmul.f32 %v4502_v16, %v1593_v29  ;;  %v1580_v21 = vadd.f32 1.4214138, %v1577_v30 }
 0xa7f   :  { %v1588_v39 = vmul.f32 %v4498_v12, %v1585_v34 }
 0xa80   :  { %v1611_v24 = vsub.f32 1.0, %v1608_v37  ;;  %v1583_v40 = vmul.f32 %v4500_v2, %v1580_v21 }
 0xa81   :  { %v1591_v31 = vadd.f32 0.2548296, %v1588_v39  ;;  %v5305_v39 = vld [vmem:[%s5840_s2 + $0x40] sm:$0xff] }
 0xa82   :  { %v1617_v28 = vsub.f32 0.0, %v1611_v24  ;;  %v1586_v32 = vadd.f32 -0.28449672, %v1583_v40 }
 0xa83   :  { %v1594_v49 = vmul.f32 %v4498_v12, %v1591_v31  ;;  %v5318_v31 = vld [vmem:[%s5840_s2 + $0x60] sm:$0xff] }
 0xa84   :  { %v1620_v63 = vsel %vm1614_vm10, %v1611_v24, %v1617_v28  ;;  %v1589_v41 = vmul.f32 %v4500_v2, %v1586_v32  ;;  %v5310_v24 = vld [vmem:[%s5840_s2 + $0x50] sm:$0xff] }
 0xa85   :  { %v1623_v56 = vadd.f32 1.0, %v1620_v63  ;;  %v1609_v47 = vmul.f32 %v4504_v50, %v1594_v49  ;;  %v4262_v40 = vpack.c.bf16 %v5310_v24, %v5305_v39  ;;  %v5323_v28 = vld [vmem:[%s5840_s2 + $0x70] sm:$0xff] }
 0xa86   :  { %v1592_v43 = vadd.f32 0.2548296, %v1589_v41  ;;  %v4265_v32 = vpack.c.bf16 %v5323_v28, %v5318_v31 }
 0xa87   :  { %v1626_v48 = vmul.f32 %v1623_v56, %v1548_v54  ;;  %v1612_v57 = vsub.f32 1.0, %v1609_v47  ;;  %4263 = vmatpush3.bf16.msra.mxu1 %v4262_v40 }
 0xa88   :  { %v1595_v58 = vmul.f32 %v4500_v2, %v1592_v43  ;;  %4264 = vmatprep.subr.bf16.mxu1 %v4600_v0 }
 0xa89   :  { %v1618_v23 = vsub.f32 0.0, %v1612_v57  ;;  %3975 = vmatmul.mubr.msk.f32.vlgmr.msra.gmra.mrb[32].mxu0 %vm1629_vm11, %v1626_v48 }
 0xa8a   :  { %v1610_v36 = vmul.f32 %v4506_v62, %v1595_v58  ;;  %3977 = vmatprep.mubr.msk.f32.mxu0 %vm4601_vm0, %v4602_v4 }
 0xa8b   :  { %v1621_v5 = vsel %vm1615_vm12, %v1612_v57, %v1618_v23  ;;  %4266 = vmatpush3.bf16.msra.mxu1 %v4265_v32  ;;  %v3498_v57 = vld [vmem:[%s5841_s4 + $0x19] ss:$0 sm:$0xff]  ;;  %v3499_v23 = vld [vmem:[%s5841_s4 + $0x1a] ss:$0 sm:$0xff] }
 0xa8c   :  { %v1624_v6 = vadd.f32 1.0, %v1621_v5  ;;  %v1613_v7 = vsub.f32 1.0, %v1610_v36  ;;  %4267 = vmatprep.subr.bf16.mxu1 %v4600_v0 }
 0xa8e   :  { %v1627_v46 = vmul.f32 %v1624_v6, %v1549_v35  ;;  %v1619_v8 = vsub.f32 0.0, %v1613_v7 }
 0xa90   :  { %v1622_v9 = vsel %vm1616_vm13, %v1613_v7, %v1619_v8  ;;  %3978 = vmatmul.mubr.msk.f32.gmra.mrb[34].mxu0 %vm1629_vm11, %v1627_v46 }
 0xa91   :  { %v1625_v10 = vadd.f32 1.0, %v1622_v9  ;;  %3980 = vmatprep.mubr.msk.f32.mxu0 %vm4601_vm0, %v4602_v4 }
 0xa93   :  { %v1628_v55 = vmul.f32 %v1625_v10, %v1550_v42 }
 0xa95   :  { %3981 = vmatmul.mubr.msk.f32.gmra.mrb[36].mxu0 %vm1629_vm11, %v1628_v55 }
 0xa96   :  { %4021 = vmatprep.mubr.msk.f32.mxu0 %vm4601_vm0, %v4602_v4 }
 0xb5c   :  { %v1705_v44 = vpop.f32.mrb[32].mxu0 }
 0xb5d   :  { %v1719_v12 = vadd.f32 %v1705_v44, %v5150_v20  ;;  %v3976_v51 = vpop.f32.mrb[33].mxu0 }
 0xb5f   :  { %v5267_v53 = vadd.f32 %v3497_v1, %v1719_v12 }
 0xb61   :  { %1729 = vst.msk [vmem:[%s5843_s6] sm:$0xff] %vm150_vm1, %v5267_v53  ;;  %v1755_v45 = vsel %vm150_vm1, %v5267_v53, 0.0 }
 0xb62   :  { %1756 = vadd.xlane.f32.xlu0 %v1755_v45 }
 0xb63   :  { %v1710_v59 = vpop.f32.mrb[34].mxu0 }
 0xb64   :  { %v1720_v60 = vadd.f32 %v1710_v59, %v5155_v38  ;;  %v3979_v61 = vpop.f32.mrb[35].mxu0 }
 0xb66   :  { %v5277_v13 = vadd.f32 %v3497_v1, %v1720_v60 }
 0xb68   :  { %1730 = vst.msk [vmem:[%s5843_s6 + $0x8] sm:$0xff] %vm150_vm1, %v5277_v13  ;;  %v1715_v20 = vpop.f32.mrb[36].mxu0  ;;  %v1758_v14 = vsel %vm150_vm1, %v5277_v13, 0.0 }
 0xb69   :  { %v1721_v15 = vadd.f32 %v1715_v20, %v5160_v33  ;;  %1759 = vadd.xlane.f32.xlu1 %v1758_v14  ;;  %v3982_v2 = vpop.f32.mrb[37].mxu0 }
 0xb6b   :  { %v5287_v3 = vadd.f32 %v3497_v1, %v1721_v15 }
 0xb6d   :  { %1731 = vst.msk [vmem:[%s5843_s6 + $0x10] sm:$0x3] %vm157_vm2, %v5287_v3  ;;  %v1761_v38 = vsel %vm157_vm2, %v5287_v3, 0.0 }
 0xb6e   :  { %1762 = vadd.xlane.f32.xlu0 %v1761_v38 }
 0xbef   :  { %v1757_v11 = vpop.xlane.xlu0 %1756 }
 0xbf0   :  { %v1764_v18 = vmul.f32 0.03125, %v1757_v11 }
 0xbf2   :  { %v1767_v19 = vsub.f32 %v5267_v53, %v1764_v18 }
 0xbf4   :  { %v1770_v22 = vmul.f32 %v1767_v19, %v1767_v19 }
 0xbf6   :  { %v1760_v33 = vpop.xlane.xlu1 %1759  ;;  %v1773_v17 = vsel %vm150_vm1, %v1770_v22, 0.0 }
 0xbf7   :  { %v1765_v26 = vmul.f32 0.03125, %v1760_v33  ;;  %1774 = vadd.xlane.f32.xlu1 %v1773_v17 }
 0xbf9   :  { %v1768_v27 = vsub.f32 %v5277_v13, %v1765_v26 }
 0xbfb   :  { %v1763_v25 = vpop.xlane.xlu0 %1762  ;;  %v1771_v29 = vmul.f32 %v1768_v27, %v1768_v27 }
 0xbfc   :  { %v1766_v30 = vmul.f32 0.03125, %v1763_v25 }
 0xbfd   :  { %v1776_v16 = vsel %vm150_vm1, %v1771_v29, 0.0 }
 0xbfe   :  { %v1769_v34 = vsub.f32 %v5287_v3, %v1766_v30  ;;  %1777 = vadd.xlane.f32.xlu0 %v1776_v16 }
 0xc00   :  { %v1772_v37 = vmul.f32 %v1769_v34, %v1769_v34 }
 0xc02   :  { %v1779_v21 = vsel %vm157_vm2, %v1772_v37, 0.0 }
 0xc03   :  { %1780 = vadd.xlane.f32.xlu1 %v1779_v21 }
 0xc84   :  { %v1775_v49 = vpop.xlane.xlu1 %1774 }
 0xc85   :  { %v1782_v50 = vmul.f32 0.03125, %v1775_v49 }
 0xc87   :  { %v1785_v63 = vadd.f32 1e-05, %v1782_v50 }
 0xc89   :  { %4507 = vrsqrt.f32 %v1785_v63 }
 0xc8b   :  { %v1778_v41 = vpop.xlane.xlu0 %1777 }
 0xc8c   :  { %v1783_v54 = vmul.f32 0.03125, %v1778_v41 }
 0xc8e   :  { %v1786_v56 = vadd.f32 1e-05, %v1783_v54 }
 0xc90   :  { %4509 = vrsqrt.f32 %v1786_v56  ;;  %v1781_v47 = vpop.xlane.xlu1 %1780 }
 0xc91   :  { %v1784_v43 = vmul.f32 0.03125, %v1781_v47 }
 0xc93   :  { %v4508_v48 = vpop.eup %4507  ;;  %v1787_v58 = vadd.f32 1e-05, %v1784_v43 }
 0xc94   :  { %v1791_v62 = vmul.f32 %v4508_v48, %v1767_v19  ;;  %v4597_v48 = vld [vmem:[%s5841_s4] sm:$0xff] }
 0xc95   :  { %4511 = vrsqrt.f32 %v1787_v58 }
 0xc96   :  { %v1798_v36 = vmul.f32 %v3498_v57, %v1791_v62 }
 0xc98   :  { %v1805_v5 = vadd.f32 %v3499_v23, %v1798_v36  ;;  %v4598_v36 = vld [vmem:[%s5841_s4 + $0x8] sm:$0xff] }
 0xc9a   :  { %v4510_v35 = vpop.eup %4509  ;;  %3992 = vmatmul.mubr.msk.f32.vlgmr.msra.gmra.mrb[40].mxu1 %vm150_vm1, %v1805_v5 }
 0xc9b   :  { %3994 = vmatprep.mubr.msk.f32.mxu1 %vm4601_vm0, %v4602_v4  ;;  %v1792_v6 = vmul.f32 %v4510_v35, %v1768_v27 }
 0xc9d   :  { %v1799_v7 = vmul.f32 %v3498_v57, %v1792_v6 }
 0xc9f   :  { %v4512_v46 = vpop.eup %4511  ;;  %v1806_v8 = vadd.f32 %v3499_v23, %v1799_v7 }
 0xca0   :  { %v1793_v9 = vmul.f32 %v4512_v46, %v1769_v34  ;;  %v4599_v46 = vld [vmem:[%s5841_s4 + $0x10] sm:$0x3] }
 0xca1   :  { %3995 = vmatmul.mubr.msk.f32.gmra.mrb[42].mxu1 %vm150_vm1, %v1806_v8 }
 0xca2   :  { %3997 = vmatprep.mubr.msk.f32.mxu1 %vm4601_vm0, %v4602_v4  ;;  %v1800_v42 = vmul.f32 %v3498_v57, %v1793_v9 }
 0xca4   :  { %v1807_v10 = vadd.f32 %v3499_v23, %v1800_v42 }
 0xca6   :  { %3998 = vmatmul.mubr.msk.f32.gmra.mrb[44].mxu1 %vm150_vm1, %v1807_v10 }
 0xca7   :  { %4006 = vmatprep.mubr.msk.f32.mxu1 %vm4601_vm0, %v4602_v4 }
 0xd6d   :  { %v1883_v55 = vpop.f32.mrb[40].mxu1 }
 0xd6e   :  { %v3993_v1 = vpop.f32.mrb[41].mxu1  ;;  %1900 = vrot.lane.b32.xlu0 %v1883_v55, %s4604_s28 }
 0xd74   :  { %v1888_v44 = vpop.f32.mrb[42].mxu1 }
 0xd75   :  { %1908 = vrot.lane.b32.xlu0 %v1888_v44, %s4603_s27  ;;  %1902 = vrot.lane.b32.xlu1 %v1888_v44, %s4604_s28  ;;  %v3996_v12 = vpop.f32.mrb[43].mxu1  ;;  %v5346_v51 = vpack.i.bf16 %v1888_v44, %v1883_v55 }
 0xd79   :  { %1914 = vrot.lane.b32.xlu0 %v1888_v44, %s4605_s29  ;;  %1906 = vrot.lane.b32.xlu1 %v1883_v55, %s4603_s27  ;;  %v5350_v45 = vpop.f32.mrb[44].mxu1 }
 0xd7a   :  { %v3999_v59 = vpop.f32.mrb[45].mxu1 }
 0xd7d   :  { %1916 = vrot.lane.b32.xlu0 %v5350_v45, %s4605_s29  ;;  %1904 = vrot.lane.b32.xlu1 %v5350_v45, %s4604_s28 }
 0xd81   :  { %1912 = vrot.lane.b32.xlu1 %v1883_v55, %s4605_s29 }
 0xd85   :  { %1910 = vrot.lane.b32.xlu1 %v5350_v45, %s4603_s27 }
 0xd89   :  { %4386 = vrot.lane.b32.xlu1 %v5346_v51, %s4606_s30 }
 0xd8d   :  { %1922 = vrot.lane.b32.xlu1 %v5350_v45, %s4606_s30 }
 0xde0   :  { %v1901_v60 = vpop.permute.xlu0 %1900 }
 0xde7   :  { %v1903_v61 = vpop.permute.xlu1 %1902  ;;  %v1909_v14 = vpop.permute.xlu0 %1908 }
 0xde8   :  { %v5363_v20 = vpack.i.bf16 %v1903_v61, %v1901_v60 }
 0xdea   :  { %4391 = vrot.lane.b32.xlu0 %v5363_v20, %s4606_s30 }
 0xdeb   :  { %v1907_v15 = vpop.permute.xlu1 %1906  ;;  %v5375_v11 = vpop.permute.xlu0 %1914 }
 0xdec   :  { %v5367_v2 = vpack.i.bf16 %v1909_v14, %v1907_v15 }
 0xdee   :  { %4396 = vrot.lane.b32.xlu1 %v5367_v2, %s4606_s30 }
 0xdef   :  { %v5371_v38 = vpop.permute.xlu1 %1904  ;;  %v5386_v33 = vpop.permute.xlu0 %1916 }
 0xdf0   :  { %2020 = vrot.lane.b32.xlu0 %v5371_v38, %s4606_s30 }
 0xdf3   :  { %v1913_v18 = vpop.permute.xlu1 %1912 }
 0xdf4   :  { %v5378_v19 = vpack.i.bf16 %v5375_v11, %v1913_v18 }
 0xdf6   :  { %4401 = vrot.lane.b32.xlu0 %v5378_v19, %s4606_s30 }
 0xdf7   :  { %v5382_v22 = vpop.permute.xlu1 %1910 }
 0xdf8   :  { %2118 = vrot.lane.b32.xlu1 %v5382_v22, %s4606_s30 }
 0xdfa   :  { %2216 = vrot.lane.b32.xlu0 %v5386_v33, %s4606_s30 }
 0xdfb   :  { %v4387_v17 = vpop.permute.xlu1 %4386 }
 0xdfc   :  { %v4389_v26 = vunpack.i.h.bf16 %v4387_v17  ;;  %v4388_v27 = vunpack.i.l.bf16 %v4387_v17 }
 0xdfe   :  { %v4268_v25 = vpack.c.bf16 %v4389_v26, %v4388_v27 }
 0xdff   :  { %v1923_v29 = vpop.permute.xlu1 %1922 }
 0xe00   :  { %4270 = vmatpush3.bf16.xpose.msk.msra.mxu1 %vm4849_vm4, %v4268_v25 }
 0xe01   :  { %4004 = vmatprep.subr.mxu1 %v4602_v4 }
 0xe08   :  { %4005 = vmatpush3.xpose.msk.msra.mxu1 %vm322_vm3, %v1923_v29 }
 0xe09   :  { %4275 = vmatprep.subr.bf16.mxu1 %v4600_v0 }
 0xe0b   :  { %4007 = vmatmul.mubr.msk.f32.vlgmr.msra.gmra.mrb[46].mxu1 %vm322_vm3, %v1883_v55 }
 0xe0c   :  { %4009 = vmatprep.mubr.msk.f32.mxu1 %vm4601_vm0, %v4602_v4 }
 0xe0f   :  { %4010 = vmatmul.mubr.msk.f32.gmra.mrb[48].mxu1 %vm322_vm3, %v1888_v44 }
 0xe10   :  { %4012 = vmatprep.mubr.msk.f32.mxu1 %vm4601_vm0, %v4602_v4 }
 0xe13   :  { %4013 = vmatmul.mubr.msk.f32.gmra.mrb[50].mxu1 %vm322_vm3, %v5350_v45 }
 0xe14   :  { %4036 = vmatprep.mubr.msk.f32.mxu1 %vm4601_vm0, %v4602_v4 }
 0xe5c   :  { %v4392_v30 = vpop.permute.xlu0 %4391 }
 0xe5d   :  { %v4394_v16 = vunpack.i.h.bf16 %v4392_v30  ;;  %v4393_v34 = vunpack.i.l.bf16 %v4392_v30 }
 0xe5f   :  { %v4272_v37 = vpack.c.bf16 %v4394_v16, %v4393_v34 }
 0xe60   :  { %v4397_v21 = vpop.permute.xlu1 %4396 }
 0xe61   :  { %v4399_v40 = vunpack.i.h.bf16 %v4397_v21  ;;  %v4398_v32 = vunpack.i.l.bf16 %v4397_v21  ;;  %4274 = vmatpush3.bf16.xpose.msk.msra.mxu0 %vm4849_vm4, %v4272_v37 }
 0xe62   :  { %4019 = vmatprep.subr.mxu0 %v4602_v4  ;;  %v2021_v50 = vpop.permute.xlu0 %2020 }
 0xe63   :  { %v4276_v49 = vpack.c.bf16 %v4399_v40, %v4398_v32 }
 0xe65   :  { %4278 = vmatpush3.bf16.xpose.msk.msra.mxu1 %vm4849_vm4, %v4276_v49 }
 0xe66   :  { %4034 = vmatprep.subr.mxu1 %v4602_v4 }
 0xe68   :  { %v4402_v63 = vpop.permute.xlu0 %4401 }
 0xe69   :  { %v4404_v41 = vunpack.i.h.bf16 %v4402_v63  ;;  %v4403_v54 = vunpack.i.l.bf16 %v4402_v63  ;;  %4020 = vmatpush3.xpose.msk.msra.mxu0 %vm322_vm3, %v2021_v50 }
 0xe6a   :  { %4279 = vmatprep.subr.bf16.mxu0 %v4600_v0  ;;  %v2119_v47 = vpop.permute.xlu1 %2118 }
 0xe6b   :  { %v4280_v56 = vpack.c.bf16 %v4404_v41, %v4403_v54 }
 0xe6c   :  { %4022 = vmatmul.mubr.msk.f32.vlgmr.msra.gmra.mrb[38].mxu0 %vm322_vm3, %v1901_v60  ;;  %v2217_v43 = vpop.permute.xlu0 %2216 }
 0xe6d   :  { %4035 = vmatpush3.xpose.msk.msra.mxu1 %vm322_vm3, %v2119_v47  ;;  %4282 = vmatpush3.bf16.xpose.msk.msra.mxu0 %vm4849_vm4, %v4280_v56 }
 0xe6e   :  { %4024 = vmatprep.mubr.msk.f32.mxu0 %vm4601_vm0, %v4602_v4  ;;  %4049 = vmatprep.subr.mxu0 %v4602_v4 }
 0xe6f   :  { %4283 = vmatprep.subr.bf16.mxu1 %v4600_v0 }
 0xe70   :  { %4025 = vmatmul.mubr.msk.f32.gmra.mrb[40].mxu0 %vm322_vm3, %v1903_v61  ;;  %4037 = vmatmul.mubr.msk.f32.vlgmr.msra.gmra.mrb[52].mxu1 %vm322_vm3, %v1907_v15 }
 0xe71   :  { %4027 = vmatprep.mubr.msk.f32.mxu0 %vm4601_vm0, %v4602_v4  ;;  %4039 = vmatprep.mubr.msk.f32.mxu1 %vm4601_vm0, %v4602_v4 }
 0xe74   :  { %4028 = vmatmul.mubr.msk.f32.gmra.mrb[42].mxu0 %vm322_vm3, %v5371_v38  ;;  %4040 = vmatmul.mubr.msk.f32.gmra.mrb[54].mxu1 %vm322_vm3, %v1909_v14 }
 0xe75   :  { %4050 = vmatpush3.xpose.msk.msra.mxu0 %vm322_vm3, %v2217_v43  ;;  %4042 = vmatprep.mubr.msk.f32.mxu1 %vm4601_vm0, %v4602_v4 }
 0xe76   :  { %4051 = vmatprep.mubr.msk.f32.mxu0 %vm4601_vm0, %v4602_v4  ;;  %4286 = vmatprep.subr.bf16.mxu0 %v4600_v0 }
 0xe78   :  { %4043 = vmatmul.mubr.msk.f32.gmra.mrb[56].mxu1 %vm322_vm3, %v5382_v22  ;;  %4052 = vmatmul.mubr.msk.f32.vlgmr.msra.gmra.mrb[44].mxu0 %vm322_vm3, %v1913_v18 }
 0xe79   :  { %4054 = vmatprep.mubr.msk.f32.mxu0 %vm4601_vm0, %v4602_v4  ;;  %4066 = vmatprep.mubr.msk.f32.mxu1 %vm4601_vm0, %v4602_v4 }
 0xe7c   :  { %4055 = vmatmul.mubr.msk.f32.gmra.mrb[46].mxu0 %vm322_vm3, %v5375_v11 }
 0xe7d   :  { %4057 = vmatprep.mubr.msk.f32.mxu0 %vm4601_vm0, %v4602_v4 }
 0xe80   :  { %4058 = vmatmul.mubr.msk.f32.gmra.mrb[48].mxu0 %vm322_vm3, %v5386_v33 }
 0xe81   :  { %4081 = vmatprep.mubr.msk.f32.mxu0 %vm4601_vm0, %v4602_v4 }
 0xede   :  { %v2002_v52 = vpop.f32.mrb[46].mxu1 }
 0xedf   :  { %v5454_v57 = vadd.f32 %v4597_v48, %v2002_v52  ;;  %v4008_v58 = vpop.f32.mrb[47].mxu1 }
 0xee1   :  { %v2310_v62 = vsel %vm709_vm5, %v5454_v57, -inf }
 0xee2   :  { %v2007_v23 = vpop.f32.mrb[48].mxu1  ;;  %2311 = vmax.xlane.f32.xlu1 %v2310_v62 }
 0xee3   :  { %v5461_v5 = vadd.f32 %v4598_v36, %v2007_v23  ;;  %v4011_v35 = vpop.f32.mrb[49].mxu1 }
 0xee5   :  { %v2313_v6 = vsel %vm709_vm5, %v5461_v5, -inf }
 0xee6   :  { %v2012_v7 = vpop.f32.mrb[50].mxu1  ;;  %2314 = vmax.xlane.f32.xlu0 %v2313_v6 }
 0xee7   :  { %v5468_v8 = vadd.f32 %v4599_v46, %v2012_v7  ;;  %v4014_v9 = vpop.f32.mrb[51].mxu1 }
 0xee9   :  { %v2316_v42 = vsel %vm716_vm6, %v5468_v8, -inf }
 0xeea   :  { %2317 = vmax.xlane.f32.xlu1 %v2316_v42 }
 0xf3f   :  { %v2100_v10 = vpop.f32.mrb[38].mxu0 }
 0xf40   :  { %v5472_v55 = vadd.f32 %v4597_v48, %v2100_v10  ;;  %v4023_v1 = vpop.f32.mrb[39].mxu0 }
 0xf42   :  { %v2319_v44 = vsel %vm709_vm5, %v5472_v55, -inf }
 0xf43   :  { %v2198_v12 = vpop.f32.mrb[52].mxu1  ;;  %2320 = vmax.xlane.f32.xlu0 %v2319_v44  ;;  %v2105_v59 = vpop.f32.mrb[40].mxu0 }
 0xf44   :  { %v5476_v60 = vadd.f32 %v4597_v48, %v2198_v12  ;;  %v5478_v61 = vadd.f32 %v4598_v36, %v2105_v59  ;;  %v4026_v14 = vpop.f32.mrb[41].mxu0  ;;  %v4038_v15 = vpop.f32.mrb[53].mxu1 }
 0xf46   :  { %v2328_v11 = vsel %vm709_vm5, %v5476_v60, -inf  ;;  %v2322_v18 = vsel %vm709_vm5, %v5478_v61, -inf }
 0xf47   :  { %2329 = vmax.xlane.f32.xlu1 %v2328_v11  ;;  %v2203_v17 = vpop.f32.mrb[54].mxu1  ;;  %2323 = vmax.xlane.f32.xlu0 %v2322_v18  ;;  %v2110_v26 = vpop.f32.mrb[42].mxu0 }
 0xf48   :  { %v5484_v27 = vadd.f32 %v4598_v36, %v2203_v17  ;;  %v5486_v25 = vadd.f32 %v4599_v46, %v2110_v26  ;;  %v4029_v29 = vpop.f32.mrb[43].mxu0  ;;  %v4041_v30 = vpop.f32.mrb[55].mxu1 }
 0xf4a   :  { %v2331_v16 = vsel %vm709_vm5, %v5484_v27, -inf  ;;  %v2325_v34 = vsel %vm716_vm6, %v5486_v25, -inf }
 0xf4b   :  { %2332 = vmax.xlane.f32.xlu1 %v2331_v16  ;;  %v2208_v37 = vpop.f32.mrb[56].mxu1  ;;  %2326 = vmax.xlane.f32.xlu0 %v2325_v34  ;;  %v2296_v21 = vpop.f32.mrb[44].mxu0 }
 0xf4c   :  { %v5492_v40 = vadd.f32 %v4599_v46, %v2208_v37  ;;  %v5494_v32 = vadd.f32 %v4597_v48, %v2296_v21  ;;  %v4044_v49 = vpop.f32.mrb[57].mxu1  ;;  %v4053_v50 = vpop.f32.mrb[45].mxu0 }
 0xf4e   :  { %v2334_v63 = vsel %vm716_vm6, %v5492_v40, -inf  ;;  %v2337_v41 = vsel %vm709_vm5, %v5494_v32, -inf }
 0xf4f   :  { %2335 = vmax.xlane.f32.xlu1 %v2334_v63  ;;  %2338 = vmax.xlane.f32.xlu0 %v2337_v41  ;;  %v2301_v54 = vpop.f32.mrb[46].mxu0 }
 0xf50   :  { %v5500_v56 = vadd.f32 %v4598_v36, %v2301_v54  ;;  %v4056_v47 = vpop.f32.mrb[47].mxu0 }
 0xf52   :  { %v2340_v43 = vsel %vm709_vm5, %v5500_v56, -inf }
 0xf53   :  { %2341 = vmax.xlane.f32.xlu0 %v2340_v43  ;;  %v2306_v52 = vpop.f32.mrb[48].mxu0 }
 0xf54   :  { %v5504_v48 = vadd.f32 %v4599_v46, %v2306_v52  ;;  %v4059_v58 = vpop.f32.mrb[49].mxu0 }
 0xf56   :  { %v2343_v62 = vsel %vm716_vm6, %v5504_v48, -inf }
 0xf57   :  { %2344 = vmax.xlane.f32.xlu0 %v2343_v62 }
 0xf60   :  { %4411 = vrot.lane.b32.xlu1 %v5363_v20, %s4607_s7 }
 0xf64   :  { %2446 = vrot.lane.b32.xlu1 %v5350_v45, %s4607_s7 }
 0xf68   :  { %4416 = vrot.lane.b32.xlu1 %v5367_v2, %s4607_s7 }
 0xf6d   :  { %4406 = vrot.lane.b32.xlu0 %v5346_v51, %s4607_s7 }
 0xf6f   :  { %v2312_v23 = vpop.xlane.xlu1 %2311 }
 0xf70   :  { %v2346_v36 = vsub.f32 %v5454_v57, %v2312_v23 }
 0xf71   :  { %2545 = vrot.lane.b32.xlu0 %v5371_v38, %s4607_s7 }
 0xf72   :  { %v2358_v20 = vmul.f32 1.442695, %v2346_v36 }
 0xf73   :  { %v2315_v35 = vpop.xlane.xlu0 %2314 }
 0xf74   :  { %v2347_v6 = vsub.f32 %v5461_v5, %v2315_v35  ;;  %4513 = vpow2.f32 %v2358_v20 }
 0xf75   :  { %4421 = vrot.lane.b32.xlu0 %v5378_v19, %s4607_s7 }
 0xf76   :  { %v2360_v7 = vmul.f32 1.442695, %v2347_v6 }
 0xf77   :  { %v2318_v45 = vpop.xlane.xlu1 %2317 }
 0xf78   :  { %v2348_v2 = vsub.f32 %v5468_v8, %v2318_v45  ;;  %4515 = vpow2.f32 %v2360_v7 }
 0xf7a   :  { %v2362_v51 = vmul.f32 1.442695, %v2348_v2 }
 0xf7c   :  { %4517 = vpow2.f32 %v2362_v51 }
 0xf7e   :  { %v5523_v46 = vpop.eup %4513 }
 0xf7f   :  { %v2382_v38 = vsel %vm709_vm5, %v5523_v46, 0.0 }
 0xf82   :  { %v5527_v19 = vpop.eup %4515 }
 0xf83   :  { %v2385_v57 = vsel %vm709_vm5, %v5527_v19, 0.0 }
 0xf86   :  { %v5531_v5 = vpop.eup %4517 }
 0xf87   :  { %v2388_v8 = vsel %vm716_vm6, %v5531_v5, 0.0 }
 0xf8c   :  { %2383 = vadd.xlane.f32.xlu1 %v2382_v38 }
 0xf90   :  { %2386 = vadd.xlane.f32.xlu1 %v2385_v57 }
 0xf94   :  { %2389 = vadd.xlane.f32.xlu1 %v2388_v8 }
 0xfd0   :  { %v2321_v9 = vpop.xlane.xlu0 %2320 }
 0xfd1   :  { %v2349_v42 = vsub.f32 %v5472_v55, %v2321_v9 }
 0xfd3   :  { %v2364_v10 = vmul.f32 1.442695, %v2349_v42 }
 0xfd4   :  { %v2330_v1 = vpop.xlane.xlu1 %2329  ;;  %v2324_v44 = vpop.xlane.xlu0 %2323 }
 0xfd5   :  { %4519 = vpow2.f32 %v2364_v10  ;;  %v2352_v12 = vsub.f32 %v5476_v60, %v2330_v1  ;;  %v2350_v59 = vsub.f32 %v5478_v61, %v2324_v44 }
 0xfd7   :  { %v2370_v14 = vmul.f32 1.442695, %v2352_v12  ;;  %v2366_v15 = vmul.f32 1.442695, %v2350_v59 }
 0xfd8   :  { %v2333_v11 = vpop.xlane.xlu1 %2332  ;;  %v2327_v18 = vpop.xlane.xlu0 %2326 }
 0xfd9   :  { %4521 = vpow2.f32 %v2370_v14  ;;  %v2353_v17 = vsub.f32 %v5484_v27, %v2333_v11  ;;  %v2351_v26 = vsub.f32 %v5486_v25, %v2327_v18 }
 0xfda   :  { %4523 = vpow2.f32 %v2366_v15 }
 0xfdb   :  { %v2372_v29 = vmul.f32 1.442695, %v2353_v17  ;;  %v2368_v55 = vmul.f32 1.442695, %v2351_v26 }
 0xfdc   :  { %v2336_v30 = vpop.xlane.xlu1 %2335  ;;  %v2339_v16 = vpop.xlane.xlu0 %2338 }
 0xfdd   :  { %4525 = vpow2.f32 %v2372_v29  ;;  %v2354_v34 = vsub.f32 %v5492_v40, %v2336_v30  ;;  %v2355_v60 = vsub.f32 %v5494_v32, %v2339_v16 }
 0xfde   :  { %4527 = vpow2.f32 %v2368_v55 }
 0xfdf   :  { %v5542_v61 = vpop.eup %4519  ;;  %v2374_v37 = vmul.f32 1.442695, %v2354_v34  ;;  %v2376_v21 = vmul.f32 1.442695, %v2355_v60 }
 0xfe0   :  { %v4412_v49 = vpop.permute.xlu1 %4411  ;;  %v2342_v50 = vpop.xlane.xlu0 %2341  ;;  %v2391_v27 = vsel %vm709_vm5, %v5542_v61, 0.0 }
 0xfe1   :  { %4529 = vpow2.f32 %v2374_v37  ;;  %v4414_v25 = vunpack.i.h.bf16 %v4412_v49  ;;  %v4413_v63 = vunpack.i.l.bf16 %v4412_v49  ;;  %v2356_v41 = vsub.f32 %v5500_v56, %v2342_v50  ;;  %2392 = vadd.xlane.f32.xlu0 %v2391_v27 }
 0xfe2   :  { %4531 = vpow2.f32 %v2376_v21 }
 0xfe3   :  { %v5547_v40 = vpop.eup %4521  ;;  %v4287_v32 = vpack.c.bf16 %v4414_v25, %v4413_v63  ;;  %v2378_v54 = vmul.f32 1.442695, %v2356_v41 }
 0xfe4   :  { %v5549_v47 = vpop.eup %4523  ;;  %v2345_v43 = vpop.xlane.xlu0 %2344  ;;  %v2400_v52 = vsel %vm709_vm5, %v5547_v40, 0.0 }
 0xfe5   :  { %4533 = vpow2.f32 %v2378_v54  ;;  %v2357_v58 = vsub.f32 %v5504_v48, %v2345_v43  ;;  %2401 = vadd.xlane.f32.xlu1 %v2400_v52  ;;  %4288 = vmatpush3.bf16.msra.mxu0 %v4287_v32  ;;  %v2394_v56 = vsel %vm709_vm5, %v5549_v47, 0.0  ;;  %v2447_v10 = vpop.permute.xlu1 %2446 }
 0xfe6   :  { %2395 = vadd.xlane.f32.xlu0 %v2394_v56  ;;  %4079 = vmatprep.subr.mxu0 %v4602_v4 }
 0xfe7   :  { %v5557_v62 = vpop.eup %4525  ;;  %v2380_v23 = vmul.f32 1.442695, %v2357_v58  ;;  %v4425_v58 = vpack.i.bf16 %v5310_v24, %v5305_v39 }
 0xfe8   :  { %v5559_v36 = vpop.eup %4527  ;;  %v4407_v35 = vpop.permute.xlu0 %4406  ;;  %v2403_v20 = vsel %vm709_vm5, %v5557_v62, 0.0 }
 0xfe9   :  { %4535 = vpow2.f32 %v2380_v23  ;;  %v4409_v6 = vunpack.i.h.bf16 %v4407_v35  ;;  %2404 = vadd.xlane.f32.xlu1 %v2403_v20  ;;  %v4408_v48 = vunpack.i.l.bf16 %v4407_v35  ;;  %v2397_v45 = vsel %vm716_vm6, %v5559_v36, 0.0  ;;  %v4417_v12 = vpop.permute.xlu1 %4416 }
 0xfea   :  { %2398 = vadd.xlane.f32.xlu0 %v2397_v45  ;;  %v4419_v11 = vunpack.i.h.bf16 %v4417_v12  ;;  %v4418_v18 = vunpack.i.l.bf16 %v4417_v12 }
 0xfeb   :  { %v5565_v7 = vpop.eup %4529  ;;  %v4284_v51 = vpack.c.bf16 %v4409_v6, %v4408_v48 }
 0xfec   :  { %v5567_v2 = vpop.eup %4531  ;;  %v2546_v38 = vpop.permute.xlu0 %2545  ;;  %v2406_v57 = vsel %vm716_vm6, %v5565_v7, 0.0  ;;  %v4290_v29 = vpack.c.bf16 %v4419_v11, %v4418_v18 }
 0xfed   :  { %2407 = vadd.xlane.f32.xlu1 %v2406_v57  ;;  %v2409_v8 = vsel %vm709_vm5, %v5567_v2, 0.0  ;;  %4080 = vmatpush3.msk.msra.mxu0 %vm860_vm7, %v2546_v38 }
 0xfee   :  { %4285 = vmatpush3.bf16.msra.mxu1 %v4284_v51  ;;  %4292 = vmatprep.subr.bf16.mxu0 %v4600_v0 }
 0xfef   :  { %v5575_v9 = vpop.eup %4533  ;;  %2410 = vadd.xlane.f32.xlu0 %v2409_v8  ;;  %4064 = vmatprep.subr.mxu1 %v4602_v4 }
 0xff0   :  { %v2412_v42 = vsel %vm709_vm5, %v5575_v9, 0.0  ;;  %v4422_v30 = vpop.permute.xlu0 %4421 }
 0xff1   :  { %v4424_v60 = vunpack.i.h.bf16 %v4422_v30  ;;  %v4423_v37 = vunpack.i.l.bf16 %v4422_v30 }
 0xff2   :  { %4065 = vmatpush3.msk.msra.mxu1 %vm860_vm7, %v2447_v10 }
 0xff3   :  { %v5581_v1 = vpop.eup %4535  ;;  %2413 = vadd.xlane.f32.xlu0 %v2412_v42  ;;  %4289 = vmatprep.subr.bf16.mxu1 %v4600_v0  ;;  %v4293_v27 = vpack.c.bf16 %v4424_v60, %v4423_v37 }
 0xff4   :  { %v2415_v44 = vsel %vm716_vm6, %v5581_v1, 0.0 }
 0xff5   :  { %2416 = vadd.xlane.f32.xlu1 %v2415_v44 }
0x1006   :  { %2644 = vrot.lane.b32.xlu1 %v5382_v22, %s4607_s7 }
0x1009   :  { %2743 = vrot.lane.b32.xlu0 %v5386_v33, %s4607_s7 }
0x100a   :  { %4426 = vrot.lane.b32.xlu1 %v4425_v58, %s4608_s14 }
0x1019   :  { %v2384_v59 = vpop.xlane.xlu1 %2383 }
0x101a   :  { %4537 = vrcp.f32 %v2384_v59 }
0x101d   :  { %v2387_v14 = vpop.xlane.xlu1 %2386 }
0x101e   :  { %4539 = vrcp.f32 %v2387_v14 }
0x1021   :  { %v2390_v15 = vpop.xlane.xlu1 %2389 }
0x1022   :  { %4541 = vrcp.f32 %v2390_v15 }
0x1024   :  { %v4538_v17 = vpop.eup %4537 }
0x1025   :  { %v2419_v26 = vmul.f32 %v4538_v17, %v5523_v46 }
0x1027   :  { %4067 = vmatmul.mubr.msk.f32.vlgmr.msra.gmra.mrb[58].mxu1 %vm709_vm5, %v2419_v26 }
0x1028   :  { %v4540_v55 = vpop.eup %4539  ;;  %4291 = vmatpush3.bf16.msra.mxu1 %v4290_v29  ;;  %4069 = vmatprep.mubr.msk.f32.mxu1 %vm4601_vm0, %v4602_v4 }
0x1029   :  { %v2421_v22 = vmul.f32 %v4540_v55, %v5527_v19  ;;  %4094 = vmatprep.subr.mxu1 %v4602_v4 }
0x102b   :  { %4070 = vmatmul.mubr.msk.f32.gmra.mrb[60].mxu1 %vm709_vm5, %v2421_v22 }
0x102c   :  { %v4542_v33 = vpop.eup %4541  ;;  %4072 = vmatprep.mubr.msk.f32.mxu1 %vm4601_vm0, %v4602_v4 }
0x102d   :  { %v2423_v46 = vmul.f32 %v4542_v33, %v5531_v5 }
0x102f   :  { %4073 = vmatmul.mubr.msk.f32.gmra.mrb[62].mxu1 %vm709_vm5, %v2423_v46 }
0x1030   :  { %4096 = vmatprep.mubr.msk.f32.mxu1 %vm4601_vm0, %v4602_v4 }
0x106e   :  { %v2393_v16 = vpop.xlane.xlu0 %2392 }
0x106f   :  { %4543 = vrcp.f32 %v2393_v16 }
0x1072   :  { %v2402_v34 = vpop.xlane.xlu1 %2401 }
0x1073   :  { %v2396_v19 = vpop.xlane.xlu0 %2395 }
0x1074   :  { %4545 = vrcp.f32 %v2396_v19 }
0x1075   :  { %4547 = vrcp.f32 %v2402_v34 }
0x1076   :  { %v2405_v21 = vpop.xlane.xlu1 %2404 }
0x1077   :  { %v2399_v49 = vpop.xlane.xlu0 %2398 }
0x1078   :  { %4549 = vrcp.f32 %v2399_v49 }
0x1079   :  { %v4544_v50 = vpop.eup %4543  ;;  %4551 = vrcp.f32 %v2405_v21 }
0x107a   :  { %v2425_v5 = vmul.f32 %v4544_v50, %v5542_v61  ;;  %v2408_v63 = vpop.xlane.xlu1 %2407 }
0x107c   :  { %v2411_v25 = vpop.xlane.xlu0 %2410  ;;  %4082 = vmatmul.mubr.msk.f32.vlgmr.msra.gmra.mrb[50].mxu0 %vm709_vm5, %v2425_v5 }
0x107d   :  { %4553 = vrcp.f32 %v2411_v25  ;;  %4294 = vmatpush3.bf16.msra.mxu0 %v4293_v27  ;;  %4084 = vmatprep.mubr.msk.f32.mxu0 %vm4601_vm0, %v4602_v4 }
0x107e   :  { %v4546_v41 = vpop.eup %4545  ;;  %4109 = vmatprep.subr.mxu0 %v4602_v4  ;;  %4555 = vrcp.f32 %v2408_v63 }
0x107f   :  { %v2427_v32 = vmul.f32 %v4546_v41, %v5549_v47  ;;  %v4548_v61 = vpop.eup %4547 }
0x1080   :  { %v2414_v54 = vpop.xlane.xlu0 %2413  ;;  %v2431_v35 = vmul.f32 %v4548_v61, %v5547_v40 }
0x1081   :  { %4557 = vrcp.f32 %v2414_v54  ;;  %4085 = vmatmul.mubr.msk.f32.gmra.mrb[52].mxu0 %vm709_vm5, %v2427_v32 }
0x1082   :  { %v2417_v43 = vpop.xlane.xlu1 %2416  ;;  %4087 = vmatprep.mubr.msk.f32.mxu0 %vm4601_vm0, %v4602_v4  ;;  %v4550_v52 = vpop.eup %4549 }
0x1083   :  { %4559 = vrcp.f32 %v2417_v43  ;;  %v2429_v23 = vmul.f32 %v4550_v52, %v5559_v36  ;;  %v4552_v47 = vpop.eup %4551 }
0x1084   :  { %v2744_v56 = vpop.permute.xlu0 %2743  ;;  %v2433_v40 = vmul.f32 %v4552_v47, %v5557_v62  ;;  %v4430_v62 = vpack.i.bf16 %v5323_v28, %v5318_v31 }
0x1085   :  { %4110 = vmatpush3.msk.msra.mxu0 %vm860_vm7, %v2744_v56 }
0x1086   :  { %4088 = vmatmul.mubr.msk.f32.gmra.mrb[54].mxu0 %vm709_vm5, %v2429_v23  ;;  %v2645_v20 = vpop.permute.xlu1 %2644  ;;  %4301 = vmatprep.subr.bf16.mxu0 %v4600_v0 }
0x1087   :  { %v4554_v6 = vpop.eup %4553  ;;  %4095 = vmatpush3.msk.msra.mxu1 %vm860_vm7, %v2645_v20  ;;  %4111 = vmatprep.mubr.msk.f32.mxu0 %vm4601_vm0, %v4602_v4 }
0x1088   :  { %v2437_v39 = vmul.f32 %v4554_v6, %v5567_v2  ;;  %4097 = vmatmul.mubr.msk.f32.vlgmr.msra.gmra.mrb[64].mxu1 %vm709_vm5, %v2431_v35  ;;  %4295 = vmatprep.subr.bf16.mxu1 %v4600_v0  ;;  %v4556_v24 = vpop.eup %4555 }
0x1089   :  { %4099 = vmatprep.mubr.msk.f32.mxu1 %vm4601_vm0, %v4602_v4  ;;  %v2435_v2 = vmul.f32 %v4556_v24, %v5565_v7  ;;  %4431 = vrot.lane.b32.xlu0 %v4430_v62, %s4608_s14 }
0x108a   :  { %4112 = vmatmul.mubr.msk.f32.vlgmr.msra.gmra.mrb[56].mxu0 %vm709_vm5, %v2437_v39  ;;  %v4427_v7 = vpop.permute.xlu1 %4426  ;;  %v3546_v39 = vld [vmem:[%s5841_s4 + $0x1b] ss:$0 sm:$0xff] }
0x108b   :  { %v4558_v36 = vpop.eup %4557  ;;  %4114 = vmatprep.mubr.msk.f32.mxu0 %vm4601_vm0, %v4602_v4  ;;  %v4429_v38 = vunpack.i.h.bf16 %v4427_v7  ;;  %v4428_v57 = vunpack.i.l.bf16 %v4427_v7 }
0x108c   :  { %4100 = vmatmul.mubr.msk.f32.gmra.mrb[66].mxu1 %vm709_vm5, %v2433_v40  ;;  %v2439_v48 = vmul.f32 %v4558_v36, %v5575_v9 }
0x108d   :  { %v4560_v45 = vpop.eup %4559  ;;  %4102 = vmatprep.mubr.msk.f32.mxu1 %vm4601_vm0, %v4602_v4  ;;  %v4296_v9 = vpack.c.bf16 %v4429_v38, %v4428_v57 }
0x108e   :  { %4115 = vmatmul.mubr.msk.f32.gmra.mrb[58].mxu0 %vm709_vm5, %v2439_v48  ;;  %v2441_v51 = vmul.f32 %v4560_v45, %v5581_v1 }
0x108f   :  { %4117 = vmatprep.mubr.msk.f32.mxu0 %vm4601_vm0, %v4602_v4  ;;  %4297 = vmatpush3.bf16.msra.mxu1 %v4296_v9 }
0x1090   :  { %4103 = vmatmul.mubr.msk.f32.gmra.mrb[68].mxu1 %vm709_vm5, %v2435_v2  ;;  %4298 = vmatprep.subr.bf16.mxu1 %v4600_v0 }
0x1091   :  { %4128 = vmatprep.mubr.msk.f32.mxu1 %vm4601_vm0, %v4602_v4 }
0x1092   :  { %4118 = vmatmul.mubr.msk.f32.gmra.mrb[60].mxu0 %vm709_vm5, %v2441_v51 }
0x1093   :  { %4145 = vmatprep.mubr.msk.f32.mxu0 %vm4601_vm0, %v4602_v4 }
0x10fa   :  { %v2527_v8 = vpop.f32.mrb[58].mxu1 }
0x10fb   :  { %v4068_v42 = vpop.f32.mrb[59].mxu1  ;;  %v4432_v59 = vpop.permute.xlu0 %4431 }
0x10fc   :  { %v4434_v14 = vunpack.i.h.bf16 %v4432_v59  ;;  %v4433_v15 = vunpack.i.l.bf16 %v4432_v59 }
0x10fe   :  { %v2532_v10 = vpop.f32.mrb[60].mxu1  ;;  %v4299_v31 = vpack.c.bf16 %v4434_v14, %v4433_v15 }
0x10ff   :  { %v4071_v1 = vpop.f32.mrb[61].mxu1 }
0x1100   :  { %4300 = vmatpush3.bf16.msra.mxu1 %v4299_v31 }
0x1101   :  { %4307 = vmatprep.subr.bf16.mxu1 %v4600_v0 }
0x1102   :  { %v2537_v44 = vpop.f32.mrb[62].mxu1 }
0x1103   :  { %v4074_v12 = vpop.f32.mrb[63].mxu1 }
0x114f   :  { %v2626_v11 = vpop.f32.mrb[50].mxu0 }
0x1150   :  { %2841 = vrot.lane.b32.xlu1 %v2626_v11, %s4609_s0  ;;  %v4083_v28 = vpop.f32.mrb[51].mxu0 }
0x1154   :  { %v2631_v18 = vpop.f32.mrb[52].mxu0 }
0x1155   :  { %v4086_v17 = vpop.f32.mrb[53].mxu0 }
0x1159   :  { %v2636_v26 = vpop.f32.mrb[54].mxu0 }
0x115a   :  { %v4089_v29 = vpop.f32.mrb[55].mxu0 }
0x115b   :  { %v2725_v55 = vpop.f32.mrb[64].mxu1  ;;  %v1740_v29 = vld [vmem:[%s5840_s2 + $0x48] sm:$0xff] }
0x115c   :  { %2853 = vrot.lane.b32.xlu0 %v2725_v55, %s4611_s1  ;;  %v4098_v22 = vpop.f32.mrb[65].mxu1  ;;  %v1742_v55 = vld [vmem:[%s5840_s2 + $0x58] sm:$0xff] }
0x115d   :  { %v2824_v33 = vpop.f32.mrb[56].mxu0  ;;  %v4302_v22 = vpack.c.bf16 %v1742_v55, %v1740_v29 }
0x115e   :  { %v4113_v46 = vpop.f32.mrb[57].mxu0 }
0x115f   :  { %v2730_v30 = vpop.f32.mrb[66].mxu1  ;;  %4303 = vmatpush3.bf16.msra.mxu0 %v4302_v22  ;;  %v1746_v46 = vld [vmem:[%s5840_s2 + $0x78] sm:$0xff] }
0x1160   :  { %v4101_v16 = vpop.f32.mrb[67].mxu1  ;;  %2855 = vrot.lane.b32.xlu1 %v2730_v30, %s4611_s1  ;;  %2843 = vrot.lane.b32.xlu0 %v2631_v18, %s4609_s0 }
0x1161   :  { %v2829_v34 = vpop.f32.mrb[58].mxu0  ;;  %4304 = vmatprep.subr.bf16.mxu0 %v4600_v0 }
0x1162   :  { %v4116_v19 = vpop.f32.mrb[59].mxu0 }
0x1163   :  { %v2735_v60 = vpop.f32.mrb[68].mxu1 }
0x1164   :  { %v4104_v37 = vpop.f32.mrb[69].mxu1  ;;  %2865 = vrot.lane.b32.xlu1 %v2824_v33, %s4610_s15  ;;  %2867 = vrot.lane.b32.xlu0 %v2829_v34, %s4610_s15  ;;  %v1744_v33 = vld [vmem:[%s5840_s2 + $0x68] sm:$0xff] }
0x1165   :  { %v2834_v21 = vpop.f32.mrb[60].mxu0  ;;  %v4305_v30 = vpack.c.bf16 %v1746_v46, %v1744_v33 }
0x1166   :  { %v4119_v49 = vpop.f32.mrb[61].mxu0 }
0x1167   :  { %4306 = vmatpush3.bf16.msra.mxu0 %v4305_v30 }
0x1168   :  { %2845 = vrot.lane.b32.xlu1 %v2636_v26, %s4609_s0  ;;  %2857 = vrot.lane.b32.xlu0 %v2735_v60, %s4611_s1 }
0x116c   :  { %2869 = vrot.lane.b32.xlu1 %v2834_v21, %s4610_s15 }
0x11c2   :  { %v2842_v50 = vpop.permute.xlu1 %2841 }
0x11c3   :  { %v2874_v63 = vsel %vm322_vm3, %v2527_v8, %v2842_v50 }
0x11ce   :  { %v2854_v5 = vpop.permute.xlu0 %2853 }
0x11cf   :  { %v2877_v41 = vsel %vm1279_vm8, %v2874_v63, %v2854_v5 }
0x11d2   :  { %v2856_v27 = vpop.permute.xlu1 %2855  ;;  %v2844_v25 = vpop.permute.xlu0 %2843 }
0x11d3   :  { %v2875_v61 = vsel %vm322_vm3, %v2532_v10, %v2844_v25  ;;  %v3547_v25 = vld [vmem:[%s5841_s4 + $0x1c] ss:$0 sm:$0xff] }
0x11d4   :  { %v2878_v52 = vsel %vm1279_vm8, %v2875_v61, %v2856_v27 }
0x11d6   :  { %v2866_v32 = vpop.permute.xlu1 %2865  ;;  %v2868_v54 = vpop.permute.xlu0 %2867 }
0x11d7   :  { %v2880_v43 = vsel %vm1283_vm9, %v2877_v41, %v2866_v32  ;;  %v2881_v56 = vsel %vm1283_vm9, %v2878_v52, %v2868_v54  ;;  %v3548_v41 = vld [vmem:[%s5841_s4 + $0x1d] ss:$0 sm:$0xff] }
0x11d8   :  { %4129 = vmatmul.mubr.msk.f32.vlgmr.msra.gmra.mrb[70].mxu1 %vm150_vm1, %v2880_v43 }
0x11d9   :  { %4131 = vmatprep.mubr.msk.f32.mxu1 %vm4601_vm0, %v4602_v4 }
0x11da   :  { %v2846_v58 = vpop.permute.xlu1 %2845  ;;  %v2858_v47 = vpop.permute.xlu0 %2857 }
0x11db   :  { %v2876_v23 = vsel %vm322_vm3, %v2537_v44, %v2846_v58 }
0x11dc   :  { %4132 = vmatmul.mubr.msk.f32.gmra.mrb[72].mxu1 %vm150_vm1, %v2881_v56  ;;  %v2879_v35 = vsel %vm1279_vm8, %v2876_v23, %v2858_v47 }
0x11dd   :  { %4134 = vmatprep.mubr.msk.f32.mxu1 %vm4601_vm0, %v4602_v4 }
0x11de   :  { %v2870_v20 = vpop.permute.xlu1 %2869 }
0x11df   :  { %v2882_v6 = vsel %vm1283_vm9, %v2879_v35, %v2870_v20  ;;  %v1747_v20 = vld [vmem:[%s5842_s3 + $0x40] sm:$0xff] }
0x11e0   :  { %4135 = vmatmul.mubr.msk.f32.gmra.mrb[74].mxu1 %vm150_vm1, %v2882_v6  ;;  %v1748_v6 = vld [vmem:[%s5842_s3 + $0x48] sm:$0xff] }
0x11e1   :  { %4170 = vmatprep.mubr.msk.f32.mxu1 %vm4601_vm0, %v4602_v4 }
0x12ab   :  { %v2974_v24 = vpop.f32.mrb[70].mxu1 }
0x12ac   :  { %v2988_v40 = vadd.f32 %v2974_v24, %v5267_v53  ;;  %v4130_v36 = vpop.f32.mrb[71].mxu1  ;;  %v1749_v24 = vld [vmem:[%s5842_s3 + $0x50] sm:$0xff] }
0x12ae   :  { %v5683_v48 = vadd.f32 %v3546_v39, %v2988_v40  ;;  %v1750_v40 = vld [vmem:[%s5842_s3 + $0x58] sm:$0xff] }
0x12af   :  { %v2979_v45 = vpop.f32.mrb[72].mxu1  ;;  %v4311_v36 = vpack.c.bf16 %v1750_v40, %v1749_v24 }
0x12b0   :  { %v2989_v2 = vadd.f32 %v2979_v45, %v5277_v13  ;;  %v4133_v51 = vpop.f32.mrb[73].mxu1  ;;  %v2998_v62 = vsel %vm150_vm1, %v5683_v48, 0.0  ;;  %v1751_v45 = vld [vmem:[%s5842_s3 + $0x60] sm:$0xff] }
0x12b1   :  { %2999 = vadd.xlane.f32.xlu0 %v2998_v62  ;;  %v1753_v62 = vld [vmem:[%s5842_s3 + $0x70] sm:$0xff] }
0x12b2   :  { %v5688_v7 = vadd.f32 %v3546_v39, %v2989_v2  ;;  %v1752_v2 = vld [vmem:[%s5842_s3 + $0x68] sm:$0xff] }
0x12b3   :  { %v2984_v38 = vpop.f32.mrb[74].mxu1  ;;  %v4314_v51 = vpack.c.bf16 %v1752_v2, %v1751_v45 }
0x12b4   :  { %v2990_v57 = vadd.f32 %v2984_v38, %v5287_v3  ;;  %v4136_v8 = vpop.f32.mrb[75].mxu1  ;;  %v3001_v53 = vsel %vm150_vm1, %v5688_v7, 0.0  ;;  %v1754_v38 = vld [vmem:[%s5842_s3 + $0x78] sm:$0xff] }
0x12b5   :  { %3002 = vadd.xlane.f32.xlu1 %v3001_v53  ;;  %v3549_v8 = vld [vmem:[%s5841_s4 + $0x1e] ss:$0 sm:$0xff] }
0x12b6   :  { %v5693_v9 = vadd.f32 %v3546_v39, %v2990_v57  ;;  %v4308_v39 = vpack.c.bf16 %v1748_v6, %v1747_v20  ;;  %v4317_v57 = vpack.c.bf16 %v1754_v38, %v1753_v62 }
0x12b8   :  { %v3004_v13 = vsel %vm157_vm2, %v5693_v9, 0.0  ;;  %4309 = vmatpush3.bf16.msra.mxu1 %v4308_v39 }
0x12b9   :  { %3005 = vadd.xlane.f32.xlu0 %v3004_v13  ;;  %4310 = vmatprep.subr.bf16.mxu1 %v4600_v0 }
0x12bc   :  { %4312 = vmatpush3.bf16.msra.mxu1 %v4311_v36 }
0x12bd   :  { %4313 = vmatprep.subr.bf16.mxu1 %v4600_v0 }
0x12c0   :  { %4315 = vmatpush3.bf16.msra.mxu1 %v4314_v51 }
0x12c1   :  { %4316 = vmatprep.subr.bf16.mxu1 %v4600_v0 }
0x12c4   :  { %4318 = vmatpush3.bf16.msra.mxu1 %v4317_v57 }
0x133e   :  { %v3000_v42 = vpop.xlane.xlu0 %2999 }
0x133f   :  { %v3007_v10 = vmul.f32 0.03125, %v3000_v42 }
0x1341   :  { %v3010_v1 = vsub.f32 %v5683_v48, %v3007_v10 }
0x1342   :  { %v3003_v44 = vpop.xlane.xlu1 %3002 }
0x1343   :  { %v3008_v12 = vmul.f32 0.03125, %v3003_v44  ;;  %v3013_v59 = vmul.f32 %v3010_v1, %v3010_v1 }
0x1345   :  { %v3011_v3 = vsub.f32 %v5688_v7, %v3008_v12  ;;  %v3016_v14 = vsel %vm150_vm1, %v3013_v59, 0.0 }
0x1346   :  { %3017 = vadd.xlane.f32.xlu0 %v3016_v14  ;;  %v3006_v15 = vpop.xlane.xlu0 %3005 }
0x1347   :  { %v3009_v11 = vmul.f32 0.03125, %v3006_v15  ;;  %v3014_v31 = vmul.f32 %v3011_v3, %v3011_v3 }
0x1349   :  { %v3012_v28 = vsub.f32 %v5693_v9, %v3009_v11  ;;  %v3019_v18 = vsel %vm150_vm1, %v3014_v31, 0.0 }
0x134a   :  { %3020 = vadd.xlane.f32.xlu0 %v3019_v18 }
0x134b   :  { %v3015_v17 = vmul.f32 %v3012_v28, %v3012_v28 }
0x134d   :  { %v3022_v26 = vsel %vm157_vm2, %v3015_v17, 0.0 }
0x134e   :  { %3023 = vadd.xlane.f32.xlu1 %v3022_v26 }
0x13d3   :  { %v3018_v16 = vpop.xlane.xlu0 %3017 }
0x13d4   :  { %v3025_v34 = vmul.f32 0.03125, %v3018_v16 }
0x13d6   :  { %v3028_v19 = vadd.f32 1e-05, %v3025_v34 }
0x13d7   :  { %v3021_v60 = vpop.xlane.xlu0 %3020 }
0x13d8   :  { %4561 = vrsqrt.f32 %v3028_v19  ;;  %v3026_v37 = vmul.f32 0.03125, %v3021_v60 }
0x13da   :  { %v3029_v21 = vadd.f32 1e-05, %v3026_v37 }
0x13db   :  { %v3024_v49 = vpop.xlane.xlu1 %3023 }
0x13dc   :  { %4563 = vrsqrt.f32 %v3029_v21  ;;  %v3027_v50 = vmul.f32 0.03125, %v3024_v49 }
0x13de   :  { %v3030_v5 = vadd.f32 1e-05, %v3027_v50 }
0x13e0   :  { %4565 = vrsqrt.f32 %v3030_v5 }
0x13e2   :  { %v4562_v27 = vpop.eup %4561 }
0x13e3   :  { %v3034_v63 = vmul.f32 %v4562_v27, %v3010_v1 }
0x13e5   :  { %v3041_v32 = vmul.f32 %v3547_v25, %v3034_v63 }
0x13e6   :  { %v4564_v54 = vpop.eup %4563 }
0x13e7   :  { %v3048_v61 = vadd.f32 %v3548_v41, %v3041_v32  ;;  %v3035_v43 = vmul.f32 %v4564_v54, %v3011_v3 }
0x13e9   :  { %4146 = vmatmul.mubr.msk.f32.vlgmr.msra.gmra.mrb[62].mxu0 %vm150_vm1, %v3048_v61  ;;  %v3042_v52 = vmul.f32 %v3547_v25, %v3035_v43 }
0x13ea   :  { %v4566_v58 = vpop.eup %4565  ;;  %4148 = vmatprep.mubr.msk.f32.mxu0 %vm4601_vm0, %v4602_v4 }
0x13eb   :  { %v3049_v56 = vadd.f32 %v3548_v41, %v3042_v52  ;;  %v3036_v23 = vmul.f32 %v4566_v58, %v3012_v28 }
0x13ed   :  { %4149 = vmatmul.mubr.msk.f32.gmra.mrb[64].mxu0 %vm150_vm1, %v3049_v56  ;;  %v3043_v47 = vmul.f32 %v3547_v25, %v3036_v23 }
0x13ee   :  { %4151 = vmatprep.mubr.msk.f32.mxu0 %vm4601_vm0, %v4602_v4 }
0x13ef   :  { %v3050_v35 = vadd.f32 %v3548_v41, %v3043_v47 }
0x13f1   :  { %4152 = vmatmul.mubr.msk.f32.gmra.mrb[66].mxu0 %vm150_vm1, %v3050_v35 }
0x14bc   :  { %v3130_v53 = vpop.f32.mrb[62].mxu0 }
0x14bd   :  { %v5759_v13 = vadd.f32 %v3549_v8, %v3130_v53  ;;  %v4147_v42 = vpop.f32.mrb[63].mxu0 }
0x14bf   :  { %v5762_v0 = vmul.f32 0.70710677, %v5759_v13 }
0x14c0   :  { %v3135_v10 = vpop.f32.mrb[64].mxu0 }
0x14c1   :  { %v3150_v1 = vand.u32 2147483647, %v5762_v0  ;;  %v5765_v44 = vadd.f32 %v3549_v8, %v3135_v10  ;;  %v4150_v12 = vpop.f32.mrb[65].mxu0  ;;  %vm3210_vm14 = vcmp.ge.f32.partialorder %v5762_v0, 0.0 }
0x14c3   :  { %v3153_v59 = vmul.f32 0.3275911, %v3150_v1  ;;  %v5768_v3 = vmul.f32 0.70710677, %v5765_v44  ;;  %v3192_v22 = vsub.f32 0.0, %v3150_v1 }
0x14c4   :  { %v3140_v14 = vpop.f32.mrb[66].mxu0 }
0x14c5   :  { %v3156_v15 = vadd.f32 1.0, %v3153_v59  ;;  %v3151_v11 = vand.u32 2147483647, %v5768_v3  ;;  %v4153_v31 = vpop.f32.mrb[67].mxu0  ;;  %v5771_v28 = vadd.f32 %v3549_v8, %v3140_v14  ;;  %v3195_v30 = vmul.f32 %v3192_v22, %v3150_v1 }
0x14c6   :  { %vm3211_vm15 = vcmp.ge.f32.partialorder %v5768_v3, 0.0 }
0x14c7   :  { %4567 = vrcp.f32 %v3156_v15  ;;  %v3154_v18 = vmul.f32 0.3275911, %v3151_v11  ;;  %v5774_v17 = vmul.f32 0.70710677, %v5771_v28  ;;  %v3193_v16 = vsub.f32 0.0, %v3151_v11 }
0x14c8   :  { %v3198_v37 = vmul.f32 1.442695, %v3195_v30  ;;  %v3144_v15 = vmul.f32 0.5, %v5759_v13  ;;  %v3146_v3 = vmul.f32 0.5, %v5771_v28 }
0x14c9   :  { %v3157_v26 = vadd.f32 1.0, %v3154_v18  ;;  %v3152_v29 = vand.u32 2147483647, %v5774_v17  ;;  %v3196_v21 = vmul.f32 %v3193_v16, %v3151_v11  ;;  %vm3212_vm3 = vcmp.ge.f32.partialorder %v5774_v17, 0.0 }
0x14cb   :  { %4569 = vrcp.f32 %v3157_v26  ;;  %v3155_v55 = vmul.f32 0.3275911, %v3152_v29  ;;  %v3194_v5 = vsub.f32 0.0, %v3152_v29  ;;  %v3200_v63 = vmul.f32 1.442695, %v3196_v21 }
0x14cd   :  { %v3158_v33 = vadd.f32 1.0, %v3155_v55  ;;  %v3197_v61 = vmul.f32 %v3194_v5, %v3152_v29 }
0x14cf   :  { %4571 = vrcp.f32 %v3158_v33  ;;  %v3202_v35 = vmul.f32 1.442695, %v3197_v61  ;;  %v3145_v33 = vmul.f32 0.5, %v5765_v44 }
0x14d0   :  { %4573 = vpow2.f32 %v3198_v37 }
0x14d1   :  { %v4568_v46 = vpop.eup %4567  ;;  %4575 = vpow2.f32 %v3200_v63 }
0x14d2   :  { %v3165_v34 = vmul.f32 1.0614054, %v4568_v46  ;;  %4577 = vpow2.f32 %v3202_v35 }
0x14d4   :  { %v3168_v19 = vadd.f32 -1.4531521, %v3165_v34 }
0x14d5   :  { %v4570_v60 = vpop.eup %4569 }
0x14d6   :  { %v3171_v49 = vmul.f32 %v4568_v46, %v3168_v19  ;;  %v3166_v50 = vmul.f32 1.0614054, %v4570_v60  ;;  %v3556_v19 = vld [vmem:[%s5841_s4 + $0x1f] ss:$0 sm:$0xff] }
0x14d8   :  { %v3174_v27 = vadd.f32 1.4214138, %v3171_v49  ;;  %v3169_v25 = vadd.f32 -1.4531521, %v3166_v50 }
0x14d9   :  { %v4572_v41 = vpop.eup %4571 }
0x14da   :  { %v3177_v32 = vmul.f32 %v4568_v46, %v3174_v27  ;;  %v3172_v54 = vmul.f32 %v4570_v60, %v3169_v25  ;;  %v3167_v43 = vmul.f32 1.0614054, %v4572_v41  ;;  %v4574_v45 = vpop.eup %4573 }
0x14db   :  { %v4576_v53 = vpop.eup %4575 }
0x14dc   :  { %v3180_v52 = vadd.f32 -0.28449672, %v3177_v32  ;;  %v3175_v58 = vadd.f32 1.4214138, %v3172_v54  ;;  %v3170_v56 = vadd.f32 -1.4531521, %v3167_v43  ;;  %v4578_v18 = vpop.eup %4577 }
0x14de   :  { %v3183_v23 = vmul.f32 %v4568_v46, %v3180_v52  ;;  %v3178_v47 = vmul.f32 %v4570_v60, %v3175_v58  ;;  %v3173_v20 = vmul.f32 %v4572_v41, %v3170_v56 }
0x14e0   :  { %v3186_v6 = vadd.f32 0.2548296, %v3183_v23  ;;  %v3181_v39 = vadd.f32 -0.28449672, %v3178_v47  ;;  %v3176_v24 = vadd.f32 1.4214138, %v3173_v20 }
0x14e2   :  { %v3189_v40 = vmul.f32 %v4568_v46, %v3186_v6  ;;  %v3184_v36 = vmul.f32 %v4570_v60, %v3181_v39  ;;  %v3179_v2 = vmul.f32 %v4572_v41, %v3176_v24 }
0x14e4   :  { %v3204_v51 = vmul.f32 %v4574_v45, %v3189_v40  ;;  %v3187_v62 = vadd.f32 0.2548296, %v3184_v36  ;;  %v3182_v38 = vadd.f32 -0.28449672, %v3179_v2 }
0x14e6   :  { %v3207_v57 = vsub.f32 1.0, %v3204_v51  ;;  %v3190_v8 = vmul.f32 %v4570_v60, %v3187_v62  ;;  %v3185_v42 = vmul.f32 %v4572_v41, %v3182_v38 }
0x14e8   :  { %v3213_v10 = vsub.f32 0.0, %v3207_v57  ;;  %v3205_v1 = vmul.f32 %v4576_v53, %v3190_v8  ;;  %v3188_v12 = vadd.f32 0.2548296, %v3185_v42  ;;  %v3560_v42 = vld [vmem:[%s5841_s4 + $0x20] ss:$0 sm:$0xff] }
0x14ea   :  { %v3216_v59 = vsel %vm3210_vm14, %v3207_v57, %v3213_v10  ;;  %v3208_v14 = vsub.f32 1.0, %v3205_v1  ;;  %v3191_v31 = vmul.f32 %v4572_v41, %v3188_v12  ;;  %v3561_v1 = vld [vmem:[%s5841_s4 + $0x21] ss:$0 sm:$0xff] }
0x14eb   :  { %v3219_v11 = vadd.f32 1.0, %v3216_v59 }
0x14ec   :  { %v3214_v26 = vsub.f32 0.0, %v3208_v14  ;;  %v3206_v55 = vmul.f32 %v4578_v18, %v3191_v31 }
0x14ed   :  { %v3222_v29 = vmul.f32 %v3219_v11, %v3144_v15 }
0x14ee   :  { %v3217_v22 = vsel %vm3211_vm15, %v3208_v14, %v3214_v26  ;;  %v3209_v30 = vsub.f32 1.0, %v3206_v55  ;;  %v3562_v14 = vld [vmem:[%s5841_s4 + $0x22] ss:$0 sm:$0xff] }
0x14ef   :  { %v3220_v46 = vadd.f32 1.0, %v3217_v22  ;;  %4171 = vmatmul.mubr.msk.f32.vlgmr.msra.gmra.mrb[76].mxu1 %vm1629_vm11, %v3222_v29 }
0x14f0   :  { %4173 = vmatprep.mubr.msk.f32.mxu1 %vm4601_vm0, %v4602_v4  ;;  %v3215_v13 = vsub.f32 0.0, %v3209_v30 }
0x14f1   :  { %v3223_v0 = vmul.f32 %v3220_v46, %v3145_v33 }
0x14f2   :  { %v3218_v16 = vsel %vm3212_vm3, %v3209_v30, %v3215_v13 }
0x14f3   :  { %4174 = vmatmul.mubr.msk.f32.gmra.mrb[78].mxu1 %vm1629_vm11, %v3223_v0  ;;  %v3221_v34 = vadd.f32 1.0, %v3218_v16 }
0x14f4   :  { %4176 = vmatprep.mubr.msk.f32.mxu1 %vm4601_vm0, %v4602_v4  ;;  %vm3426_vm0 = vcmask 7168  }
0x14f5   :  { %v3224_v44 = vmul.f32 %v3221_v34, %v3146_v3  ;;  %v3563_v3 = vld [vmem:[%s5841_s4 + $0x23] ss:$0 sm:$0xff] }
0x14f7   :  { %4177 = vmatmul.mubr.msk.f32.gmra.mrb[80].mxu1 %vm1629_vm11, %v3224_v44 }
0x15c2   :  { %v3300_v60 = vpop.f32.mrb[76].mxu1 }
0x15c3   :  { %v3314_v37 = vadd.f32 %v3300_v60, %v5683_v48  ;;  %v4172_v17 = vpop.f32.mrb[77].mxu1 }
0x15c5   :  { %v3321_v21 = vadd.f32 %v3556_v19, %v3314_v37 }
0x15c6   :  { %v3305_v49 = vpop.f32.mrb[78].mxu1 }
0x15c7   :  { %3557 = vst.msk [vmem:[%s5843_s6 + $0x18] sm:$0xff] %vm150_vm1, %v3321_v21  ;;  %v3315_v4 = vadd.f32 %v3305_v49, %v5688_v7  ;;  %v4175_v28 = vpop.f32.mrb[79].mxu1  ;;  %v3332_v50 = vsel %vm150_vm1, %v3321_v21, 0.0 }
0x15c8   :  { %3333 = vadd.xlane.f32.xlu0 %v3332_v50 }
0x15c9   :  { %v3322_v5 = vadd.f32 %v3556_v19, %v3315_v4 }
0x15ca   :  { %v3310_v48 = vpop.f32.mrb[80].mxu1 }
0x15cb   :  { %3558 = vst.msk [vmem:[%s5843_s6 + $0x20] sm:$0xff] %vm150_vm1, %v3322_v5  ;;  %v3335_v27 = vsel %vm150_vm1, %v3322_v5, 0.0  ;;  %v3316_v25 = vadd.f32 %v3310_v48, %v5693_v9  ;;  %v4178_v63 = vpop.f32.mrb[81].mxu1 }
0x15cc   :  { %3336 = vadd.xlane.f32.xlu1 %v3335_v27 }
0x15cd   :  { %v3323_v41 = vadd.f32 %v3556_v19, %v3316_v25 }
0x15cf   :  { %3559 = vst.msk [vmem:[%s5843_s6 + $0x28] sm:$0x3] %vm157_vm2, %v3323_v41  ;;  %v3338_v7 = vsel %vm157_vm2, %v3323_v41, 0.0 }
0x15d0   :  { %3339 = vadd.xlane.f32.xlu0 %v3338_v7 }
0x1655   :  { %v3334_v32 = vpop.xlane.xlu0 %3333 }
0x1656   :  { %v3341_v54 = vmul.f32 0.03125, %v3334_v32 }
0x1658   :  { %v3344_v61 = vsub.f32 %v3321_v21, %v3341_v54 }
0x1659   :  { %v3337_v43 = vpop.xlane.xlu1 %3336 }
0x165a   :  { %v3342_v52 = vmul.f32 0.03125, %v3337_v43  ;;  %v3347_v58 = vmul.f32 %v3344_v61, %v3344_v61 }
0x165c   :  { %v3345_v56 = vsub.f32 %v3322_v5, %v3342_v52  ;;  %v3350_v9 = vsel %vm150_vm1, %v3347_v58, 0.0 }
0x165d   :  { %3351 = vadd.xlane.f32.xlu1 %v3350_v9  ;;  %v3340_v23 = vpop.xlane.xlu0 %3339 }
0x165e   :  { %v3348_v47 = vmul.f32 %v3345_v56, %v3345_v56  ;;  %v3343_v35 = vmul.f32 0.03125, %v3340_v23 }
0x1660   :  { %v3353_v20 = vsel %vm150_vm1, %v3348_v47, 0.0  ;;  %v3346_v6 = vsub.f32 %v3323_v41, %v3343_v35 }
0x1661   :  { %3354 = vadd.xlane.f32.xlu0 %v3353_v20 }
0x1662   :  { %v3349_v39 = vmul.f32 %v3346_v6, %v3346_v6 }
0x1664   :  { %v3356_v24 = vsel %vm157_vm2, %v3349_v39, 0.0 }
0x1665   :  { %3357 = vadd.xlane.f32.xlu1 %v3356_v24 }
0x16ea   :  { %v3352_v40 = vpop.xlane.xlu1 %3351 }
0x16eb   :  { %v3359_v36 = vmul.f32 0.03125, %v3352_v40 }
0x16ed   :  { %v3362_v45 = vadd.f32 1e-05, %v3359_v36 }
0x16ee   :  { %v3355_v2 = vpop.xlane.xlu0 %3354 }
0x16ef   :  { %4579 = vrsqrt.f32 %v3362_v45  ;;  %v3360_v51 = vmul.f32 0.03125, %v3355_v2 }
0x16f1   :  { %v3363_v62 = vadd.f32 1e-05, %v3360_v51 }
0x16f2   :  { %v3358_v38 = vpop.xlane.xlu1 %3357 }
0x16f3   :  { %4581 = vrsqrt.f32 %v3363_v62  ;;  %v3361_v57 = vmul.f32 0.03125, %v3358_v38 }
0x16f5   :  { %v3364_v8 = vadd.f32 1e-05, %v3361_v57 }
0x16f7   :  { %4583 = vrsqrt.f32 %v3364_v8 }
0x16f9   :  { %v4580_v53 = vpop.eup %4579 }
0x16fa   :  { %v3368_v10 = vmul.f32 %v4580_v53, %v3344_v61 }
0x16fc   :  { %v3375_v12 = vmul.f32 %v3560_v42, %v3368_v10 }
0x16fd   :  { %v4582_v59 = vpop.eup %4581 }
0x16fe   :  { %v3382_v15 = vadd.f32 %v3561_v1, %v3375_v12  ;;  %v3369_v11 = vmul.f32 %v4582_v59, %v3345_v56 }
0x1700   :  { %v3389_v31 = vmul.f32 %v3562_v14, %v3382_v15  ;;  %v3376_v18 = vmul.f32 %v3560_v42, %v3369_v11 }
0x1701   :  { %v4584_v26 = vpop.eup %4583 }
0x1702   :  { %v3392_v29 = vsel %vm150_vm1, %v3389_v31, 0.0  ;;  %v3383_v55 = vadd.f32 %v3561_v1, %v3376_v18  ;;  %v3370_v22 = vmul.f32 %v4584_v26, %v3346_v6 }
0x1703   :  { %3393 = vadd.xlane.f32.xlu0 %v3392_v29 }
0x1704   :  { %v3390_v33 = vmul.f32 %v3562_v14, %v3383_v55  ;;  %v3377_v46 = vmul.f32 %v3560_v42, %v3370_v22 }
0x1706   :  { %v3395_v30 = vsel %vm150_vm1, %v3390_v33, 0.0  ;;  %v3384_v0 = vadd.f32 %v3561_v1, %v3377_v46  ;;  %vm3429_vm1 = vcmask 1024  }
0x1707   :  { %3396 = vadd.xlane.f32.xlu1 %v3395_v30 }
0x1708   :  { %v3391_v13 = vmul.f32 %v3562_v14, %v3384_v0 }
0x170a   :  { %v3398_v16 = vsel %vm157_vm2, %v3391_v13, 0.0 }
0x170b   :  { %3399 = vadd.xlane.f32.xlu0 %v3398_v16 }
0x1790   :  { %v3394_v34 = vpop.xlane.xlu0 %3393 }
0x1791   :  { %v3405_v44 = vadd.f32 %v3563_v3, %v3394_v34 }
0x1793   :  { %v3564_v19 = vmul.f32 -1.442695, %v3405_v44 }
0x1794   :  { %v3397_v60 = vpop.xlane.xlu1 %3396 }
0x1795   :  { %4585 = vpow2.f32 %v3564_v19  ;;  %v3406_v37 = vadd.f32 %v3563_v3, %v3397_v60 }
0x1797   :  { %v3565_v17 = vmul.f32 -1.442695, %v3406_v37 }
0x1798   :  { %v3400_v21 = vpop.xlane.xlu0 %3399 }
0x1799   :  { %4587 = vpow2.f32 %v3565_v17  ;;  %v3407_v49 = vadd.f32 %v3563_v3, %v3400_v21 }
0x179b   :  { %v3566_v4 = vmul.f32 -1.442695, %v3407_v49 }
0x179d   :  { %4589 = vpow2.f32 %v3566_v4 }
0x179f   :  { %v4586_v28 = vpop.eup %4585 }
0x17a0   :  { %v3417_v50 = vadd.f32 1.0, %v4586_v28 }
0x17a2   :  { %4591 = vrcp.f32 %v3417_v50 }
0x17a3   :  { %v4588_v5 = vpop.eup %4587 }
0x17a4   :  { %v3418_v48 = vadd.f32 1.0, %v4588_v5 }
0x17a6   :  { %4593 = vrcp.f32 %v3418_v48 }
0x17a7   :  { %v4590_v27 = vpop.eup %4589 }
0x17a8   :  { %v3419_v25 = vadd.f32 1.0, %v4590_v27 }
0x17aa   :  { %4595 = vrcp.f32 %v3419_v25 }
0x17ac   :  { %v4592_v63 = vpop.eup %4591 }
0x17ad   :  { %3427 = vst.msk [vmem:[%s5844_s5] sm:$0xff] %vm3426_vm0, %v4592_v63 }
0x17b0   :  { %v4594_v41 = vpop.eup %4593 }
0x17b1   :  { %3428 = vst.msk [vmem:[%s5844_s5 + $0x8] sm:$0xff] %vm3426_vm0, %v4594_v41 }
0x17b4   :  { %v4596_v7 = vpop.eup %4595 }
0x17b5   :  { %3430 = vst.msk [vmem:[%s5844_s5 + $0x10] sm:$0x3] %vm3429_vm1, %v4596_v7 }

</bundles_post_ra>
